<compile_context>
chip_gen: v5e
topology: v5e:2x2
jax: 0.10.0
libtpu: 0.0.40
codegen_flags: <defaults>
</compile_context>

<pallas_src>
import functools

import jax
import jax.numpy as jnp
from jax.experimental import pallas as pl
from jax.experimental.pallas import tpu as pltpu

BN_EPS = 1e-5


def pcb_head_kernel(feat_ref, w1_ref, b1_ref, wc_ref, bc_ref, out_ref):
    """Single-invocation fused PCB head.

    feat_ref : (part*B, S, C)   bf16, S = bin_h*Wf, rows ordered part-major
    w1_ref   : (C, D)           bf16, 1x1 conv weight with BN scale folded in
    b1_ref   : (1, D)           f32,  folded BN bias
    wc_ref   : (D, part*N)      bf16, all per-part classifier weights, lane-dense
    bc_ref   : (part, 1, N)     f32,  per-part classifier biases
    out_ref  : (part, B, N)     f32,  logits
    """
    part, B, N = out_ref.shape

    # AdaptiveAvgPool2d((part, 1)): mean over each part's H-stripe and all of W.
    # Keep the reduction in f32 even though feat is stored bf16.
    x = feat_ref[...].astype(jnp.float32)                 # (part*B, S, C)
    pooled = jnp.mean(x, axis=1)                          # (part*B, C) f32

    # Dropout(0.5): identity (eval).
    # 1x1 conv (bias-free) with BN folded in: one bf16 MXU matmul, f32 accumulate.
    z = jnp.dot(pooled.astype(w1_ref.dtype), w1_ref[...],
                preferred_element_type=jnp.float32)       # (part*B, D)
    z = jnp.maximum(z + b1_ref[...], 0.0)                 # folded BN bias + ReLU

    # All `part` classifiers in one lane-dense matmul (part*N wide), then select
    # each part's diagonal (B, N) block.
    logits_all = jnp.dot(z.astype(wc_ref.dtype), wc_ref[...],
                         preferred_element_type=jnp.float32)  # (part*B, part*N)
    for i in range(part):
        out_ref[i] = (logits_all[i * B:(i + 1) * B, i * N:(i + 1) * N]
                      + bc_ref[i])


@functools.partial(jax.jit, static_argnames=("part",))
def pcb_head_forward(feat, w1, gamma, beta, rmean, rvar, wc, bc, *, part):
    """feat: (B, Hf, Wf, C) NHWC backbone features.  Returns (part, B, N) logits."""
    B, Hf, Wf, C = feat.shape
    D = w1.shape[1]
    N = wc.shape[2]
    assert Hf % part == 0, "feature height must be divisible by number of parts"
    bin_h = Hf // part
    S = bin_h * Wf

    # Fold eval-mode BatchNorm2d into the (bias-free) 1x1 conv.
    scale = gamma * jax.lax.rsqrt(rvar + BN_EPS)          # (1, D)
    w1f = (w1 * scale).astype(jnp.bfloat16)               # (C, D)
    b1f = (beta - rmean * scale).astype(jnp.float32)      # (1, D)

    # Layout plumbing (wrapper side): one part-major slab so a single matmul
    # covers every part.  (B, Hf, Wf, C) -> (part*B, bin_h*Wf, C).
    feat_r = feat.astype(jnp.bfloat16).reshape(B, part, bin_h, Wf, C)
    feat_r = feat_r.transpose(1, 0, 2, 3, 4).reshape(part * B, S, C)

    # Flatten per-part classifier weights into one lane-dense (D, part*N) slab.
    wcf = wc.transpose(1, 0, 2).reshape(D, part * N).astype(jnp.bfloat16)
    bcf = bc.astype(jnp.float32)                          # (part, 1, N)

    # Everything fits VMEM comfortably (~2 MB total at these shapes), so no grid:
    # a single invocation, whole arrays resident in VMEM.
    out = pl.pallas_call(
        pcb_head_kernel,
        out_shape=jax.ShapeDtypeStruct((part, B, N), jnp.float32),
        in_specs=[pl.BlockSpec(memory_space=pltpu.MemorySpace.VMEM)] * 5,
        out_specs=pl.BlockSpec(memory_space=pltpu.MemorySpace.VMEM),
    )(feat_r, w1f, b1f, wcf, bcf)
    return out


def reference_forward(feat, w1, gamma, beta, rmean, rvar, wc, bc, part):
    """Pure-JAX reference mirroring the kernel's bf16-input / f32-accum numerics."""
    B, Hf, Wf, C = feat.shape
    D = w1.shape[1]
    bin_h = Hf // part

    scale = gamma * jax.lax.rsqrt(rvar + BN_EPS)
    w1f = (w1 * scale).astype(jnp.bfloat16)
    b1f = (beta - rmean * scale).astype(jnp.float32)
    wcf = wc.astype(jnp.bfloat16)

    x = feat.astype(jnp.bfloat16).astype(jnp.float32)
    pooled = x.reshape(B, part, bin_h, Wf, C).mean(axis=(2, 3))   # (B, part, C)
    z = jnp.einsum("bpc,cd->bpd", pooled.astype(jnp.bfloat16), w1f,
                   preferred_element_type=jnp.float32)
    z = jnp.maximum(z + b1f[0], 0.0)
    logits = jnp.einsum("bpd,pdn->pbn", z.astype(jnp.bfloat16), wcf,
                        preferred_element_type=jnp.float32)
    logits = logits + bc[:, 0][:, None, :]
    return logits


if __name__ == "__main__":
    # Small-but-faithful shapes: PCB keeps 2048-d backbone features, 256-d
    # bottleneck, 6 horizontal parts.  Spatial map 12x4, batch 2, 128 classes.
    B, Hf, Wf = 2, 12, 4
    C = 2048          # dim_backbone_out
    D = 256           # dim_bottleneck
    PART = 6
    N = 128           # class_num

    key = jax.random.PRNGKey(0)
    k_feat, k_conv, k_cls = jax.random.split(key, 3)

    # "Backbone output" feature map (stands in for resnet50(x)), NHWC.
    feat = jax.random.normal(k_feat, (B, Hf, Wf, C), dtype=jnp.float32)

    # add_conv: Conv2d(2048->256, k=1, bias=False), kaiming_normal fan_out/relu.
    conv_std = (2.0 / D) ** 0.5
    w1 = jax.random.normal(k_conv, (C, D), dtype=jnp.float32) * conv_std
    # BatchNorm2d(256): weight=1, bias=0, running stats at init (0, 1).
    gamma = jnp.ones((1, D), jnp.float32)
    beta = jnp.zeros((1, D), jnp.float32)
    rmean = jnp.zeros((1, D), jnp.float32)
    rvar = jnp.ones((1, D), jnp.float32)
    # Per-part classifiers: Linear(256 -> class_num), weight ~ N(0, 0.001), bias 0.
    wc = jax.random.normal(k_cls, (PART, D, N), dtype=jnp.float32) * 0.001
    bc = jnp.zeros((PART, 1, N), jnp.float32)

    logits = pcb_head_forward(feat, w1, gamma, beta, rmean, rvar, wc, bc,
                              part=PART)
    logits = jax.block_until_ready(logits)

    ref = reference_forward(feat, w1, gamma, beta, rmean, rvar, wc, bc, PART)
    assert logits.shape == (PART, B, N)
    # Kernel and reference share identical bf16-rounded operands and f32
    # accumulation; observed differences are ~1e-6 (tolerance has margin).
    assert jnp.allclose(logits, ref, atol=1e-3, rtol=1e-3), "mismatch vs reference"

    # The PyTorch module returns a list of `part` tensors of shape (B, class_num).
    predict = [logits[i] for i in range(PART)]
    assert len(predict) == PART and predict[0].shape == (B, N)

    print("KERNEL_OK")
</pallas_src>

<mosaic_0001>
module attributes {stable_mosaic.version = 11 : i64} {
  func.func @pcb_head_kernel(%arg0: memref<12x8x2048xbf16, #tpu.memory_space<vmem>>, %arg1: memref<2048x256xbf16, #tpu.memory_space<vmem>>, %arg2: memref<1x256xf32, #tpu.memory_space<vmem>>, %arg3: memref<256x768xbf16, #tpu.memory_space<vmem>>, %arg4: memref<6x1x128xf32, #tpu.memory_space<vmem>>, %arg5: memref<6x2x128xf32, #tpu.memory_space<vmem>>) attributes {dimension_semantics = [], scalar_prefetch = 0 : i64, scratch_operands = 0 : i64, tpu.core_type = #tpu.core_type<tc>} {
    %c0 = arith.constant 0 : index
    %c0_0 = arith.constant 0 : index
    %c0_1 = arith.constant 0 : index
    %0 = vector.load %arg0[%c0, %c0_0, %c0_1] : memref<12x8x2048xbf16, #tpu.memory_space<vmem>>, vector<12x8x2048xbf16>
    %1 = arith.extf %0 : vector<12x8x2048xbf16> to vector<12x8x2048xf32>
    %cst = arith.constant dense<0.000000e+00> : vector<12x2048xf32>
    %2 = vector.multi_reduction <add>, %1, %cst [1] : vector<12x8x2048xf32> to vector<12x2048xf32>
    %cst_2 = arith.constant 8.000000e+00 : f32
    %3 = vector.broadcast %cst_2 : f32 to vector<12x2048xf32>
    %4 = arith.divf %2, %3 : vector<12x2048xf32>
    %5 = arith.truncf %4 : vector<12x2048xf32> to vector<12x2048xbf16>
    %c0_3 = arith.constant 0 : index
    %c0_4 = arith.constant 0 : index
    %6 = vector.load %arg1[%c0_3, %c0_4] : memref<2048x256xbf16, #tpu.memory_space<vmem>>, vector<2048x256xbf16>
    %cst_5 = arith.constant dense<0.000000e+00> : vector<12x256xf32>
    %7 = tpu.matmul %5, %6, %cst_5 {dimension_numbers = #tpu.dot_dimension_numbers<[1], [0], [0], [1], [0, 0, 1, 1], [], []>} : vector<12x2048xbf16>, vector<2048x256xbf16>, vector<12x256xf32> -> vector<12x256xf32>
    %c0_6 = arith.constant 0 : index
    %c0_7 = arith.constant 0 : index
    %8 = vector.load %arg2[%c0_6, %c0_7] : memref<1x256xf32, #tpu.memory_space<vmem>>, vector<1x256xf32>
    %9 = vector.broadcast %8 : vector<1x256xf32> to vector<12x256xf32>
    %10 = arith.addf %7, %9 : vector<12x256xf32>
    %cst_8 = arith.constant 0.000000e+00 : f32
    %11 = vector.broadcast %cst_8 : f32 to vector<12x256xf32>
    %12 = arith.maximumf %10, %11 : vector<12x256xf32>
    %13 = arith.truncf %12 : vector<12x256xf32> to vector<12x256xbf16>
    %c0_9 = arith.constant 0 : index
    %c0_10 = arith.constant 0 : index
    %14 = vector.load %arg3[%c0_9, %c0_10] : memref<256x768xbf16, #tpu.memory_space<vmem>>, vector<256x768xbf16>
    %cst_11 = arith.constant dense<0.000000e+00> : vector<12x768xf32>
    %15 = tpu.matmul %13, %14, %cst_11 {dimension_numbers = #tpu.dot_dimension_numbers<[1], [0], [0], [1], [0, 0, 1, 1], [], []>} : vector<12x256xbf16>, vector<256x768xbf16>, vector<12x768xf32> -> vector<12x768xf32>
    %16 = vector.extract_strided_slice %15 {offsets = [0, 0], sizes = [2, 128], strides = [1, 1]} : vector<12x768xf32> to vector<2x128xf32>
    %c0_12 = arith.constant 0 : index
    %c0_13 = arith.constant 0 : index
    %c0_14 = arith.constant 0 : index
    %17 = vector.load %arg4[%c0_12, %c0_13, %c0_14] : memref<6x1x128xf32, #tpu.memory_space<vmem>>, vector<1x1x128xf32>
    %18 = vector.shape_cast %17 : vector<1x1x128xf32> to vector<1x128xf32>
    %19 = vector.broadcast %18 : vector<1x128xf32> to vector<2x128xf32>
    %20 = arith.addf %16, %19 : vector<2x128xf32>
    %c0_15 = arith.constant 0 : index
    %c0_16 = arith.constant 0 : index
    %c0_17 = arith.constant 0 : index
    %21 = vector.load %arg5[%c0_15, %c0_16, %c0_17] : memref<6x2x128xf32, #tpu.memory_space<vmem>>, vector<1x2x128xf32>
    %22 = vector.shape_cast %21 : vector<1x2x128xf32> to vector<2x128xf32>
    %23 = vector.shape_cast %20 : vector<2x128xf32> to vector<1x2x128xf32>
    tpu.vector_store %arg5[%c0_15, %c0_16, %c0_17], %23 {strides = array<i32>} : memref<6x2x128xf32, #tpu.memory_space<vmem>>, vector<1x2x128xf32>,
    %24 = vector.extract_strided_slice %15 {offsets = [2, 128], sizes = [2, 128], strides = [1, 1]} : vector<12x768xf32> to vector<2x128xf32>
    %c1 = arith.constant 1 : index
    %c0_18 = arith.constant 0 : index
    %c0_19 = arith.constant 0 : index
    %25 = vector.load %arg4[%c1, %c0_18, %c0_19] : memref<6x1x128xf32, #tpu.memory_space<vmem>>, vector<1x1x128xf32>
    %26 = vector.shape_cast %25 : vector<1x1x128xf32> to vector<1x128xf32>
    %27 = vector.broadcast %26 : vector<1x128xf32> to vector<2x128xf32>
    %28 = arith.addf %24, %27 : vector<2x128xf32>
    %c1_20 = arith.constant 1 : index
    %c0_21 = arith.constant 0 : index
    %c0_22 = arith.constant 0 : index
    %29 = vector.load %arg5[%c1_20, %c0_21, %c0_22] : memref<6x2x128xf32, #tpu.memory_space<vmem>>, vector<1x2x128xf32>
    %30 = vector.shape_cast %29 : vector<1x2x128xf32> to vector<2x128xf32>
    %31 = vector.shape_cast %28 : vector<2x128xf32> to vector<1x2x128xf32>
    tpu.vector_store %arg5[%c1_20, %c0_21, %c0_22], %31 {strides = array<i32>} : memref<6x2x128xf32, #tpu.memory_space<vmem>>, vector<1x2x128xf32>,
    %32 = vector.extract_strided_slice %15 {offsets = [4, 256], sizes = [2, 128], strides = [1, 1]} : vector<12x768xf32> to vector<2x128xf32>
    %c2 = arith.constant 2 : index
    %c0_23 = arith.constant 0 : index
    %c0_24 = arith.constant 0 : index
    %33 = vector.load %arg4[%c2, %c0_23, %c0_24] : memref<6x1x128xf32, #tpu.memory_space<vmem>>, vector<1x1x128xf32>
    %34 = vector.shape_cast %33 : vector<1x1x128xf32> to vector<1x128xf32>
    %35 = vector.broadcast %34 : vector<1x128xf32> to vector<2x128xf32>
    %36 = arith.addf %32, %35 : vector<2x128xf32>
    %c2_25 = arith.constant 2 : index
    %c0_26 = arith.constant 0 : index
    %c0_27 = arith.constant 0 : index
    %37 = vector.load %arg5[%c2_25, %c0_26, %c0_27] : memref<6x2x128xf32, #tpu.memory_space<vmem>>, vector<1x2x128xf32>
    %38 = vector.shape_cast %37 : vector<1x2x128xf32> to vector<2x128xf32>
    %39 = vector.shape_cast %36 : vector<2x128xf32> to vector<1x2x128xf32>
    tpu.vector_store %arg5[%c2_25, %c0_26, %c0_27], %39 {strides = array<i32>} : memref<6x2x128xf32, #tpu.memory_space<vmem>>, vector<1x2x128xf32>,
    %40 = vector.extract_strided_slice %15 {offsets = [6, 384], sizes = [2, 128], strides = [1, 1]} : vector<12x768xf32> to vector<2x128xf32>
    %c3 = arith.constant 3 : index
    %c0_28 = arith.constant 0 : index
    %c0_29 = arith.constant 0 : index
    %41 = vector.load %arg4[%c3, %c0_28, %c0_29] : memref<6x1x128xf32, #tpu.memory_space<vmem>>, vector<1x1x128xf32>
    %42 = vector.shape_cast %41 : vector<1x1x128xf32> to vector<1x128xf32>
    %43 = vector.broadcast %42 : vector<1x128xf32> to vector<2x128xf32>
    %44 = arith.addf %40, %43 : vector<2x128xf32>
    %c3_30 = arith.constant 3 : index
    %c0_31 = arith.constant 0 : index
    %c0_32 = arith.constant 0 : index
    %45 = vector.load %arg5[%c3_30, %c0_31, %c0_32] : memref<6x2x128xf32, #tpu.memory_space<vmem>>, vector<1x2x128xf32>
    %46 = vector.shape_cast %45 : vector<1x2x128xf32> to vector<2x128xf32>
    %47 = vector.shape_cast %44 : vector<2x128xf32> to vector<1x2x128xf32>
    tpu.vector_store %arg5[%c3_30, %c0_31, %c0_32], %47 {strides = array<i32>} : memref<6x2x128xf32, #tpu.memory_space<vmem>>, vector<1x2x128xf32>,
    %48 = vector.extract_strided_slice %15 {offsets = [8, 512], sizes = [2, 128], strides = [1, 1]} : vector<12x768xf32> to vector<2x128xf32>
    %c4 = arith.constant 4 : index
    %c0_33 = arith.constant 0 : index
    %c0_34 = arith.constant 0 : index
    %49 = vector.load %arg4[%c4, %c0_33, %c0_34] : memref<6x1x128xf32, #tpu.memory_space<vmem>>, vector<1x1x128xf32>
    %50 = vector.shape_cast %49 : vector<1x1x128xf32> to vector<1x128xf32>
    %51 = vector.broadcast %50 : vector<1x128xf32> to vector<2x128xf32>
    %52 = arith.addf %48, %51 : vector<2x128xf32>
    %c4_35 = arith.constant 4 : index
    %c0_36 = arith.constant 0 : index
    %c0_37 = arith.constant 0 : index
    %53 = vector.load %arg5[%c4_35, %c0_36, %c0_37] : memref<6x2x128xf32, #tpu.memory_space<vmem>>, vector<1x2x128xf32>
    %54 = vector.shape_cast %53 : vector<1x2x128xf32> to vector<2x128xf32>
    %55 = vector.shape_cast %52 : vector<2x128xf32> to vector<1x2x128xf32>
    tpu.vector_store %arg5[%c4_35, %c0_36, %c0_37], %55 {strides = array<i32>} : memref<6x2x128xf32, #tpu.memory_space<vmem>>, vector<1x2x128xf32>,
    %56 = vector.extract_strided_slice %15 {offsets = [10, 640], sizes = [2, 128], strides = [1, 1]} : vector<12x768xf32> to vector<2x128xf32>
    %c5 = arith.constant 5 : index
    %c0_38 = arith.constant 0 : index
    %c0_39 = arith.constant 0 : index
    %57 = vector.load %arg4[%c5, %c0_38, %c0_39] : memref<6x1x128xf32, #tpu.memory_space<vmem>>, vector<1x1x128xf32>
    %58 = vector.shape_cast %57 : vector<1x1x128xf32> to vector<1x128xf32>
    %59 = vector.broadcast %58 : vector<1x128xf32> to vector<2x128xf32>
    %60 = arith.addf %56, %59 : vector<2x128xf32>
    %c5_40 = arith.constant 5 : index
    %c0_41 = arith.constant 0 : index
    %c0_42 = arith.constant 0 : index
    %61 = vector.load %arg5[%c5_40, %c0_41, %c0_42] : memref<6x2x128xf32, #tpu.memory_space<vmem>>, vector<1x2x128xf32>
    %62 = vector.shape_cast %61 : vector<1x2x128xf32> to vector<2x128xf32>
    %63 = vector.shape_cast %60 : vector<2x128xf32> to vector<1x2x128xf32>
    tpu.vector_store %arg5[%c5_40, %c0_41, %c0_42], %63 {strides = array<i32>} : memref<6x2x128xf32, #tpu.memory_space<vmem>>, vector<1x2x128xf32>,
    return
  }
}

</mosaic_0001>

<bundles_post_ra>
// kernel: pcb_head_forward.1
= control target key start
LH: loop header
LB: loop body
LE: loop exit
PB: predicated region body
PF: predicated region fallthrough
CT: control target
= control target key end

     0   :  { %s11103_s0 = inlined_call_operand.vmem [shape: bf16[12,8,2048], index: 0, kind: input, shape index: {}]   ;;  %s11104_s1 = inlined_call_operand.vmem [shape: bf16[2048,256], index: 1, kind: input, shape index: {}]   ;;  %s11105_s2 = inlined_call_operand.vmem [shape: f32[1,256], index: 2, kind: input, shape index: {}]   ;;  %s11106_s3 = inlined_call_operand.vmem [shape: bf16[256,768], index: 3, kind: input, shape index: {}]   ;;  %s11107_s4 = inlined_call_operand.vmem [shape: f32[6,1,128], index: 4, kind: input, shape index: {}]   ;;  %s11108_s5 = inlined_call_operand.hbm [shape: f32[6,2,128], index: 5, kind: output, shape index: {}]  }
   0x1   :  { %v5285_v0 = vld [vmem:[%s11104_s1 + $0x70] sm:$0xf]  ;;  %v6655_v1 = vld [vmem:[%s11104_s1 + $0x74] sm:$0xf0]  ;;  %v5277_v11 = vld [vmem:[%s11104_s1 + $0x60] sm:$0xf] }
   0x2   :  { %v5349_v2 = vld [vmem:[%s11104_s1 + $0xf0] sm:$0xf]  ;;  %v5286_v3 = vor.u32 %v6655_v1, %v5285_v0  ;;  %v6671_v4 = vld [vmem:[%s11104_s1 + $0xf4] sm:$0xf0]  ;;  %v6653_v13 = vld [vmem:[%s11104_s1 + $0x64] sm:$0xf0] }
   0x3   :  { %v5413_v5 = vld [vmem:[%s11104_s1 + $0x170] sm:$0xf]  ;;  %v6687_v6 = vld [vmem:[%s11104_s1 + $0x174] sm:$0xf0]  ;;  %v5350_v7 = vor.u32 %v6671_v4, %v5349_v2  ;;  %v5341_v14 = vld [vmem:[%s11104_s1 + $0xe0] sm:$0xf]  ;;  %v5278_v16 = vor.u32 %v6653_v13, %v5277_v11 }
   0x4   :  { %v5414_v8 = vor.u32 %v6687_v6, %v5413_v5  ;;  %v5477_v9 = vld [vmem:[%s11104_s1 + $0x1f0] sm:$0xf]  ;;  %v6703_v10 = vld [vmem:[%s11104_s1 + $0x1f4] sm:$0xf0]  ;;  %3977 = vmatpush.bf16.msra.mxu0 %v5286_v3  ;;  %v6669_v15 = vld [vmem:[%s11104_s1 + $0xe4] sm:$0xf0] }
   0x5   :  { %v5478_v12 = vor.u32 %v6703_v10, %v5477_v9  ;;  %3991 = vmatpush.bf16.msra.mxu1 %v5350_v7  ;;  %v5342_v17 = vor.u32 %v6669_v15, %v5341_v14  ;;  %v5405_v18 = vld [vmem:[%s11104_s1 + $0x160] sm:$0xf]  ;;  %v6685_v19 = vld [vmem:[%s11104_s1 + $0x164] sm:$0xf0]  ;;  %v5269_v23 = vld [vmem:[%s11104_s1 + $0x50] sm:$0xf] }
   0x6   :  { %4005 = vmatpush.bf16.msra.mxu2 %v5414_v8  ;;  %v5469_v20 = vld [vmem:[%s11104_s1 + $0x1e0] sm:$0xf]  ;;  %v5406_v21 = vor.u32 %v6685_v19, %v5405_v18  ;;  %v6701_v22 = vld [vmem:[%s11104_s1 + $0x1e4] sm:$0xf0]  ;;  %v6651_v24 = vld [vmem:[%s11104_s1 + $0x54] sm:$0xf0] }
   0x7   :  { %4019 = vmatpush.bf16.msra.mxu3 %v5478_v12  ;;  %v5470_v25 = vor.u32 %v6701_v22, %v5469_v20  ;;  %v5333_v26 = vld [vmem:[%s11104_s1 + $0xd0] sm:$0xf]  ;;  %v6667_v27 = vld [vmem:[%s11104_s1 + $0xd4] sm:$0xf0]  ;;  %v5270_v29 = vor.u32 %v6651_v24, %v5269_v23  ;;  %v5261_v35 = vld [vmem:[%s11104_s1 + $0x40] sm:$0xf] }
   0x8   :  { %v5397_v28 = vld [vmem:[%s11104_s1 + $0x150] sm:$0xf]  ;;  %3978 = vmatpush.bf16.msra.mxu0 %v5278_v16  ;;  %v6683_v30 = vld [vmem:[%s11104_s1 + $0x154] sm:$0xf0]  ;;  %v5334_v33 = vor.u32 %v6667_v27, %v5333_v26  ;;  %v6649_v36 = vld [vmem:[%s11104_s1 + $0x44] sm:$0xf0] }
   0x9   :  { %v5461_v31 = vld [vmem:[%s11104_s1 + $0x1d0] sm:$0xf]  ;;  %v6699_v32 = vld [vmem:[%s11104_s1 + $0x1d4] sm:$0xf0]  ;;  %3992 = vmatpush.bf16.msra.mxu1 %v5342_v17  ;;  %v5398_v34 = vor.u32 %v6683_v30, %v5397_v28  ;;  %v5325_v37 = vld [vmem:[%s11104_s1 + $0xc0] sm:$0xf]  ;;  %v5262_v44 = vor.u32 %v6649_v36, %v5261_v35 }
   0xa   :  { %4006 = vmatpush.bf16.msra.mxu2 %v5406_v21  ;;  %v5462_v38 = vor.u32 %v6699_v32, %v5461_v31  ;;  %v6665_v39 = vld [vmem:[%s11104_s1 + $0xc4] sm:$0xf0]  ;;  %v5389_v40 = vld [vmem:[%s11104_s1 + $0x140] sm:$0xf]  ;;  %v5253_v47 = vld [vmem:[%s11104_s1 + $0x30] sm:$0xf] }
   0xb   :  { %4020 = vmatpush.bf16.msra.mxu3 %v5470_v25  ;;  %v6681_v41 = vld [vmem:[%s11104_s1 + $0x144] sm:$0xf0]  ;;  %v5453_v42 = vld [vmem:[%s11104_s1 + $0x1c0] sm:$0xf]  ;;  %v5326_v45 = vor.u32 %v6665_v39, %v5325_v37  ;;  %v6647_v48 = vld [vmem:[%s11104_s1 + $0x34] sm:$0xf0] }
   0xc   :  { %v6697_v43 = vld [vmem:[%s11104_s1 + $0x1c4] sm:$0xf0]  ;;  %3979 = vmatpush.bf16.msra.mxu0 %v5270_v29  ;;  %v5390_v46 = vor.u32 %v6681_v41, %v5389_v40  ;;  %v5317_v49 = vld [vmem:[%s11104_s1 + $0xb0] sm:$0xf]  ;;  %v6663_v51 = vld [vmem:[%s11104_s1 + $0xb4] sm:$0xf0]  ;;  %v5254_v56 = vor.u32 %v6647_v48, %v5253_v47 }
   0xd   :  { %3993 = vmatpush.bf16.msra.mxu1 %v5334_v33  ;;  %v5454_v50 = vor.u32 %v6697_v43, %v5453_v42  ;;  %v5381_v52 = vld [vmem:[%s11104_s1 + $0x130] sm:$0xf]  ;;  %v6679_v53 = vld [vmem:[%s11104_s1 + $0x134] sm:$0xf0]  ;;  %v5318_v57 = vor.u32 %v6663_v51, %v5317_v49  ;;  %v5245_v59 = vld [vmem:[%s11104_s1 + $0x20] sm:$0xf] }
   0xe   :  { %4007 = vmatpush.bf16.msra.mxu2 %v5398_v34  ;;  %v5445_v54 = vld [vmem:[%s11104_s1 + $0x1b0] sm:$0xf]  ;;  %v6695_v55 = vld [vmem:[%s11104_s1 + $0x1b4] sm:$0xf0]  ;;  %v5382_v58 = vor.u32 %v6679_v53, %v5381_v52  ;;  %v6645_v60 = vld [vmem:[%s11104_s1 + $0x24] sm:$0xf0] }
   0xf   :  { %4021 = vmatpush.bf16.msra.mxu3 %v5462_v38  ;;  %v5309_v61 = vld [vmem:[%s11104_s1 + $0xa0] sm:$0xf]  ;;  %v5446_v62 = vor.u32 %v6695_v55, %v5445_v54  ;;  %v6661_v63 = vld [vmem:[%s11104_s1 + $0xa4] sm:$0xf0]  ;;  %v5246_v4 = vor.u32 %v6645_v60, %v5245_v59  ;;  %v5237_v5 = vld [vmem:[%s11104_s1 + $0x10] sm:$0xf] }
  0x10   :  { %3980 = vmatpush.bf16.msra.mxu0 %v5262_v44  ;;  %v5373_v0 = vld [vmem:[%s11104_s1 + $0x120] sm:$0xf]  ;;  %v6677_v1 = vld [vmem:[%s11104_s1 + $0x124] sm:$0xf0]  ;;  %v5310_v6 = vor.u32 %v6661_v63, %v5309_v61  ;;  %v6643_v8 = vld [vmem:[%s11104_s1 + $0x14] sm:$0xf0] }
  0x11   :  { %3994 = vmatpush.bf16.msra.mxu1 %v5326_v45  ;;  %v5437_v2 = vld [vmem:[%s11104_s1 + $0x1a0] sm:$0xf]  ;;  %v6693_v3 = vld [vmem:[%s11104_s1 + $0x1a4] sm:$0xf0]  ;;  %v5374_v7 = vor.u32 %v6677_v1, %v5373_v0  ;;  %v5301_v9 = vld [vmem:[%s11104_s1 + $0x90] sm:$0xf]  ;;  %v5238_v18 = vor.u32 %v6643_v8, %v5237_v5 }
  0x12   :  { %4008 = vmatpush.bf16.msra.mxu2 %v5390_v46  ;;  %v6659_v10 = vld [vmem:[%s11104_s1 + $0x94] sm:$0xf0]  ;;  %v5438_v11 = vor.u32 %v6693_v3, %v5437_v2  ;;  %v5365_v12 = vld [vmem:[%s11104_s1 + $0x110] sm:$0xf]  ;;  %v5229_v16 = vld [vmem:[%s11104_s1] sm:$0xf] }
  0x13   :  { %4022 = vmatpush.bf16.msra.mxu3 %v5454_v50  ;;  %v6675_v13 = vld [vmem:[%s11104_s1 + $0x114] sm:$0xf0]  ;;  %v5429_v14 = vld [vmem:[%s11104_s1 + $0x190] sm:$0xf]  ;;  %v6641_v17 = vld [vmem:[%s11104_s1 + $0x4] sm:$0xf0]  ;;  %v5302_v23 = vor.u32 %v6659_v10, %v5301_v9 }
  0x14   :  { %3981 = vmatpush.bf16.msra.mxu0 %v5254_v56  ;;  %v6691_v15 = vld [vmem:[%s11104_s1 + $0x194] sm:$0xf0]  ;;  %v7241_v19 = vld [vmem:[%s11104_s1 + $0x80] sm:$0xf]  ;;  %v7246_v20 = vld [vmem:[%s11104_s1 + $0x84] sm:$0xf0]  ;;  %v5366_v24 = vor.u32 %v6675_v13, %v5365_v12  ;;  %v5230_v45 = vor.u32 %v6641_v17, %v5229_v16 }
  0x15   :  { %3995 = vmatpush.bf16.msra.mxu1 %v5318_v57  ;;  %v7251_v21 = vld [vmem:[%s11104_s1 + $0x100] sm:$0xf]  ;;  %v6673_v22 = vld [vmem:[%s11104_s1 + $0x104] sm:$0xf0]  ;;  %v7269_v27 = vld [vmem:[%s11104_s1 + $0x270] sm:$0xf]  ;;  %v5430_v33 = vor.u32 %v6691_v15, %v5429_v14  ;;  %v5294_v49 = vor.u32 %v7246_v20, %v7241_v19 }
  0x16   :  { %4009 = vmatpush.bf16.msra.mxu2 %v5382_v58  ;;  %v7259_v25 = vld [vmem:[%s11104_s1 + $0x180] sm:$0xf]  ;;  %v7264_v26 = vld [vmem:[%s11104_s1 + $0x184] sm:$0xf0]  ;;  %v6719_v28 = vld [vmem:[%s11104_s1 + $0x274] sm:$0xf0]  ;;  %v5358_v50 = vor.u32 %v6673_v22, %v7251_v21 }
  0x17   :  { %4023 = vmatpush.bf16.msra.mxu3 %v5446_v62  ;;  %v7277_v29 = vld [vmem:[%s11104_s1 + $0x2f0] sm:$0xf]  ;;  %v7282_v30 = vld [vmem:[%s11104_s1 + $0x2f4] sm:$0xf0]  ;;  %v7307_v36 = vld [vmem:[%s11104_s1 + $0x260] sm:$0xf]  ;;  %v5422_v54 = vor.u32 %v7264_v26, %v7259_v25  ;;  %v5542_v55 = vor.u32 %v6719_v28, %v7269_v27 }
  0x18   :  { %3982 = vmatpush.bf16.msra.mxu0 %v5246_v4  ;;  %v7287_v31 = vld [vmem:[%s11104_s1 + $0x370] sm:$0xf]  ;;  %v7292_v32 = vld [vmem:[%s11104_s1 + $0x374] sm:$0xf0]  ;;  %v7312_v37 = vld [vmem:[%s11104_s1 + $0x264] sm:$0xf0]  ;;  %v5606_v56 = vor.u32 %v7282_v30, %v7277_v29 }
  0x19   :  { %3996 = vmatpush.bf16.msra.mxu1 %v5310_v6  ;;  %v7297_v34 = vld [vmem:[%s11104_s1 + $0x3f0] sm:$0xf]  ;;  %v7302_v35 = vld [vmem:[%s11104_s1 + $0x3f4] sm:$0xf0]  ;;  %v7317_v38 = vld [vmem:[%s11104_s1 + $0x2e0] sm:$0xf]  ;;  %v5670_v57 = vor.u32 %v7292_v32, %v7287_v31  ;;  %v5534_v62 = vor.u32 %v7312_v37, %v7307_v36 }
  0x1a   :  { %4010 = vmatpush.bf16.msra.mxu2 %v5374_v7  ;;  %v7322_v39 = vld [vmem:[%s11104_s1 + $0x2e4] sm:$0xf0]  ;;  %v7327_v40 = vld [vmem:[%s11104_s1 + $0x360] sm:$0xf]  ;;  %v7347_v44 = vld [vmem:[%s11104_s1 + $0x250] sm:$0xf]  ;;  %v5734_v61 = vor.u32 %v7302_v35, %v7297_v34 }
  0x1b   :  { %4024 = vmatpush.bf16.msra.mxu3 %v5438_v11  ;;  %v7332_v41 = vld [vmem:[%s11104_s1 + $0x364] sm:$0xf0]  ;;  %v7337_v42 = vld [vmem:[%s11104_s1 + $0x3e0] sm:$0xf]  ;;  %v7352_v46 = vld [vmem:[%s11104_s1 + $0x254] sm:$0xf0]  ;;  %v5598_v63 = vor.u32 %v7322_v39, %v7317_v38 }
  0x1c   :  { %v7342_v43 = vld [vmem:[%s11104_s1 + $0x3e4] sm:$0xf0]  ;;  %3983 = vmatpush.bf16.msra.mxu0 %v5238_v18  ;;  %v7357_v47 = vld [vmem:[%s11104_s1 + $0x2d0] sm:$0xf]  ;;  %v7362_v48 = vld [vmem:[%s11104_s1 + $0x2d4] sm:$0xf0]  ;;  %v5662_v0 = vor.u32 %v7332_v41, %v7327_v40  ;;  %v5526_v5 = vor.u32 %v7352_v46, %v7347_v44 }
  0x1d   :  { %3997 = vmatpush.bf16.msra.mxu1 %v5302_v23  ;;  %v7370_v51 = vld [vmem:[%s11104_s1 + $0x350] sm:$0xf]  ;;  %v7375_v52 = vld [vmem:[%s11104_s1 + $0x354] sm:$0xf0]  ;;  %v7397_v59 = vld [vmem:[%s11104_s1 + $0x240] sm:$0xf]  ;;  %v5726_v4 = vor.u32 %v7342_v43, %v7337_v42  ;;  %v5590_v6 = vor.u32 %v7362_v48, %v7357_v47 }
  0x1e   :  { %4011 = vmatpush.bf16.msra.mxu2 %v5366_v24  ;;  %v7380_v53 = vld [vmem:[%s11104_s1 + $0x3d0] sm:$0xf]  ;;  %v7392_v58 = vld [vmem:[%s11104_s1 + $0x3d4] sm:$0xf0]  ;;  %v7402_v60 = vld [vmem:[%s11104_s1 + $0x244] sm:$0xf0]  ;;  %v5654_v7 = vor.u32 %v7375_v52, %v7370_v51 }
  0x1f   :  { %4025 = vmatpush.bf16.msra.mxu3 %v5430_v33  ;;  %v7415_v1 = vld [vmem:[%s11104_s1 + $0x2c0] sm:$0xf]  ;;  %v7420_v2 = vld [vmem:[%s11104_s1 + $0x2c4] sm:$0xf0]  ;;  %v5718_v11 = vor.u32 %v7392_v58, %v7380_v53  ;;  %v5518_v12 = vor.u32 %v7402_v60, %v7397_v59  ;;  %v7030_v38 = vmov 8.0  }
  0x20   :  { %v7425_v3 = vld [vmem:[%s11104_s1 + $0x340] sm:$0xf]  ;;  %3984 = vmatpush.bf16.msra.mxu0 %v5230_v45  ;;  %v7438_v8 = vld [vmem:[%s11104_s1 + $0x344] sm:$0xf0]  ;;  %v5582_v13 = vor.u32 %v7420_v2, %v7415_v1  ;;  %7002 = vrcp.f32 %v7030_v38 }
  0x21   :  { %v7443_v9 = vld [vmem:[%s11104_s1 + $0x3c0] sm:$0xf]  ;;  %v7448_v10 = vld [vmem:[%s11104_s1 + $0x3c4] sm:$0xf0]  ;;  %3998 = vmatpush.bf16.msra.mxu1 %v5294_v49  ;;  %v5646_v23 = vor.u32 %v7438_v8, %v7425_v3 }
  0x22   :  { %4012 = vmatpush.bf16.msra.mxu2 %v5358_v50  ;;  %v7459_v14 = vld [vmem:[%s11103_s0] sm:$0xff]  ;;  %v5710_v30 = vor.u32 %v7448_v10, %v7443_v9 }
  0x23   :  { %v7464_v15 = vld [vmem:[%s11103_s0 + $0x40] sm:$0xff]  ;;  %4026 = vmatpush.bf16.msra.mxu3 %v5422_v54  ;;  %v117_v20 = vunpack.c.l.bf16 %v7459_v14 }
  0x24   :  { %v7469_v16 = vld [vmem:[%s11103_s0 + $0x80] sm:$0xff]  ;;  %4033 = vmatpush.bf16.msrb.mxu0 %v5542_v55  ;;  %v133_v21 = vunpack.c.l.bf16 %v7464_v15 }
  0x25   :  { %v7474_v17 = vld [vmem:[%s11103_s0 + $0xc0] sm:$0xff]  ;;  %v149_v22 = vunpack.c.l.bf16 %v7469_v16  ;;  %4047 = vmatpush.bf16.msrb.mxu1 %v5606_v56  ;;  %v309_v34 = vrot.slane %v117_v20, 4 }
  0x26   :  { %v7479_v18 = vld [vmem:[%s11103_s0 + $0x100] sm:$0xff]  ;;  %4061 = vmatpush.bf16.msrb.mxu2 %v5670_v57  ;;  %v165_v27 = vunpack.c.l.bf16 %v7474_v17  ;;  %v405_v37 = vrot.slane %v133_v21, 4 }
  0x27   :  { %v7484_v19 = vld [vmem:[%s11103_s0 + $0x140] sm:$0xff]  ;;  %v181_v28 = vunpack.c.l.bf16 %v7479_v18  ;;  %4075 = vmatpush.bf16.msrb.mxu3 %v5734_v61  ;;  %v310_v39 = vadd.f32 %v309_v34, %v117_v20  ;;  %v501_v40 = vrot.slane %v149_v22, 4 }
  0x28   :  { %v7494_v24 = vld [vmem:[%s11103_s0 + $0x180] sm:$0xff]  ;;  %v197_v29 = vunpack.c.l.bf16 %v7484_v19  ;;  %4034 = vmatpush.bf16.msrb.mxu0 %v5534_v62  ;;  %v597_v41 = vrot.slane %v165_v27, 4  ;;  %v406_v43 = vadd.f32 %v405_v37, %v133_v21  ;;  %v7525_v21 = vpop.eup %7002 }
  0x29   :  { %v7499_v25 = vld [vmem:[%s11103_s0 + $0x1c0] sm:$0xff]  ;;  %v213_v32 = vunpack.c.l.bf16 %v7494_v24  ;;  %v693_v42 = vrot.slane %v181_v28, 4  ;;  %4048 = vmatpush.bf16.msrb.mxu1 %v5598_v63  ;;  %v311_v49 = vrot.slane %v310_v39, 2  ;;  %v502_v50 = vadd.f32 %v501_v40, %v149_v22 }
  0x2a   :  { %v7504_v26 = vld [vmem:[%s11103_s0 + $0x200] sm:$0xff]  ;;  %v229_v33 = vunpack.c.l.bf16 %v7499_v25  ;;  %4062 = vmatpush.bf16.msrb.mxu2 %v5662_v0  ;;  %v789_v44 = vrot.slane %v197_v29, 4  ;;  %v598_v54 = vadd.f32 %v597_v41, %v165_v27  ;;  %v407_v56 = vrot.slane %v406_v43, 2 }
  0x2b   :  { %v7514_v31 = vld [vmem:[%s11103_s0 + $0x240] sm:$0xff]  ;;  %v245_v35 = vunpack.c.l.bf16 %v7504_v26  ;;  %v885_v45 = vrot.slane %v213_v32, 4  ;;  %4076 = vmatpush.bf16.msrb.mxu3 %v5726_v4  ;;  %v694_v55 = vadd.f32 %v693_v42, %v181_v28  ;;  %v312_v63 = vadd.f32 %v311_v49, %v310_v39 }
  0x2c   :  { %v261_v36 = vunpack.c.l.bf16 %v7514_v31  ;;  %v981_v46 = vrot.slane %v229_v33, 4  ;;  %v790_v57 = vadd.f32 %v789_v44, %v197_v29  ;;  %4035 = vmatpush.bf16.msrb.mxu0 %v5526_v5  ;;  %v7523_v62 = vld [vmem:[%s11103_s0 + $0x280] sm:$0xff]  ;;  %v503_v0 = vrot.slane %v502_v50, 2 }
  0x2d   :  { %v886_v61 = vadd.f32 %v885_v45, %v213_v32  ;;  %v599_v10 = vrot.slane %v598_v54, 2  ;;  %v695_v20 = vrot.slane %v694_v55, 2  ;;  %4049 = vmatpush.bf16.msrb.mxu1 %v5590_v6  ;;  %v7536_v4 = vld [vmem:[%s11103_s0 + $0x2c0] sm:$0xff]  ;;  %v408_v5 = vadd.f32 %v407_v56, %v406_v43 }
  0x2e   :  { %v982_v9 = vadd.f32 %v981_v46, %v229_v33  ;;  %4063 = vmatpush.bf16.msrb.mxu2 %v5654_v7  ;;  %v791_v22 = vrot.slane %v790_v57, 2  ;;  %v313_v29 = vrot.slane %v312_v63, 1  ;;  %v504_v47 = vadd.f32 %v503_v0, %v502_v50 }
  0x2f   :  { %v887_v27 = vrot.slane %v886_v61, 2  ;;  %4077 = vmatpush.bf16.msrb.mxu3 %v5718_v11  ;;  %v600_v48 = vadd.f32 %v599_v10, %v598_v54  ;;  %v696_v6 = vadd.f32 %v695_v20, %v694_v55  ;;  %v409_v32 = vrot.slane %v408_v5, 1 }
  0x30   :  { %v983_v28 = vrot.slane %v982_v9, 2  ;;  %v792_v51 = vadd.f32 %v791_v22, %v790_v57 }
  0x31   :  { %v888_v52 = vadd.f32 %v887_v27, %v886_v61 }
  0x32   :  { %v984_v7 = vadd.f32 %v983_v28, %v982_v9 }
  0x33   :  { %10 = vsyncpa [#allocation3], 0  ;;  %4036 = vmatpush.bf16.msrb.mxu0 %v5518_v12  ;;  %v277_v33 = vunpack.c.l.bf16 %v7523_v62  ;;  %v293_v34 = vunpack.c.l.bf16 %v7536_v4  ;;  %4050 = vmatpush.bf16.msrb.mxu1 %v5582_v13  ;;  %v505_v53 = vrot.slane %v504_v47, 1  ;;  %v601_v58 = vrot.slane %v600_v48, 1  ;;  %v7564_v46 = vld [vmem:[%s11103_s0 + $0x8] sm:$0xff]  ;;  %s7031_s15 = smov [#allocation2]  }
  0x34   :  { %4064 = vmatpush.bf16.msrb.mxu2 %v5646_v23  ;;  %v697_v11 = vrot.slane %v696_v6, 1  ;;  %4078 = vmatpush.bf16.msrb.mxu3 %v5710_v30  ;;  %v314_v37 = vadd.f32 %v313_v29, %v312_v63  ;;  %v410_v38 = vadd.f32 %v409_v32, %v408_v5  ;;  %v1077_v59 = vrot.slane %v245_v35, 4  ;;  %v7575_v9 = vld [vmem:[%s11103_s0 + $0x88] sm:$0xff]  ;;  %s5213_s16 = sshll.u32 %s7031_s15, 4  ;;  %s5215_s19 = sshll.u32 %s11108_s5, 4  ;;  %s5214_s16 = int_to_ptr.vmem [resolvable:$true] %s5213_s16  ;;  %s5216_s19 = int_to_ptr.hbm [resolvable:$true] %s5215_s19 }
  0x35   :  { %v793_v60 = vrot.slane %v792_v51, 1  ;;  %v889_v12 = vrot.slane %v888_v52, 1  ;;  %v985_v39 = vrot.slane %v984_v7, 1  ;;  %v1173_v1 = vrot.slane %v261_v36, 4  ;;  %v7580_v63 = vld [vmem:[%s11103_s0 + $0xc8] sm:$0xff]  ;;  %s7032_s20 = smov 32  }
  0x36   :  { %v1078_v2 = vadd.f32 %v1077_v59, %v245_v35  ;;  %v1269_v3 = vrot.slane %v277_v33, 4  ;;  %v1365_v8 = vrot.slane %v293_v34, 4  ;;  %v1462_v13 = vmul.f32 8.0, %v7525_v21  ;;  %v7569_v35 = vld [vmem:[%s11103_s0 + $0x48] sm:$0xff] }
  0x37   :  { %v506_v23 = vadd.f32 %v505_v53, %v504_v47  ;;  %v602_v30 = vadd.f32 %v601_v58, %v600_v48  ;;  %v698_v40 = vadd.f32 %v697_v11, %v696_v6  ;;  %v1174_v41 = vadd.f32 %v1173_v1, %v261_v36  ;;  %v7585_v0 = vld [vmem:[%s11103_s0 + $0x108] sm:$0xff] }
  0x38   :  { %v1079_v42 = vrot.slane %v1078_v2, 2  ;;  %v1270_v43 = vadd.f32 %v1269_v3, %v277_v33  ;;  %v1366_v44 = vadd.f32 %v1365_v8, %v293_v34  ;;  %v1463_v45 = vsub.f32 1.0, %v1462_v13 }
  0x39   :  { %v794_v49 = vadd.f32 %v793_v60, %v792_v51  ;;  %v890_v50 = vadd.f32 %v889_v12, %v888_v52  ;;  %v986_v54 = vadd.f32 %v985_v39, %v984_v7  ;;  %v1175_v55 = vrot.slane %v1174_v41, 2 }
  0x3a   :  { %v1080_v56 = vadd.f32 %v1079_v42, %v1078_v2  ;;  %v1271_v36 = vrot.slane %v1270_v43, 2  ;;  %v1367_v57 = vrot.slane %v1366_v44, 2  ;;  %v1464_v61 = vmul.f32 %v7525_v21, %v1463_v45 }
  0x3b   :  { %v1176_v10 = vadd.f32 %v1175_v55, %v1174_v41  ;;  %vm1466_vm0 = vweird.f32 %v7525_v21  ;;  %v119_v20 = vunpack.c.l.bf16 %v7564_v46  ;;  %v135_v5 = vunpack.c.l.bf16 %v7569_v35 }
  0x3c   :  { %v1081_v22 = vrot.slane %v1080_v56, 1  ;;  %v1272_v27 = vadd.f32 %v1271_v36, %v1270_v43  ;;  %v1368_v28 = vadd.f32 %v1367_v57, %v1366_v44  ;;  %v1465_v29 = vadd.f32 %v7525_v21, %v1464_v61 }
  0x3d   :  { %v1177_v47 = vrot.slane %v1176_v10, 1  ;;  %vm2498_vm1 = vcmask 1041409   ;;  %v151_v48 = vunpack.c.l.bf16 %v7575_v9  ;;  %v167_v6 = vunpack.c.l.bf16 %v7580_v63 }
  0x3e   :  { %v183_v32 = vunpack.c.l.bf16 %v7585_v0  ;;  %v1082_v51 = vadd.f32 %v1081_v22, %v1080_v56  ;;  %v1273_v52 = vrot.slane %v1272_v27, 1  ;;  %v1369_v7 = vrot.slane %v1368_v28, 1  ;;  %v7617_v22 = vld [vmem:[%s11103_s0 + $0x188] sm:$0xff] }
  0x3f   :  { %v7595_v33 = vsel %vm1466_vm0, %v7525_v21, %v1465_v29  ;;  %vm2500_vm2 = vcmask 1042434   ;;  %v1178_v34 = vadd.f32 %v1177_v47, %v1176_v10  ;;  %vm2502_vm3 = vcmask 1043459   ;;  %v7612_v10 = vld [vmem:[%s11103_s0 + $0x148] sm:$0xff] }
  0x40   :  { %v1468_v53 = vmul.f32 %v7595_v33, %v314_v37  ;;  %v1484_v58 = vmul.f32 %v7595_v33, %v410_v38  ;;  %v1500_v11 = vmul.f32 %v7595_v33, %v506_v23  ;;  %v1274_v59 = vadd.f32 %v1273_v52, %v1272_v27  ;;  %v7622_v27 = vld [vmem:[%s11103_s0 + $0x1c8] sm:$0xff] }
  0x41   :  { %v1370_v60 = vadd.f32 %v1369_v7, %v1368_v28  ;;  %v1516_v12 = vmul.f32 %v7595_v33, %v602_v30  ;;  %v1532_v39 = vmul.f32 %v7595_v33, %v698_v40  ;;  %vm2504_vm4 = vcmask 1044484   ;;  %v7627_v52 = vld [vmem:[%s11103_s0 + $0x208] sm:$0xff] }
  0x42   :  { %v1548_v1 = vmul.f32 %v7595_v33, %v794_v49  ;;  %v1564_v21 = vmul.f32 %v7595_v33, %v890_v50  ;;  %v1580_v2 = vmul.f32 %v7595_v33, %v986_v54  ;;  %v1596_v37 = vmul.f32 %v7595_v33, %v1082_v51  ;;  %v7632_v7 = vld [vmem:[%s11103_s0 + $0x248] sm:$0xff] }
  0x43   :  { %vm2506_vm5 = vcmask 1045509   ;;  %v1612_v38 = vmul.f32 %v7595_v33, %v1178_v34  ;;  %v1628_v3 = vmul.f32 %v7595_v33, %v1274_v59  ;;  %v1644_v8 = vmul.f32 %v7595_v33, %v1370_v60  ;;  %v7638_v59 = vld [vmem:[%s11103_s0 + $0x288] sm:$0xff] }
  0x44   :  { %v1660_v13 = vpack.c.bf16 %v1468_v53, %v1468_v53  ;;  %vm2508_vm6 = vcmask 1046534   ;;  %v1676_v23 = vpack.c.bf16 %v1484_v58, %v1484_v58  ;;  %v1692_v30 = vpack.c.bf16 %v1500_v11, %v1500_v11  ;;  %v7643_v60 = vld [vmem:[%s11103_s0 + $0x2c8] sm:$0xff] }
  0x45   :  { %v1708_v40 = vpack.c.bf16 %v1516_v12, %v1516_v12  ;;  %v1724_v41 = vpack.c.bf16 %v1532_v39, %v1532_v39  ;;  %vm2510_vm7 = vcmask 1047559   ;;  %v1740_v42 = vpack.c.bf16 %v1548_v1, %v1548_v1 }
  0x46   :  { %v1756_v43 = vpack.c.bf16 %v1564_v21, %v1564_v21  ;;  %v1772_v44 = vpack.c.bf16 %v1580_v2, %v1580_v2  ;;  %v1788_v45 = vpack.c.bf16 %v1596_v37, %v1596_v37  ;;  %v1804_v49 = vpack.c.bf16 %v1612_v38, %v1612_v38 }
  0x47   :  { %v1820_v50 = vpack.c.bf16 %v1628_v3, %v1628_v3  ;;  %v1836_v54 = vpack.c.bf16 %v1644_v8, %v1644_v8  ;;  %v2306_v55 = vunpack.c.l.b16 %v1660_v13  ;;  %v2322_v56 = vunpack.c.l.b16 %v1676_v23 }
  0x48   :  { %v2338_v36 = vunpack.c.l.b16 %v1692_v30  ;;  %v2354_v57 = vunpack.c.l.b16 %v1708_v40  ;;  %v2370_v61 = vunpack.c.l.b16 %v1724_v41  ;;  %v2386_v28 = vunpack.c.l.b16 %v1740_v42 }
  0x49   :  { %v2402_v29 = vunpack.c.l.b16 %v1756_v43  ;;  %v2418_v47 = vunpack.c.l.b16 %v1772_v44  ;;  %v2434_v51 = vunpack.c.l.b16 %v1788_v45  ;;  %v2450_v34 = vunpack.c.l.b16 %v1804_v49 }
  0x4a   :  { %v2466_v53 = vunpack.c.l.b16 %v1820_v50  ;;  %v2482_v58 = vunpack.c.l.b16 %v1836_v54  ;;  %v2499_v11 = vsel %vm2498_vm1, %v2322_v56, %v2306_v55  ;;  %v199_v39 = vunpack.c.l.bf16 %v7612_v10 }
  0x4b   :  { %v2501_v12 = vsel %vm2500_vm2, %v2338_v36, %v2499_v11  ;;  %v215_v1 = vunpack.c.l.bf16 %v7617_v22  ;;  %v231_v21 = vunpack.c.l.bf16 %v7622_v27  ;;  %v2617_v37 = vsel %vm2498_vm1, %v2450_v34, %v2434_v51 }
  0x4c   :  { %v2503_v2 = vsel %vm2502_vm3, %v2354_v57, %v2501_v12  ;;  %v247_v38 = vunpack.c.l.bf16 %v7627_v52  ;;  %v263_v3 = vunpack.c.l.bf16 %v7632_v7  ;;  %v2618_v13 = vsel %vm2500_vm2, %v2466_v53, %v2617_v37 }
  0x4d   :  { %v2505_v8 = vsel %vm2504_vm4, %v2370_v61, %v2503_v2  ;;  %v279_v23 = vunpack.c.l.bf16 %v7638_v59  ;;  %v2619_v41 = vsel %vm2502_vm3, %v2482_v58, %v2618_v13  ;;  %v321_v42 = vrot.slane %v119_v20, 4 }
  0x4e   :  { %v2507_v40 = vsel %vm2506_vm5, %v2386_v28, %v2505_v8  ;;  %v417_v43 = vrot.slane %v135_v5, 4  ;;  %v513_v45 = vrot.slane %v151_v48, 4  ;;  %v609_v49 = vrot.slane %v167_v6, 4 }
  0x4f   :  { %v2509_v44 = vsel %vm2508_vm6, %v2402_v29, %v2507_v40  ;;  %v705_v50 = vrot.slane %v183_v32, 4  ;;  %v322_v55 = vadd.f32 %v321_v42, %v119_v20  ;;  %v801_v36 = vrot.slane %v199_v39, 4 }
  0x50   :  { %v2511_v54 = vsel %vm2510_vm7, %v2418_v47, %v2509_v44  ;;  %v418_v56 = vadd.f32 %v417_v43, %v135_v5  ;;  %v514_v61 = vadd.f32 %v513_v45, %v151_v48  ;;  %v610_v28 = vadd.f32 %v609_v49, %v167_v6 }
  0x51   :  { %v7675_v57 = vpack.c.b16 %v2619_v41, %v2511_v54  ;;  %v706_v29 = vadd.f32 %v705_v50, %v183_v32  ;;  %v323_v51 = vrot.slane %v322_v55, 2  ;;  %v802_v34 = vadd.f32 %v801_v36, %v199_v39 }
  0x52   :  { %v419_v47 = vrot.slane %v418_v56, 2  ;;  %v897_v53 = vrot.slane %v215_v1, 4  ;;  %v515_v20 = vrot.slane %v514_v61, 2  ;;  %v611_v5 = vrot.slane %v610_v28, 2 }
  0x53   :  { %11139 = vst [vmem:[#allocation5_spill] sm:$0xff] %v7675_v57  ;;  %3985 = vmatmul.bf16.vlgmr.msra.gmra.mxu0 %v7675_v57  ;;  %v707_v58 = vrot.slane %v706_v29, 2  ;;  %v993_v11 = vrot.slane %v231_v21, 4  ;;  %v324_v12 = vadd.f32 %v323_v51, %v322_v55  ;;  %v803_v37 = vrot.slane %v802_v34, 2 }
  0x54   :  { %v420_v2 = vadd.f32 %v419_v47, %v418_v56  ;;  %v898_v48 = vadd.f32 %v897_v53, %v215_v1  ;;  %v516_v8 = vadd.f32 %v515_v20, %v514_v61  ;;  %v612_v13 = vadd.f32 %v611_v5, %v610_v28 }
  0x55   :  { %v708_v6 = vadd.f32 %v707_v58, %v706_v29  ;;  %v994_v40 = vadd.f32 %v993_v11, %v231_v21  ;;  %v325_v41 = vrot.slane %v324_v12, 1  ;;  %v804_v42 = vadd.f32 %v803_v37, %v802_v34 }
  0x56   :  { %v421_v32 = vrot.slane %v420_v2, 1  ;;  %v899_v43 = vrot.slane %v898_v48, 2  ;;  %v517_v39 = vrot.slane %v516_v8, 1  ;;  %v613_v44 = vrot.slane %v612_v13, 1 }
  0x57   :  { %v709_v45 = vrot.slane %v708_v6, 1  ;;  %v995_v49 = vrot.slane %v994_v40, 2  ;;  %v326_v50 = vadd.f32 %v325_v41, %v324_v12  ;;  %v805_v36 = vrot.slane %v804_v42, 1 }
  0x58   :  { %v422_v54 = vadd.f32 %v421_v32, %v420_v2  ;;  %v900_v30 = vadd.f32 %v899_v43, %v898_v48  ;;  %v518_v55 = vadd.f32 %v517_v39, %v516_v8  ;;  %v614_v56 = vadd.f32 %v613_v44, %v612_v13 }
  0x59   :  { %v710_v51 = vadd.f32 %v709_v45, %v708_v6  ;;  %v996_v1 = vadd.f32 %v995_v49, %v994_v40  ;;  %v806_v61 = vadd.f32 %v805_v36, %v804_v42  ;;  %v1089_v21 = vrot.slane %v247_v38, 4 }
  0x5a   :  { %v901_v28 = vrot.slane %v900_v30, 1  ;;  %v1185_v29 = vrot.slane %v263_v3, 4  ;;  %v1281_v34 = vrot.slane %v279_v23, 4  ;;  %v11140_v53 = vunpack.c.l.bf16 %v7643_v60 }
  0x5b   :  { %v997_v47 = vrot.slane %v996_v1, 1  ;;  %v1470_v5 = vmul.f32 %v7595_v33, %v326_v50  ;;  %v1090_v11 = vadd.f32 %v1089_v21, %v247_v38  ;;  %v1486_v2 = vmul.f32 %v7595_v33, %v422_v54 }
  0x5c   :  { %v1377_v20 = vrot.slane %v11140_v53, 4  ;;  %v902_v58 = vadd.f32 %v901_v28, %v900_v30  ;;  %v1186_v12 = vadd.f32 %v1185_v29, %v263_v3  ;;  %v1282_v48 = vadd.f32 %v1281_v34, %v279_v23 }
  0x5d   :  { %v998_v37 = vadd.f32 %v997_v47, %v996_v1  ;;  %v11141_v8 = vmov %v11140_v53  ;;  %v1502_v6 = vmul.f32 %v7595_v33, %v518_v55  ;;  %v1091_v40 = vrot.slane %v1090_v11, 2 }
  0x5e   :  { %v1378_v13 = vadd.f32 %v1377_v20, %v11141_v8  ;;  %v1187_v41 = vrot.slane %v1186_v12, 2  ;;  %v1518_v30 = vmul.f32 %v7595_v33, %v614_v56  ;;  %v1534_v38 = vmul.f32 %v7595_v33, %v710_v51 }
  0x5f   :  { %v1283_v32 = vrot.slane %v1282_v48, 2  ;;  %v1550_v3 = vmul.f32 %v7595_v33, %v806_v61  ;;  %v1566_v43 = vmul.f32 %v7595_v33, %v902_v58  ;;  %v1092_v39 = vadd.f32 %v1091_v40, %v1090_v11 }
  0x60   :  { %v1379_v42 = vrot.slane %v1378_v13, 2  ;;  %v1188_v44 = vadd.f32 %v1187_v41, %v1186_v12  ;;  %v1582_v23 = vmul.f32 %v7595_v33, %v998_v37  ;;  %v1662_v45 = vpack.c.bf16 %v1470_v5, %v1470_v5 }
  0x61   :  { %v1284_v49 = vadd.f32 %v1283_v32, %v1282_v48  ;;  %v1678_v54 = vpack.c.bf16 %v1486_v2, %v1486_v2  ;;  %v1694_v36 = vpack.c.bf16 %v1502_v6, %v1502_v6  ;;  %v1093_v55 = vrot.slane %v1092_v39, 1  ;;  %v6711_v6 = vld [vmem:[%s11104_s1 + $0x234] sm:$0xf0]  ;;  %v5573_v32 = vld [vmem:[%s11104_s1 + $0x2b0] sm:$0xf] }
  0x62   :  { %v1380_v50 = vadd.f32 %v1379_v42, %v1378_v13  ;;  %v1189_v1 = vrot.slane %v1188_v44, 1  ;;  %v1710_v56 = vpack.c.bf16 %v1518_v30, %v1518_v30  ;;  %v1726_v28 = vpack.c.bf16 %v1534_v38, %v1534_v38  ;;  %v5509_v13 = vld [vmem:[%s11104_s1 + $0x230] sm:$0xf]  ;;  %v6727_v42 = vld [vmem:[%s11104_s1 + $0x2b4] sm:$0xf0] }
  0x63   :  { %v1285_v51 = vrot.slane %v1284_v49, 1  ;;  %v1742_v29 = vpack.c.bf16 %v1550_v3, %v1550_v3  ;;  %v1758_v47 = vpack.c.bf16 %v1566_v43, %v1566_v43  ;;  %v1094_v61 = vadd.f32 %v1093_v55, %v1092_v39  ;;  %v5701_v55 = vld [vmem:[%s11104_s1 + $0x3b0] sm:$0xf] }
  0x64   :  { %v1381_v21 = vrot.slane %v1380_v50, 1  ;;  %v1190_v34 = vadd.f32 %v1189_v1, %v1188_v44  ;;  %v1774_v53 = vpack.c.bf16 %v1582_v23, %v1582_v23  ;;  %v2308_v20 = vunpack.c.l.b16 %v1662_v45  ;;  %v5637_v23 = vld [vmem:[%s11104_s1 + $0x330] sm:$0xf]  ;;  %v6743_v45 = vld [vmem:[%s11104_s1 + $0x334] sm:$0xf0] }
  0x65   :  { %v1286_v58 = vadd.f32 %v1285_v51, %v1284_v49  ;;  %v2324_v12 = vunpack.c.l.b16 %v1678_v54  ;;  %v2340_v5 = vunpack.c.l.b16 %v1694_v36  ;;  %v1598_v37 = vmul.f32 %v7595_v33, %v1094_v61  ;;  %v6759_v1 = vld [vmem:[%s11104_s1 + $0x3b4] sm:$0xf0] }
  0x66   :  { %v1382_v11 = vadd.f32 %v1381_v21, %v1380_v50  ;;  %v1614_v2 = vmul.f32 %v7595_v33, %v1190_v34  ;;  %v2356_v48 = vunpack.c.l.b16 %v1710_v56  ;;  %v2372_v8 = vunpack.c.l.b16 %v1726_v28 }
  0x67   :  { %v1630_v40 = vmul.f32 %v7595_v33, %v1286_v58  ;;  %v2388_v30 = vunpack.c.l.b16 %v1742_v29  ;;  %v2404_v38 = vunpack.c.l.b16 %v1758_v47  ;;  %v1790_v3 = vpack.c.bf16 %v1598_v37, %v1598_v37 }
  0x68   :  { %v1646_v41 = vmul.f32 %v7595_v33, %v1382_v11  ;;  %v1806_v43 = vpack.c.bf16 %v1614_v2, %v1614_v2  ;;  %v2420_v39 = vunpack.c.l.b16 %v1774_v53  ;;  %v2519_v44 = vsel %vm2498_vm1, %v2324_v12, %v2308_v20 }
  0x69   :  { %v1822_v49 = vpack.c.bf16 %v1630_v40, %v1630_v40  ;;  %v2520_v54 = vsel %vm2500_vm2, %v2340_v5, %v2519_v44  ;;  %v5510_v36 = vor.u32 %v6711_v6, %v5509_v13  ;;  %v2436_v56 = vunpack.c.l.b16 %v1790_v3 }
  0x6a   :  { %v1838_v50 = vpack.c.bf16 %v1646_v41, %v1646_v41  ;;  %v2452_v28 = vunpack.c.l.b16 %v1806_v43  ;;  %v2521_v51 = vsel %vm2502_vm3, %v2356_v48, %v2520_v54  ;;  %v5574_v21 = vor.u32 %v6727_v42, %v5573_v32 }
  0x6b   :  { %v2468_v29 = vunpack.c.l.b16 %v1822_v49  ;;  %v2522_v61 = vsel %vm2504_vm4, %v2372_v8, %v2521_v51  ;;  %4037 = vmatpush.bf16.msrb.mxu0 %v5510_v36  ;;  %v5638_v34 = vor.u32 %v6743_v45, %v5637_v23  ;;  %v5702_v58 = vor.u32 %v6759_v1, %v5701_v55 }
  0x6c   :  { %v2484_v47 = vunpack.c.l.b16 %v1838_v50  ;;  %v2523_v53 = vsel %vm2506_vm5, %v2388_v30, %v2522_v61  ;;  %v2623_v20 = vsel %vm2498_vm1, %v2452_v28, %v2436_v56  ;;  %4051 = vmatpush.bf16.msrb.mxu1 %v5574_v21  ;;  %v118_v11 = vunpack.c.h.bf16 %v7459_v14 }
  0x6d   :  { %v2524_v12 = vsel %vm2508_vm6, %v2404_v38, %v2523_v53  ;;  %v2624_v5 = vsel %vm2500_vm2, %v2468_v29, %v2623_v20  ;;  %4065 = vmatpush.bf16.msrb.mxu2 %v5638_v34  ;;  %v134_v37 = vunpack.c.h.bf16 %v7464_v15  ;;  %v150_v2 = vunpack.c.h.bf16 %v7469_v16  ;;  %4079 = vmatpush.bf16.msrb.mxu3 %v5702_v58 }
  0x6e   :  { %v2525_v48 = vsel %vm2510_vm7, %v2420_v39, %v2524_v12  ;;  %v2625_v8 = vsel %vm2502_vm3, %v2484_v47, %v2624_v5  ;;  %v166_v13 = vunpack.c.h.bf16 %v7474_v17  ;;  %v182_v6 = vunpack.c.h.bf16 %v7479_v18 }
  0x6f   :  { %v7751_v40 = vpack.c.b16 %v2625_v8, %v2525_v48  ;;  %v198_v14 = vunpack.c.h.bf16 %v7484_v19  ;;  %v214_v41 = vunpack.c.h.bf16 %v7494_v24  ;;  %v230_v30 = vunpack.c.h.bf16 %v7499_v25 }
  0x70   :  { %v246_v15 = vunpack.c.h.bf16 %v7504_v26  ;;  %v262_v16 = vunpack.c.h.bf16 %v7514_v31  ;;  %v278_v38 = vunpack.c.h.bf16 %v7523_v62  ;;  %v294_v32 = vunpack.c.h.bf16 %v7536_v4 }
  0x71   :  { %11142 = vst [vmem:[#allocation6_spill] sm:$0xff] %v7751_v40  ;;  %4013 = vmatmul.bf16.vlgmr.msra.gmra.mxu2 %v7751_v40  ;;  %v315_v17 = vrot.slane %v118_v11, 4  ;;  %v411_v18 = vrot.slane %v134_v37, 4  ;;  %v507_v42 = vrot.slane %v150_v2, 4  ;;  %v603_v3 = vrot.slane %v166_v13, 4 }
  0x72   :  { %v699_v43 = vrot.slane %v182_v6, 4  ;;  %v795_v19 = vrot.slane %v198_v14, 4  ;;  %v891_v39 = vrot.slane %v214_v41, 4  ;;  %v987_v24 = vrot.slane %v230_v30, 4 }
  0x73   :  { %v316_v44 = vadd.f32 %v315_v17, %v118_v11  ;;  %v412_v25 = vadd.f32 %v411_v18, %v134_v37  ;;  %v508_v23 = vadd.f32 %v507_v42, %v150_v2  ;;  %v604_v26 = vadd.f32 %v603_v3, %v166_v13 }
  0x74   :  { %v700_v45 = vadd.f32 %v699_v43, %v182_v6  ;;  %v796_v31 = vadd.f32 %v795_v19, %v198_v14  ;;  %v892_v49 = vadd.f32 %v891_v39, %v214_v41  ;;  %v988_v62 = vadd.f32 %v987_v24, %v230_v30 }
  0x75   :  { %v317_v50 = vrot.slane %v316_v44, 2  ;;  %v413_v4 = vrot.slane %v412_v25, 2  ;;  %v509_v54 = vrot.slane %v508_v23, 2  ;;  %v605_v36 = vrot.slane %v604_v26, 2 }
  0x76   :  { %v701_v55 = vrot.slane %v700_v45, 2  ;;  %v797_v1 = vrot.slane %v796_v31, 2  ;;  %v893_v56 = vrot.slane %v892_v49, 2  ;;  %v989_v28 = vrot.slane %v988_v62, 2 }
  0x77   :  { %v318_v51 = vadd.f32 %v317_v50, %v316_v44  ;;  %v414_v21 = vadd.f32 %v413_v4, %v412_v25  ;;  %v510_v29 = vadd.f32 %v509_v54, %v508_v23  ;;  %v606_v47 = vadd.f32 %v605_v36, %v604_v26 }
  0x78   :  { %v702_v61 = vadd.f32 %v701_v55, %v700_v45  ;;  %v798_v34 = vadd.f32 %v797_v1, %v796_v31  ;;  %v894_v53 = vadd.f32 %v893_v56, %v892_v49  ;;  %v990_v20 = vadd.f32 %v989_v28, %v988_v62 }
  0x79   :  { %v319_v58 = vrot.slane %v318_v51, 1  ;;  %v415_v11 = vrot.slane %v414_v21, 1  ;;  %v511_v12 = vrot.slane %v510_v29, 1  ;;  %v607_v5 = vrot.slane %v606_v47, 1 }
  0x7a   :  { %v703_v37 = vrot.slane %v702_v61, 1  ;;  %v799_v2 = vrot.slane %v798_v34, 1  ;;  %v895_v48 = vrot.slane %v894_v53, 1  ;;  %v991_v8 = vrot.slane %v990_v20, 1 }
  0x7b   :  { %v320_v13 = vadd.f32 %v319_v58, %v318_v51  ;;  %v416_v6 = vadd.f32 %v415_v11, %v414_v21  ;;  %v512_v14 = vadd.f32 %v511_v12, %v510_v29  ;;  %v608_v41 = vadd.f32 %v607_v5, %v606_v47 }
  0x7c   :  { %v704_v30 = vadd.f32 %v703_v37, %v702_v61  ;;  %v800_v17 = vadd.f32 %v799_v2, %v798_v34  ;;  %v896_v18 = vadd.f32 %v895_v48, %v894_v53  ;;  %v992_v42 = vadd.f32 %v991_v8, %v990_v20 }
  0x7d   :  { %v1083_v3 = vrot.slane %v246_v15, 4  ;;  %v1179_v43 = vrot.slane %v262_v16, 4  ;;  %v1275_v19 = vrot.slane %v278_v38, 4  ;;  %v1371_v39 = vrot.slane %v294_v32, 4 }
  0x7e   :  { %v1469_v24 = vmul.f32 %v7595_v33, %v320_v13  ;;  %v1485_v44 = vmul.f32 %v7595_v33, %v416_v6  ;;  %v1501_v25 = vmul.f32 %v7595_v33, %v512_v14  ;;  %v1517_v23 = vmul.f32 %v7595_v33, %v608_v41 }
  0x7f   :  { %v1084_v26 = vadd.f32 %v1083_v3, %v246_v15  ;;  %v1180_v45 = vadd.f32 %v1179_v43, %v262_v16  ;;  %v1276_v31 = vadd.f32 %v1275_v19, %v278_v38  ;;  %v1372_v49 = vadd.f32 %v1371_v39, %v294_v32 }
  0x80   :  { %v1533_v62 = vmul.f32 %v7595_v33, %v704_v30  ;;  %v1549_v50 = vmul.f32 %v7595_v33, %v800_v17  ;;  %v1565_v4 = vmul.f32 %v7595_v33, %v896_v18  ;;  %v1581_v54 = vmul.f32 %v7595_v33, %v992_v42 }
  0x81   :  { %v1085_v36 = vrot.slane %v1084_v26, 2  ;;  %v1181_v55 = vrot.slane %v1180_v45, 2  ;;  %v1277_v1 = vrot.slane %v1276_v31, 2  ;;  %v1373_v56 = vrot.slane %v1372_v49, 2 }
  0x82   :  { %v1661_v28 = vpack.c.bf16 %v1469_v24, %v1469_v24  ;;  %v1677_v51 = vpack.c.bf16 %v1485_v44, %v1485_v44  ;;  %v1693_v21 = vpack.c.bf16 %v1501_v25, %v1501_v25  ;;  %v1709_v29 = vpack.c.bf16 %v1517_v23, %v1517_v23 }
  0x83   :  { %v1086_v15 = vadd.f32 %v1085_v36, %v1084_v26  ;;  %v1182_v16 = vadd.f32 %v1181_v55, %v1180_v45  ;;  %v1278_v38 = vadd.f32 %v1277_v1, %v1276_v31  ;;  %v1374_v32 = vadd.f32 %v1373_v56, %v1372_v49 }
  0x84   :  { %v1725_v47 = vpack.c.bf16 %v1533_v62, %v1533_v62  ;;  %v1741_v61 = vpack.c.bf16 %v1549_v50, %v1549_v50  ;;  %v1757_v34 = vpack.c.bf16 %v1565_v4, %v1565_v4  ;;  %v1773_v53 = vpack.c.bf16 %v1581_v54, %v1581_v54 }
  0x85   :  { %v1087_v20 = vrot.slane %v1086_v15, 1  ;;  %v1183_v58 = vrot.slane %v1182_v16, 1  ;;  %v1279_v11 = vrot.slane %v1278_v38, 1  ;;  %v1375_v12 = vrot.slane %v1374_v32, 1 }
  0x86   :  { %v2307_v5 = vunpack.c.l.b16 %v1661_v28  ;;  %v2323_v37 = vunpack.c.l.b16 %v1677_v51  ;;  %v2339_v2 = vunpack.c.l.b16 %v1693_v21  ;;  %v2355_v48 = vunpack.c.l.b16 %v1709_v29 }
  0x87   :  { %v1088_v8 = vadd.f32 %v1087_v20, %v1086_v15  ;;  %v1184_v13 = vadd.f32 %v1183_v58, %v1182_v16  ;;  %v1280_v6 = vadd.f32 %v1279_v11, %v1278_v38  ;;  %v1376_v14 = vadd.f32 %v1375_v12, %v1374_v32 }
  0x88   :  { %v2371_v41 = vunpack.c.l.b16 %v1725_v47  ;;  %v2387_v30 = vunpack.c.l.b16 %v1741_v61  ;;  %v2403_v17 = vunpack.c.l.b16 %v1757_v34  ;;  %v2419_v18 = vunpack.c.l.b16 %v1773_v53 }
  0x89   :  { %v1597_v42 = vmul.f32 %v7595_v33, %v1088_v8  ;;  %v1613_v3 = vmul.f32 %v7595_v33, %v1184_v13  ;;  %v1629_v43 = vmul.f32 %v7595_v33, %v1280_v6  ;;  %v1645_v19 = vmul.f32 %v7595_v33, %v1376_v14 }
  0x8a   :  { %v2512_v39 = vsel %vm2498_vm1, %v2323_v37, %v2307_v5  ;;  %v120_v24 = vunpack.c.h.bf16 %v7564_v46  ;;  %v136_v44 = vunpack.c.h.bf16 %v7569_v35  ;;  %v152_v25 = vunpack.c.h.bf16 %v7575_v9 }
  0x8b   :  { %v1789_v23 = vpack.c.bf16 %v1597_v42, %v1597_v42  ;;  %v1805_v26 = vpack.c.bf16 %v1613_v3, %v1613_v3  ;;  %v1821_v45 = vpack.c.bf16 %v1629_v43, %v1629_v43  ;;  %v1837_v31 = vpack.c.bf16 %v1645_v19, %v1645_v19 }
  0x8c   :  { %v2513_v49 = vsel %vm2500_vm2, %v2339_v2, %v2512_v39  ;;  %v168_v62 = vunpack.c.h.bf16 %v7580_v63  ;;  %v184_v50 = vunpack.c.h.bf16 %v7585_v0  ;;  %v200_v4 = vunpack.c.h.bf16 %v7612_v10 }
  0x8d   :  { %v2435_v54 = vunpack.c.l.b16 %v1789_v23  ;;  %v2451_v36 = vunpack.c.l.b16 %v1805_v26  ;;  %v2467_v55 = vunpack.c.l.b16 %v1821_v45  ;;  %v2483_v46 = vunpack.c.l.b16 %v1837_v31 }
  0x8e   :  { %v2514_v35 = vsel %vm2502_vm3, %v2355_v48, %v2513_v49  ;;  %v216_v9 = vunpack.c.h.bf16 %v7617_v22  ;;  %v232_v1 = vunpack.c.h.bf16 %v7622_v27  ;;  %v248_v56 = vunpack.c.h.bf16 %v7627_v52 }
  0x8f   :  { %v2515_v28 = vsel %vm2504_vm4, %v2371_v41, %v2514_v35  ;;  %v2620_v63 = vsel %vm2498_vm1, %v2451_v36, %v2435_v54  ;;  %v264_v0 = vunpack.c.h.bf16 %v7632_v7  ;;  %v280_v10 = vunpack.c.h.bf16 %v7638_v59 }
  0x90   :  { %v2516_v51 = vsel %vm2506_vm5, %v2387_v30, %v2515_v28  ;;  %v2621_v21 = vsel %vm2500_vm2, %v2467_v55, %v2620_v63  ;;  %v296_v29 = vunpack.c.h.bf16 %v7643_v60  ;;  %v327_v15 = vrot.slane %v120_v24, 4 }
  0x91   :  { %v2517_v22 = vsel %vm2508_vm6, %v2403_v17, %v2516_v51  ;;  %v2622_v27 = vsel %vm2502_vm3, %v2483_v46, %v2621_v21  ;;  %v423_v16 = vrot.slane %v136_v44, 4  ;;  %v519_v38 = vrot.slane %v152_v25, 4 }
  0x92   :  { %v2518_v32 = vsel %vm2510_vm7, %v2419_v18, %v2517_v22  ;;  %v328_v47 = vadd.f32 %v327_v15, %v120_v24  ;;  %v615_v61 = vrot.slane %v168_v62, 4  ;;  %v711_v34 = vrot.slane %v184_v50, 4 }
  0x93   :  { %v7795_v53 = vpack.c.b16 %v2622_v27, %v2518_v32  ;;  %v424_v20 = vadd.f32 %v423_v16, %v136_v44  ;;  %v520_v58 = vadd.f32 %v519_v38, %v152_v25  ;;  %v807_v11 = vrot.slane %v200_v4, 4 }
  0x94   :  { %v329_v12 = vrot.slane %v328_v47, 2  ;;  %v616_v5 = vadd.f32 %v615_v61, %v168_v62  ;;  %v712_v37 = vadd.f32 %v711_v34, %v184_v50  ;;  %v903_v2 = vrot.slane %v216_v9, 4 }
  0x95   :  { %11143 = vst [vmem:[#allocation7_spill] sm:$0xff] %v7795_v53  ;;  %3999 = vmatmul.bf16.vlgmr.msra.gmra.mxu1 %v7795_v53  ;;  %v425_v48 = vrot.slane %v424_v20, 2  ;;  %v521_v8 = vrot.slane %v520_v58, 2  ;;  %v808_v13 = vadd.f32 %v807_v11, %v200_v4  ;;  %v999_v6 = vrot.slane %v232_v1, 4 }
  0x96   :  { %v330_v14 = vadd.f32 %v329_v12, %v328_v47  ;;  %v617_v41 = vrot.slane %v616_v5, 2  ;;  %v713_v30 = vrot.slane %v712_v37, 2  ;;  %v904_v17 = vadd.f32 %v903_v2, %v216_v9 }
  0x97   :  { %v426_v18 = vadd.f32 %v425_v48, %v424_v20  ;;  %v522_v42 = vadd.f32 %v521_v8, %v520_v58  ;;  %v809_v3 = vrot.slane %v808_v13, 2  ;;  %v1000_v43 = vadd.f32 %v999_v6, %v232_v1 }
  0x98   :  { %v331_v19 = vrot.slane %v330_v14, 1  ;;  %v618_v39 = vadd.f32 %v617_v41, %v616_v5  ;;  %v714_v24 = vadd.f32 %v713_v30, %v712_v37  ;;  %v905_v44 = vrot.slane %v904_v17, 2 }
  0x99   :  { %v427_v25 = vrot.slane %v426_v18, 1  ;;  %v523_v23 = vrot.slane %v522_v42, 1  ;;  %v810_v26 = vadd.f32 %v809_v3, %v808_v13  ;;  %v1001_v45 = vrot.slane %v1000_v43, 2 }
  0x9a   :  { %v332_v31 = vadd.f32 %v331_v19, %v330_v14  ;;  %v619_v49 = vrot.slane %v618_v39, 1  ;;  %v715_v62 = vrot.slane %v714_v24, 1  ;;  %v906_v50 = vadd.f32 %v905_v44, %v904_v17 }
  0x9b   :  { %v428_v4 = vadd.f32 %v427_v25, %v426_v18  ;;  %v524_v54 = vadd.f32 %v523_v23, %v522_v42  ;;  %v811_v36 = vrot.slane %v810_v26, 1  ;;  %v1002_v55 = vadd.f32 %v1001_v45, %v1000_v43  ;;  %v5501_v25 = vld [vmem:[%s11104_s1 + $0x220] sm:$0xf]  ;;  %v6709_v23 = vld [vmem:[%s11104_s1 + $0x224] sm:$0xf0] }
  0x9c   :  { %v620_v46 = vadd.f32 %v619_v49, %v618_v39  ;;  %v716_v35 = vadd.f32 %v715_v62, %v714_v24  ;;  %v907_v9 = vrot.slane %v906_v50, 1  ;;  %v1095_v1 = vrot.slane %v248_v56, 4 }
  0x9d   :  { %v812_v28 = vadd.f32 %v811_v36, %v810_v26  ;;  %v1003_v63 = vrot.slane %v1002_v55, 1  ;;  %v1191_v51 = vrot.slane %v264_v0, 4  ;;  %v1287_v21 = vrot.slane %v280_v10, 4  ;;  %v5565_v26 = vld [vmem:[%s11104_s1 + $0x2a0] sm:$0xf] }
  0x9e   :  { %v908_v15 = vadd.f32 %v907_v9, %v906_v50  ;;  %v1096_v22 = vadd.f32 %v1095_v1, %v248_v56  ;;  %v1383_v27 = vrot.slane %v296_v29, 4  ;;  %v1471_v16 = vmul.f32 %v7595_v33, %v332_v31  ;;  %v6725_v50 = vld [vmem:[%s11104_s1 + $0x2a4] sm:$0xf0]  ;;  %v5693_v9 = vld [vmem:[%s11104_s1 + $0x3a0] sm:$0xf] }
  0x9f   :  { %v1004_v38 = vadd.f32 %v1003_v63, %v1002_v55  ;;  %v1192_v32 = vadd.f32 %v1191_v51, %v264_v0  ;;  %v1288_v47 = vadd.f32 %v1287_v21, %v280_v10  ;;  %v1487_v61 = vmul.f32 %v7595_v33, %v428_v4  ;;  %v5629_v4 = vld [vmem:[%s11104_s1 + $0x320] sm:$0xf]  ;;  %v6757_v1 = vld [vmem:[%s11104_s1 + $0x3a4] sm:$0xf0]  ;;  %v6707_v63 = vld [vmem:[%s11104_s1 + $0x214] sm:$0xf0] }
  0xa0   :  { %v1097_v34 = vrot.slane %v1096_v22, 2  ;;  %v1384_v20 = vadd.f32 %v1383_v27, %v296_v29  ;;  %v1503_v52 = vmul.f32 %v7595_v33, %v524_v54  ;;  %v1519_v56 = vmul.f32 %v7595_v33, %v620_v46  ;;  %v6741_v54 = vld [vmem:[%s11104_s1 + $0x324] sm:$0xf0]  ;;  %v7861_v27 = vld [vmem:[%s11104_s1 + $0x290] sm:$0xf] }
  0xa1   :  { %v1193_v58 = vrot.slane %v1192_v32, 2  ;;  %v1289_v11 = vrot.slane %v1288_v47, 2  ;;  %v1535_v12 = vmul.f32 %v7595_v33, %v716_v35  ;;  %v1551_v7 = vmul.f32 %v7595_v33, %v812_v28  ;;  %v7852_v28 = vld [vmem:[%s11104_s1 + $0x210] sm:$0xf] }
  0xa2   :  { %v1098_v0 = vadd.f32 %v1097_v34, %v1096_v22  ;;  %v1385_v5 = vrot.slane %v1384_v20, 2  ;;  %v1567_v59 = vmul.f32 %v7595_v33, %v908_v15  ;;  %v1583_v10 = vmul.f32 %v7595_v33, %v1004_v38  ;;  %v7869_v38 = vld [vmem:[%s11104_s1 + $0x310] sm:$0xf] }
  0xa3   :  { %v1194_v37 = vadd.f32 %v1193_v58, %v1192_v32  ;;  %v1290_v2 = vadd.f32 %v1289_v11, %v1288_v47  ;;  %v1663_v60 = vpack.c.bf16 %v1471_v16, %v1471_v16  ;;  %v1679_v29 = vpack.c.bf16 %v1487_v61, %v1487_v61  ;;  %v6723_v16 = vld [vmem:[%s11104_s1 + $0x294] sm:$0xf0]  ;;  %v7890_v58 = vld [vmem:[%s11104_s1 + $0x200] sm:$0xf] }
  0xa4   :  { %v1099_v48 = vrot.slane %v1098_v0, 1  ;;  %v1386_v8 = vadd.f32 %v1385_v5, %v1384_v20  ;;  %v1695_v13 = vpack.c.bf16 %v1503_v52, %v1503_v52  ;;  %v1711_v6 = vpack.c.bf16 %v1519_v56, %v1519_v56  ;;  %v7874_v32 = vld [vmem:[%s11104_s1 + $0x314] sm:$0xf0]  ;;  %v7880_v52 = vld [vmem:[%s11104_s1 + $0x390] sm:$0xf] }
  0xa5   :  { %v1195_v14 = vrot.slane %v1194_v37, 1  ;;  %v1291_v41 = vrot.slane %v1290_v2, 1  ;;  %v1727_v30 = vpack.c.bf16 %v1535_v12, %v1535_v12  ;;  %v1743_v17 = vpack.c.bf16 %v1551_v7, %v1551_v7  ;;  %v7885_v56 = vld [vmem:[%s11104_s1 + $0x394] sm:$0xf0]  ;;  %v7896_v5 = vld [vmem:[%s11104_s1 + $0x204] sm:$0xf0] }
  0xa6   :  { %v1100_v18 = vadd.f32 %v1099_v48, %v1098_v0  ;;  %v1387_v42 = vrot.slane %v1386_v8, 1  ;;  %v1759_v3 = vpack.c.bf16 %v1567_v59, %v1567_v59  ;;  %v1775_v43 = vpack.c.bf16 %v1583_v10, %v1583_v10  ;;  %v7901_v59 = vld [vmem:[%s11104_s1 + $0x280] sm:$0xf]  ;;  %v7906_v10 = vld [vmem:[%s11104_s1 + $0x284] sm:$0xf0] }
  0xa7   :  { %v1196_v19 = vadd.f32 %v1195_v14, %v1194_v37  ;;  %v1292_v39 = vadd.f32 %v1291_v41, %v1290_v2  ;;  %v2309_v24 = vunpack.c.l.b16 %v1663_v60  ;;  %v2325_v44 = vunpack.c.l.b16 %v1679_v29  ;;  %v7912_v48 = vld [vmem:[%s11104_s1 + $0x300] sm:$0xf] }
  0xa8   :  { %v1388_v45 = vadd.f32 %v1387_v42, %v1386_v8  ;;  %v1599_v31 = vmul.f32 %v7595_v33, %v1100_v18  ;;  %v2341_v49 = vunpack.c.l.b16 %v1695_v13  ;;  %v2357_v62 = vunpack.c.l.b16 %v1711_v6  ;;  %v7917_v8 = vld [vmem:[%s11104_s1 + $0x304] sm:$0xf0]  ;;  %v7922_v13 = vld [vmem:[%s11104_s1 + $0x380] sm:$0xf]  ;;  %v5797_v18 = vld [vmem:[%s11104_s1 + $0x470] sm:$0xf] }
  0xa9   :  { %v1615_v36 = vmul.f32 %v7595_v33, %v1196_v19  ;;  %v1631_v55 = vmul.f32 %v7595_v33, %v1292_v39  ;;  %v2373_v46 = vunpack.c.l.b16 %v1727_v30  ;;  %v2389_v35 = vunpack.c.l.b16 %v1743_v17  ;;  %v7929_v17 = vld [vmem:[%s11104_s1 + $0x384] sm:$0xf0]  ;;  %v6783_v42 = vld [vmem:[%s11104_s1 + $0x474] sm:$0xf0] }
  0xaa   :  { %v1647_v51 = vmul.f32 %v7595_v33, %v1388_v45  ;;  %v1791_v21 = vpack.c.bf16 %v1599_v31, %v1599_v31  ;;  %v2405_v15 = vunpack.c.l.b16 %v1759_v3  ;;  %v2421_v22 = vunpack.c.l.b16 %v1775_v43  ;;  %v7940_v3 = vld [vmem:[%s11103_s0 + $0x10] sm:$0xff] }
  0xab   :  { %v1807_v47 = vpack.c.bf16 %v1615_v36, %v1615_v36  ;;  %v1823_v61 = vpack.c.bf16 %v1631_v55, %v1631_v55  ;;  %v2526_v34 = vsel %vm2498_vm1, %v2325_v44, %v2309_v24  ;;  %v5502_v20 = vor.u32 %v6709_v23, %v5501_v25  ;;  %v7945_v43 = vld [vmem:[%s11103_s0 + $0x50] sm:$0xff]  ;;  %v6799_v23 = vld [vmem:[%s11104_s1 + $0x4f4] sm:$0xf0] }
  0xac   :  { %v1839_v11 = vpack.c.bf16 %v1647_v51, %v1647_v51  ;;  %v2437_v12 = vunpack.c.l.b16 %v1791_v21  ;;  %v2527_v7 = vsel %vm2500_vm2, %v2341_v49, %v2526_v34  ;;  %v5566_v0 = vor.u32 %v6725_v50, %v5565_v26  ;;  %v5861_v25 = vld [vmem:[%s11104_s1 + $0x4f0] sm:$0xf]  ;;  %v6831_v55 = vld [vmem:[%s11104_s1 + $0x5f4] sm:$0xf0] }
  0xad   :  { %v2453_v37 = vunpack.c.l.b16 %v1807_v47  ;;  %v2469_v2 = vunpack.c.l.b16 %v1823_v61  ;;  %v2528_v60 = vsel %vm2502_vm3, %v2357_v62, %v2527_v7  ;;  %4038 = vmatpush.bf16.msrb.mxu0 %v5502_v20  ;;  %v5630_v29 = vor.u32 %v6741_v54, %v5629_v4  ;;  %v5925_v26 = vld [vmem:[%s11104_s1 + $0x570] sm:$0xf]  ;;  %v6815_v54 = vld [vmem:[%s11104_s1 + $0x574] sm:$0xf0] }
  0xae   :  { %v2485_v6 = vunpack.c.l.b16 %v1839_v11  ;;  %v2529_v14 = vsel %vm2504_vm4, %v2373_v46, %v2528_v60  ;;  %4052 = vmatpush.bf16.msrb.mxu1 %v5566_v0  ;;  %v5694_v41 = vor.u32 %v6757_v1, %v5693_v9  ;;  %v5494_v30 = vor.u32 %v6707_v63, %v7852_v28  ;;  %v7964_v45 = vld [vmem:[%s11103_s0 + $0x90] sm:$0xff] }
  0xaf   :  { %v2530_v19 = vsel %vm2506_vm5, %v2389_v35, %v2529_v14  ;;  %v2626_v39 = vsel %vm2498_vm1, %v2453_v37, %v2437_v12  ;;  %4066 = vmatpush.bf16.msrb.mxu2 %v5630_v29  ;;  %v5558_v24 = vor.u32 %v6723_v16, %v7861_v27  ;;  %v5622_v44 = vor.u32 %v7874_v32, %v7869_v38  ;;  %v7969_v31 = vld [vmem:[%s11103_s0 + $0xd0] sm:$0xff] }
  0xb0   :  { %v2531_v49 = vsel %vm2508_vm6, %v2405_v15, %v2530_v19  ;;  %v2627_v62 = vsel %vm2500_vm2, %v2469_v2, %v2626_v39  ;;  %4080 = vmatpush.bf16.msrb.mxu3 %v5694_v41  ;;  %v5686_v50 = vor.u32 %v7885_v56, %v7880_v52  ;;  %v5486_v4 = vor.u32 %v7896_v5, %v7890_v58  ;;  %v5989_v36 = vld [vmem:[%s11104_s1 + $0x5f0] sm:$0xf] }
  0xb1   :  { %v2532_v46 = vsel %vm2510_vm7, %v2421_v22, %v2531_v49  ;;  %v2628_v35 = vsel %vm2502_vm3, %v2485_v6, %v2627_v62  ;;  %4039 = vmatpush.bf16.msrb.mxu0 %v5494_v30  ;;  %v5550_v9 = vor.u32 %v7906_v10, %v7901_v59  ;;  %v5614_v1 = vor.u32 %v7917_v8, %v7912_v48  ;;  %v7995_v28 = vld [vmem:[%s11103_s0 + $0x110] sm:$0xff] }
  0xb2   :  { %v8000_v63 = vld [vmem:[%s11103_s0 + $0x150] sm:$0xff]  ;;  %v8007_v21 = vpack.c.b16 %v2628_v35, %v2532_v46  ;;  %4053 = vmatpush.bf16.msrb.mxu1 %v5558_v24  ;;  %v5678_v15 = vor.u32 %v7929_v17, %v7922_v13  ;;  %v5798_v22 = vor.u32 %v6783_v42, %v5797_v18  ;;  %v5862_v27 = vor.u32 %v6799_v23, %v5861_v25 }
  0xb3   :  { %v8005_v51 = vld [vmem:[%s11103_s0 + $0x210] sm:$0xff]  ;;  %4067 = vmatpush.bf16.msrb.mxu2 %v5622_v44  ;;  %v5926_v47 = vor.u32 %v6815_v54, %v5925_v26  ;;  %v5990_v61 = vor.u32 %v6831_v55, %v5989_v36  ;;  %v121_v52 = vunpack.c.l.bf16 %v7940_v3  ;;  %v137_v56 = vunpack.c.l.bf16 %v7945_v43 }
  0xb4   :  { %11144 = vst [vmem:[#allocation8_spill] sm:$0xff] %v8007_v21  ;;  %v8014_v16 = vld [vmem:[%s11103_s0 + $0x190] sm:$0xff]  ;;  %4027 = vmatmul.bf16.vlgmr.msra.gmra.mxu3 %v8007_v21  ;;  %v153_v58 = vunpack.c.l.bf16 %v7964_v45  ;;  %v169_v11 = vunpack.c.l.bf16 %v7969_v31  ;;  %v185_v12 = vunpack.c.l.bf16 %v7995_v28  ;;  %v201_v7 = vunpack.c.l.bf16 %v8000_v63 }
  0xb5   :  { %v8019_v38 = vld [vmem:[%s11103_s0 + $0x1d0] sm:$0xff]  ;;  %4081 = vmatpush.bf16.msrb.mxu3 %v5686_v50  ;;  %4040 = vmatpush.bf16.msrb.mxu0 %v5486_v4  ;;  %v217_v0 = vunpack.c.l.bf16 %v8014_v16  ;;  %v249_v59 = vunpack.c.l.bf16 %v8005_v51  ;;  %v333_v60 = vrot.slane %v121_v52, 4  ;;  %v429_v29 = vrot.slane %v137_v56, 4 }
  0xb6   :  { %v8024_v32 = vld [vmem:[%s11103_s0 + $0x250] sm:$0xff]  ;;  %v233_v5 = vunpack.c.l.bf16 %v8019_v38  ;;  %4054 = vmatpush.bf16.msrb.mxu1 %v5550_v9  ;;  %v525_v48 = vrot.slane %v153_v58, 4  ;;  %v621_v8 = vrot.slane %v169_v11, 4  ;;  %v717_v13 = vrot.slane %v185_v12, 4 }
  0xb7   :  { %v8029_v34 = vld [vmem:[%s11103_s0 + $0x290] sm:$0xff]  ;;  %v265_v10 = vunpack.c.l.bf16 %v8024_v32  ;;  %4068 = vmatpush.bf16.msrb.mxu2 %v5614_v1  ;;  %v813_v6 = vrot.slane %v201_v7, 4  ;;  %v334_v14 = vadd.f32 %v333_v60, %v121_v52  ;;  %v430_v41 = vadd.f32 %v429_v29, %v137_v56 }
  0xb8   :  { %v8034_v20 = vld [vmem:[%s11103_s0 + $0x2d0] sm:$0xff]  ;;  %v281_v37 = vunpack.c.l.bf16 %v8029_v34  ;;  %v909_v30 = vrot.slane %v217_v0, 4  ;;  %v1005_v17 = vrot.slane %v233_v5, 4  ;;  %v526_v18 = vadd.f32 %v525_v48, %v153_v58 }
  0xb9   :  { %4089 = vmatpush.bf16.msra.mxu0 %v5798_v22  ;;  %v297_v2 = vunpack.c.l.bf16 %v8034_v20  ;;  %4082 = vmatpush.bf16.msrb.mxu3 %v5678_v15  ;;  %v622_v42 = vadd.f32 %v621_v8, %v169_v11  ;;  %v718_v19 = vadd.f32 %v717_v13, %v185_v12  ;;  %v814_v39 = vadd.f32 %v813_v6, %v201_v7 }
  0xba   :  { %4103 = vmatpush.bf16.msra.mxu1 %v5862_v27  ;;  %v335_v24 = vrot.slane %v334_v14, 2  ;;  %v431_v44 = vrot.slane %v430_v41, 2  ;;  %v910_v25 = vadd.f32 %v909_v30, %v217_v0  ;;  %v1006_v23 = vadd.f32 %v1005_v17, %v233_v5 }
  0xbb   :  { %4117 = vmatpush.bf16.msra.mxu2 %v5926_v47  ;;  %v527_v26 = vrot.slane %v526_v18, 2  ;;  %v623_v49 = vrot.slane %v622_v42, 2  ;;  %v719_v62 = vrot.slane %v718_v19, 2  ;;  %v815_v50 = vrot.slane %v814_v39, 2 }
  0xbc   :  { %v336_v4 = vadd.f32 %v335_v24, %v334_v14  ;;  %v432_v54 = vadd.f32 %v431_v44, %v430_v41  ;;  %v911_v36 = vrot.slane %v910_v25, 2  ;;  %v1007_v55 = vrot.slane %v1006_v23, 2 }
  0xbd   :  { %4131 = vmatpush.bf16.msra.mxu3 %v5990_v61  ;;  %v528_v46 = vadd.f32 %v527_v26, %v526_v18  ;;  %v624_v35 = vadd.f32 %v623_v49, %v622_v42  ;;  %v720_v9 = vadd.f32 %v719_v62, %v718_v19  ;;  %v816_v1 = vadd.f32 %v815_v50, %v814_v39 }
  0xbe   :  { %v337_v15 = vrot.slane %v336_v4, 1  ;;  %v433_v22 = vrot.slane %v432_v54, 1  ;;  %v912_v27 = vadd.f32 %v911_v36, %v910_v25  ;;  %v1008_v47 = vadd.f32 %v1007_v55, %v1006_v23 }
  0xbf   :  { %v529_v61 = vrot.slane %v528_v46, 1  ;;  %v625_v52 = vrot.slane %v624_v35, 1  ;;  %v721_v56 = vrot.slane %v720_v9, 1  ;;  %v817_v58 = vrot.slane %v816_v1, 1 }
  0xc0   :  { %v338_v11 = vadd.f32 %v337_v15, %v336_v4  ;;  %v434_v12 = vadd.f32 %v433_v22, %v432_v54  ;;  %v913_v7 = vrot.slane %v912_v27, 1  ;;  %v1009_v0 = vrot.slane %v1008_v47, 1 }
  0xc1   :  { %v530_v5 = vadd.f32 %v529_v61, %v528_v46  ;;  %v626_v60 = vadd.f32 %v625_v52, %v624_v35  ;;  %v722_v29 = vadd.f32 %v721_v56, %v720_v9  ;;  %v818_v48 = vadd.f32 %v817_v58, %v816_v1 }
  0xc2   :  { %v914_v8 = vadd.f32 %v913_v7, %v912_v27  ;;  %v1010_v13 = vadd.f32 %v1009_v0, %v1008_v47  ;;  %v1101_v6 = vrot.slane %v249_v59, 4  ;;  %v1197_v14 = vrot.slane %v265_v10, 4 }
  0xc3   :  { %v1293_v41 = vrot.slane %v281_v37, 4  ;;  %v1389_v30 = vrot.slane %v297_v2, 4  ;;  %v1472_v17 = vmul.f32 %v7595_v33, %v338_v11  ;;  %v1488_v18 = vmul.f32 %v7595_v33, %v434_v12 }
  0xc4   :  { %v1102_v42 = vadd.f32 %v1101_v6, %v249_v59  ;;  %v1198_v19 = vadd.f32 %v1197_v14, %v265_v10  ;;  %v1504_v39 = vmul.f32 %v7595_v33, %v530_v5  ;;  %v1520_v24 = vmul.f32 %v7595_v33, %v626_v60  ;;  %v8076_v60 = vld [vmem:[%s11103_s0 + $0x18] sm:$0xff] }
  0xc5   :  { %v1294_v44 = vadd.f32 %v1293_v41, %v281_v37  ;;  %v1390_v25 = vadd.f32 %v1389_v30, %v297_v2  ;;  %v1536_v23 = vmul.f32 %v7595_v33, %v722_v29  ;;  %v1552_v26 = vmul.f32 %v7595_v33, %v818_v48  ;;  %v8081_v6 = vld [vmem:[%s11103_s0 + $0x58] sm:$0xff] }
  0xc6   :  { %v1103_v49 = vrot.slane %v1102_v42, 2  ;;  %v1199_v62 = vrot.slane %v1198_v19, 2  ;;  %v1568_v59 = vmul.f32 %v7595_v33, %v914_v8  ;;  %v1584_v10 = vmul.f32 %v7595_v33, %v1010_v13 }
  0xc7   :  { %v1295_v50 = vrot.slane %v1294_v44, 2  ;;  %v1391_v4 = vrot.slane %v1390_v25, 2  ;;  %v1664_v54 = vpack.c.bf16 %v1472_v17, %v1472_v17  ;;  %v1680_v36 = vpack.c.bf16 %v1488_v18, %v1488_v18  ;;  %v8088_v18 = vld [vmem:[%s11103_s0 + $0x98] sm:$0xff] }
  0xc8   :  { %v1104_v55 = vadd.f32 %v1103_v49, %v1102_v42  ;;  %v1200_v46 = vadd.f32 %v1199_v62, %v1198_v19  ;;  %v1696_v37 = vpack.c.bf16 %v1504_v39, %v1504_v39  ;;  %v1712_v35 = vpack.c.bf16 %v1520_v24, %v1520_v24  ;;  %v8096_v24 = vld [vmem:[%s11103_s0 + $0xd8] sm:$0xff] }
  0xc9   :  { %v1296_v9 = vadd.f32 %v1295_v50, %v1294_v44  ;;  %v1392_v2 = vadd.f32 %v1391_v4, %v1390_v25  ;;  %v1728_v1 = vpack.c.bf16 %v1536_v23, %v1536_v23  ;;  %v1744_v15 = vpack.c.bf16 %v1552_v26, %v1552_v26  ;;  %v8103_v49 = vld [vmem:[%s11103_s0 + $0x118] sm:$0xff] }
  0xca   :  { %v1105_v22 = vrot.slane %v1104_v55, 1  ;;  %v1201_v27 = vrot.slane %v1200_v46, 1  ;;  %v1760_v47 = vpack.c.bf16 %v1568_v59, %v1568_v59  ;;  %v1776_v61 = vpack.c.bf16 %v1584_v10, %v1584_v10  ;;  %v8110_v4 = vld [vmem:[%s11103_s0 + $0x158] sm:$0xff] }
  0xcb   :  { %v1297_v52 = vrot.slane %v1296_v9, 1  ;;  %v1393_v56 = vrot.slane %v1392_v2, 1  ;;  %v2310_v58 = vunpack.c.l.b16 %v1664_v54  ;;  %v2326_v11 = vunpack.c.l.b16 %v1680_v36  ;;  %v8115_v54 = vld [vmem:[%s11103_s0 + $0x198] sm:$0xff] }
  0xcc   :  { %v1106_v12 = vadd.f32 %v1105_v22, %v1104_v55  ;;  %v1202_v7 = vadd.f32 %v1201_v27, %v1200_v46  ;;  %v2342_v0 = vunpack.c.l.b16 %v1696_v37  ;;  %v2358_v5 = vunpack.c.l.b16 %v1712_v35  ;;  %v8122_v35 = vld [vmem:[%s11103_s0 + $0x1d8] sm:$0xff] }
  0xcd   :  { %v1298_v29 = vadd.f32 %v1297_v52, %v1296_v9  ;;  %v1394_v48 = vadd.f32 %v1393_v56, %v1392_v2  ;;  %v2374_v8 = vunpack.c.l.b16 %v1728_v1  ;;  %v2390_v13 = vunpack.c.l.b16 %v1744_v15  ;;  %v8127_v9 = vld [vmem:[%s11103_s0 + $0x218] sm:$0xff] }
  0xce   :  { %v1600_v14 = vmul.f32 %v7595_v33, %v1106_v12  ;;  %v1616_v41 = vmul.f32 %v7595_v33, %v1202_v7  ;;  %v2406_v30 = vunpack.c.l.b16 %v1760_v47  ;;  %v2422_v17 = vunpack.c.l.b16 %v1776_v61  ;;  %v8134_v27 = vld [vmem:[%s11103_s0 + $0x258] sm:$0xff] }
  0xcf   :  { %v1632_v42 = vmul.f32 %v7595_v33, %v1298_v29  ;;  %v1648_v19 = vmul.f32 %v7595_v33, %v1394_v48  ;;  %v2533_v39 = vsel %vm2498_vm1, %v2326_v11, %v2310_v58  ;;  %v123_v44 = vunpack.c.l.bf16 %v8076_v60  ;;  %v8139_v47 = vld [vmem:[%s11103_s0 + $0x298] sm:$0xff] }
  0xd0   :  { %v1792_v25 = vpack.c.bf16 %v1600_v14, %v1600_v14  ;;  %v1808_v23 = vpack.c.bf16 %v1616_v41, %v1616_v41  ;;  %v2534_v26 = vsel %vm2500_vm2, %v2342_v0, %v2533_v39  ;;  %v139_v62 = vunpack.c.l.bf16 %v8081_v6  ;;  %v8144_v61 = vld [vmem:[%s11103_s0 + $0x2d8] sm:$0xff] }
  0xd1   :  { %v1824_v59 = vpack.c.bf16 %v1632_v42, %v1632_v42  ;;  %v1840_v10 = vpack.c.bf16 %v1648_v19, %v1648_v19  ;;  %v2535_v50 = vsel %vm2502_vm3, %v2358_v5, %v2534_v26  ;;  %v155_v36 = vunpack.c.l.bf16 %v8088_v18 }
  0xd2   :  { %v2438_v55 = vunpack.c.l.b16 %v1792_v25  ;;  %v2454_v46 = vunpack.c.l.b16 %v1808_v23  ;;  %v2536_v37 = vsel %vm2504_vm4, %v2374_v8, %v2535_v50  ;;  %v171_v2 = vunpack.c.l.bf16 %v8096_v24 }
  0xd3   :  { %v2470_v1 = vunpack.c.l.b16 %v1824_v59  ;;  %v2486_v15 = vunpack.c.l.b16 %v1840_v10  ;;  %v2537_v22 = vsel %vm2506_vm5, %v2390_v13, %v2536_v37  ;;  %v187_v52 = vunpack.c.l.bf16 %v8103_v49 }
  0xd4   :  { %v2538_v56 = vsel %vm2508_vm6, %v2406_v30, %v2537_v22  ;;  %v2629_v58 = vsel %vm2498_vm1, %v2454_v46, %v2438_v55  ;;  %v203_v11 = vunpack.c.l.bf16 %v8110_v4  ;;  %v219_v12 = vunpack.c.l.bf16 %v8115_v54 }
  0xd5   :  { %v2539_v7 = vsel %vm2510_vm7, %v2422_v17, %v2538_v56  ;;  %v2630_v0 = vsel %vm2500_vm2, %v2470_v1, %v2629_v58  ;;  %v235_v5 = vunpack.c.l.bf16 %v8122_v35  ;;  %v251_v29 = vunpack.c.l.bf16 %v8127_v9 }
  0xd6   :  { %v2631_v48 = vsel %vm2502_vm3, %v2486_v15, %v2630_v0  ;;  %v267_v8 = vunpack.c.l.bf16 %v8134_v27  ;;  %v283_v13 = vunpack.c.l.bf16 %v8139_v47  ;;  %v299_v14 = vunpack.c.l.bf16 %v8144_v61 }
  0xd7   :  { %v8159_v41 = vpack.c.b16 %v2631_v48, %v2539_v7  ;;  %v345_v30 = vrot.slane %v123_v44, 4  ;;  %v441_v42 = vrot.slane %v139_v62, 4  ;;  %v537_v19 = vrot.slane %v155_v36, 4 }
  0xd8   :  { %v633_v17 = vrot.slane %v171_v2, 4  ;;  %v729_v39 = vrot.slane %v187_v52, 4  ;;  %v825_v25 = vrot.slane %v203_v11, 4  ;;  %v921_v23 = vrot.slane %v219_v12, 4 }
  0xd9   :  { %11145 = vst [vmem:[#allocation9_spill] sm:$0xff] %v8159_v41  ;;  %4041 = vmatmul.bf16.vlgmr.msrb.gmra.mxu0 %v8159_v41  ;;  %v346_v26 = vadd.f32 %v345_v30, %v123_v44  ;;  %v442_v59 = vadd.f32 %v441_v42, %v139_v62  ;;  %v538_v10 = vadd.f32 %v537_v19, %v155_v36  ;;  %v1017_v50 = vrot.slane %v235_v5, 4 }
  0xda   :  { %v634_v55 = vadd.f32 %v633_v17, %v171_v2  ;;  %v730_v46 = vadd.f32 %v729_v39, %v187_v52  ;;  %v826_v37 = vadd.f32 %v825_v25, %v203_v11  ;;  %v922_v1 = vadd.f32 %v921_v23, %v219_v12 }
  0xdb   :  { %v347_v15 = vrot.slane %v346_v26, 2  ;;  %v443_v22 = vrot.slane %v442_v59, 2  ;;  %v539_v56 = vrot.slane %v538_v10, 2  ;;  %v1018_v58 = vadd.f32 %v1017_v50, %v235_v5 }
  0xdc   :  { %v635_v7 = vrot.slane %v634_v55, 2  ;;  %v731_v0 = vrot.slane %v730_v46, 2  ;;  %v827_v48 = vrot.slane %v826_v37, 2  ;;  %v923_v21 = vrot.slane %v922_v1, 2 }
  0xdd   :  { %v348_v40 = vadd.f32 %v347_v15, %v346_v26  ;;  %v444_v53 = vadd.f32 %v443_v22, %v442_v59  ;;  %v540_v57 = vadd.f32 %v539_v56, %v538_v10  ;;  %v1019_v41 = vrot.slane %v1018_v58, 2 }
  0xde   :  { %v636_v44 = vadd.f32 %v635_v7, %v634_v55  ;;  %v732_v62 = vadd.f32 %v731_v0, %v730_v46  ;;  %v828_v36 = vadd.f32 %v827_v48, %v826_v37  ;;  %v924_v30 = vadd.f32 %v923_v21, %v922_v1 }
  0xdf   :  { %v349_v2 = vrot.slane %v348_v40, 1  ;;  %v445_v52 = vrot.slane %v444_v53, 1  ;;  %v541_v11 = vrot.slane %v540_v57, 1  ;;  %v1020_v12 = vadd.f32 %v1019_v41, %v1018_v58 }
  0xe0   :  { %v637_v42 = vrot.slane %v636_v44, 1  ;;  %v733_v19 = vrot.slane %v732_v62, 1  ;;  %v829_v17 = vrot.slane %v828_v36, 1  ;;  %v925_v5 = vrot.slane %v924_v30, 1 }
  0xe1   :  { %v350_v39 = vadd.f32 %v349_v2, %v348_v40  ;;  %v446_v25 = vadd.f32 %v445_v52, %v444_v53  ;;  %v542_v23 = vadd.f32 %v541_v11, %v540_v57  ;;  %v1021_v50 = vrot.slane %v1020_v12, 1 }
  0xe2   :  { %v638_v26 = vadd.f32 %v637_v42, %v636_v44  ;;  %v734_v59 = vadd.f32 %v733_v19, %v732_v62  ;;  %v830_v10 = vadd.f32 %v829_v17, %v828_v36  ;;  %v926_v15 = vadd.f32 %v925_v5, %v924_v30 }
  0xe3   :  { %v1022_v55 = vadd.f32 %v1021_v50, %v1020_v12  ;;  %v1113_v46 = vrot.slane %v251_v29, 4  ;;  %v1209_v37 = vrot.slane %v267_v8, 4  ;;  %v1305_v21 = vrot.slane %v283_v13, 4 }
  0xe4   :  { %v1401_v1 = vrot.slane %v299_v14, 4  ;;  %v1474_v22 = vmul.f32 %v7595_v33, %v350_v39  ;;  %v1490_v41 = vmul.f32 %v7595_v33, %v446_v25  ;;  %v1506_v56 = vmul.f32 %v7595_v33, %v542_v23 }
  0xe5   :  { %v1114_v58 = vadd.f32 %v1113_v46, %v251_v29  ;;  %v1210_v40 = vadd.f32 %v1209_v37, %v267_v8  ;;  %v1306_v53 = vadd.f32 %v1305_v21, %v283_v13  ;;  %v1522_v57 = vmul.f32 %v7595_v33, %v638_v26 }
  0xe6   :  { %v1402_v7 = vadd.f32 %v1401_v1, %v299_v14  ;;  %v1538_v0 = vmul.f32 %v7595_v33, %v734_v59  ;;  %v1554_v48 = vmul.f32 %v7595_v33, %v830_v10  ;;  %v1570_v44 = vmul.f32 %v7595_v33, %v926_v15 }
  0xe7   :  { %v1115_v62 = vrot.slane %v1114_v58, 2  ;;  %v1211_v36 = vrot.slane %v1210_v40, 2  ;;  %v1307_v30 = vrot.slane %v1306_v53, 2  ;;  %v1586_v2 = vmul.f32 %v7595_v33, %v1022_v55 }
  0xe8   :  { %v1403_v52 = vrot.slane %v1402_v7, 2  ;;  %v1666_v11 = vpack.c.bf16 %v1474_v22, %v1474_v22  ;;  %v1682_v12 = vpack.c.bf16 %v1490_v41, %v1490_v41  ;;  %v1698_v29 = vpack.c.bf16 %v1506_v56, %v1506_v56 }
  0xe9   :  { %v1116_v8 = vadd.f32 %v1115_v62, %v1114_v58  ;;  %v1212_v13 = vadd.f32 %v1211_v36, %v1210_v40  ;;  %v1308_v42 = vadd.f32 %v1307_v30, %v1306_v53  ;;  %v1714_v19 = vpack.c.bf16 %v1522_v57, %v1522_v57 }
  0xea   :  { %v1404_v14 = vadd.f32 %v1403_v52, %v1402_v7  ;;  %v1730_v17 = vpack.c.bf16 %v1538_v0, %v1538_v0  ;;  %v1746_v5 = vpack.c.bf16 %v1554_v48, %v1554_v48  ;;  %v1762_v39 = vpack.c.bf16 %v1570_v44, %v1570_v44 }
  0xeb   :  { %v1117_v25 = vrot.slane %v1116_v8, 1  ;;  %v1213_v23 = vrot.slane %v1212_v13, 1  ;;  %v1309_v50 = vrot.slane %v1308_v42, 1  ;;  %v1778_v26 = vpack.c.bf16 %v1586_v2, %v1586_v2 }
  0xec   :  { %v1405_v59 = vrot.slane %v1404_v14, 1  ;;  %v2312_v10 = vunpack.c.l.b16 %v1666_v11  ;;  %v2328_v15 = vunpack.c.l.b16 %v1682_v12  ;;  %v2344_v55 = vunpack.c.l.b16 %v1698_v29 }
  0xed   :  { %v1118_v46 = vadd.f32 %v1117_v25, %v1116_v8  ;;  %v1214_v37 = vadd.f32 %v1213_v23, %v1212_v13  ;;  %v1310_v21 = vadd.f32 %v1309_v50, %v1308_v42  ;;  %v2360_v1 = vunpack.c.l.b16 %v1714_v19 }
  0xee   :  { %v1406_v22 = vadd.f32 %v1405_v59, %v1404_v14  ;;  %v2376_v41 = vunpack.c.l.b16 %v1730_v17  ;;  %v2392_v56 = vunpack.c.l.b16 %v1746_v5  ;;  %v2408_v58 = vunpack.c.l.b16 %v1762_v39 }
  0xef   :  { %v1602_v40 = vmul.f32 %v7595_v33, %v1118_v46  ;;  %v1618_v53 = vmul.f32 %v7595_v33, %v1214_v37  ;;  %v1634_v57 = vmul.f32 %v7595_v33, %v1310_v21  ;;  %v2424_v7 = vunpack.c.l.b16 %v1778_v26 }
  0xf0   :  { %v1650_v0 = vmul.f32 %v7595_v33, %v1406_v22  ;;  %v2547_v48 = vsel %vm2498_vm1, %v2328_v15, %v2312_v10  ;;  %v122_v44 = vunpack.c.h.bf16 %v7940_v3  ;;  %v138_v62 = vunpack.c.h.bf16 %v7945_v43 }
  0xf1   :  { %v1794_v36 = vpack.c.bf16 %v1602_v40, %v1602_v40  ;;  %v1810_v30 = vpack.c.bf16 %v1618_v53, %v1618_v53  ;;  %v1826_v2 = vpack.c.bf16 %v1634_v57, %v1634_v57  ;;  %v2548_v52 = vsel %vm2500_vm2, %v2344_v55, %v2547_v48 }
  0xf2   :  { %v1842_v11 = vpack.c.bf16 %v1650_v0, %v1650_v0  ;;  %v2549_v12 = vsel %vm2502_vm3, %v2360_v1, %v2548_v52  ;;  %v154_v29 = vunpack.c.h.bf16 %v7964_v45  ;;  %v170_v8 = vunpack.c.h.bf16 %v7969_v31 }
  0xf3   :  { %v2440_v13 = vunpack.c.l.b16 %v1794_v36  ;;  %v2456_v42 = vunpack.c.l.b16 %v1810_v30  ;;  %v2472_v19 = vunpack.c.l.b16 %v1826_v2  ;;  %v2550_v14 = vsel %vm2504_vm4, %v2376_v41, %v2549_v12 }
  0xf4   :  { %v2488_v3 = vunpack.c.l.b16 %v1842_v11  ;;  %v2551_v43 = vsel %vm2506_vm5, %v2392_v56, %v2550_v14  ;;  %v186_v17 = vunpack.c.h.bf16 %v7995_v28  ;;  %v202_v5 = vunpack.c.h.bf16 %v8000_v63 }
  0xf5   :  { %v2552_v39 = vsel %vm2508_vm6, %v2408_v58, %v2551_v43  ;;  %v2635_v25 = vsel %vm2498_vm1, %v2456_v42, %v2440_v13  ;;  %v218_v45 = vunpack.c.h.bf16 %v8014_v16  ;;  %v234_v31 = vunpack.c.h.bf16 %v8019_v38 }
  0xf6   :  { %v2553_v23 = vsel %vm2510_vm7, %v2424_v7, %v2552_v39  ;;  %v2636_v50 = vsel %vm2500_vm2, %v2472_v19, %v2635_v25  ;;  %v250_v26 = vunpack.c.h.bf16 %v8005_v51  ;;  %v266_v59 = vunpack.c.h.bf16 %v8024_v32 }
  0xf7   :  { %v2637_v28 = vsel %vm2502_vm3, %v2488_v3, %v2636_v50  ;;  %v282_v63 = vunpack.c.h.bf16 %v8029_v34  ;;  %v298_v10 = vunpack.c.h.bf16 %v8034_v20  ;;  %v339_v15 = vrot.slane %v122_v44, 4 }
  0xf8   :  { %v8196_v55 = vpack.c.b16 %v2637_v28, %v2553_v23  ;;  %v435_v16 = vrot.slane %v138_v62, 4  ;;  %v531_v46 = vrot.slane %v154_v29, 4  ;;  %v627_v38 = vrot.slane %v170_v8, 4 }
  0xf9   :  { %v340_v37 = vadd.f32 %v339_v15, %v122_v44  ;;  %v723_v21 = vrot.slane %v186_v17, 4  ;;  %v819_v1 = vrot.slane %v202_v5, 4  ;;  %v915_v22 = vrot.slane %v218_v45, 4 }
  0xfa   :  { %11146 = vst [vmem:[#allocation10_spill] sm:$0xff] %v8196_v55  ;;  %4069 = vmatmul.bf16.vlgmr.msrb.gmra.mxu2 %v8196_v55  ;;  %v436_v51 = vadd.f32 %v435_v16, %v138_v62  ;;  %v532_v32 = vadd.f32 %v531_v46, %v154_v29  ;;  %v628_v41 = vadd.f32 %v627_v38, %v170_v8  ;;  %v1011_v56 = vrot.slane %v234_v31, 4 }
  0xfb   :  { %v341_v58 = vrot.slane %v340_v37, 2  ;;  %v724_v34 = vadd.f32 %v723_v21, %v186_v17  ;;  %v820_v40 = vadd.f32 %v819_v1, %v202_v5  ;;  %v916_v20 = vadd.f32 %v915_v22, %v218_v45 }
  0xfc   :  { %v437_v53 = vrot.slane %v436_v51, 2  ;;  %v533_v57 = vrot.slane %v532_v32, 2  ;;  %v629_v7 = vrot.slane %v628_v41, 2  ;;  %v1012_v0 = vadd.f32 %v1011_v56, %v234_v31 }
  0xfd   :  { %v342_v48 = vadd.f32 %v341_v58, %v340_v37  ;;  %v725_v36 = vrot.slane %v724_v34, 2  ;;  %v821_v44 = vrot.slane %v820_v40, 2  ;;  %v917_v30 = vrot.slane %v916_v20, 2 }
  0xfe   :  { %v438_v2 = vadd.f32 %v437_v53, %v436_v51  ;;  %v534_v52 = vadd.f32 %v533_v57, %v532_v32  ;;  %v630_v11 = vadd.f32 %v629_v7, %v628_v41  ;;  %v1013_v12 = vrot.slane %v1012_v0, 2 }
  0xff   :  { %v343_v62 = vrot.slane %v342_v48, 1  ;;  %v726_v29 = vadd.f32 %v725_v36, %v724_v34  ;;  %v822_v8 = vadd.f32 %v821_v44, %v820_v40  ;;  %v918_v13 = vadd.f32 %v917_v30, %v916_v20 }
 0x100   :  { %v439_v42 = vrot.slane %v438_v2, 1  ;;  %v535_v19 = vrot.slane %v534_v52, 1  ;;  %v631_v14 = vrot.slane %v630_v11, 1  ;;  %v1014_v3 = vadd.f32 %v1013_v12, %v1012_v0 }
 0x101   :  { %v344_v43 = vadd.f32 %v343_v62, %v342_v48  ;;  %v727_v17 = vrot.slane %v726_v29, 1  ;;  %v823_v5 = vrot.slane %v822_v8, 1  ;;  %v919_v39 = vrot.slane %v918_v13, 1 }
 0x102   :  { %v440_v25 = vadd.f32 %v439_v42, %v438_v2  ;;  %v536_v45 = vadd.f32 %v535_v19, %v534_v52  ;;  %v632_v31 = vadd.f32 %v631_v14, %v630_v11  ;;  %v1015_v23 = vrot.slane %v1014_v3, 1 }
 0x103   :  { %v728_v50 = vadd.f32 %v727_v17, %v726_v29  ;;  %v824_v28 = vadd.f32 %v823_v5, %v822_v8  ;;  %v920_v15 = vadd.f32 %v919_v39, %v918_v13  ;;  %v1107_v16 = vrot.slane %v250_v26, 4 }
 0x104   :  { %v1016_v46 = vadd.f32 %v1015_v23, %v1014_v3  ;;  %v1203_v38 = vrot.slane %v266_v59, 4  ;;  %v1299_v37 = vrot.slane %v282_v63, 4  ;;  %v1395_v21 = vrot.slane %v298_v10, 4 }
 0x105   :  { %v1108_v1 = vadd.f32 %v1107_v16, %v250_v26  ;;  %v1473_v22 = vmul.f32 %v7595_v33, %v344_v43  ;;  %v1489_v51 = vmul.f32 %v7595_v33, %v440_v25  ;;  %v1505_v32 = vmul.f32 %v7595_v33, %v536_v45 }
 0x106   :  { %v1204_v41 = vadd.f32 %v1203_v38, %v266_v59  ;;  %v1300_v56 = vadd.f32 %v1299_v37, %v282_v63  ;;  %v1396_v58 = vadd.f32 %v1395_v21, %v298_v10  ;;  %v1521_v34 = vmul.f32 %v7595_v33, %v632_v31 }
 0x107   :  { %v1109_v40 = vrot.slane %v1108_v1, 2  ;;  %v1537_v20 = vmul.f32 %v7595_v33, %v728_v50  ;;  %v1553_v53 = vmul.f32 %v7595_v33, %v824_v28  ;;  %v1569_v57 = vmul.f32 %v7595_v33, %v920_v15 }
 0x108   :  { %v1205_v7 = vrot.slane %v1204_v41, 2  ;;  %v1301_v26 = vrot.slane %v1300_v56, 2  ;;  %v1397_v0 = vrot.slane %v1396_v58, 2  ;;  %v1585_v48 = vmul.f32 %v7595_v33, %v1016_v46 }
 0x109   :  { %v1110_v36 = vadd.f32 %v1109_v40, %v1108_v1  ;;  %v1665_v44 = vpack.c.bf16 %v1473_v22, %v1473_v22  ;;  %v1681_v30 = vpack.c.bf16 %v1489_v51, %v1489_v51  ;;  %v1697_v59 = vpack.c.bf16 %v1505_v32, %v1505_v32 }
 0x10a   :  { %v1206_v63 = vadd.f32 %v1205_v7, %v1204_v41  ;;  %v1302_v10 = vadd.f32 %v1301_v26, %v1300_v56  ;;  %v1398_v2 = vadd.f32 %v1397_v0, %v1396_v58  ;;  %v1713_v52 = vpack.c.bf16 %v1521_v34, %v1521_v34 }
 0x10b   :  { %v1111_v11 = vrot.slane %v1110_v36, 1  ;;  %v1729_v12 = vpack.c.bf16 %v1537_v20, %v1537_v20  ;;  %v1745_v62 = vpack.c.bf16 %v1553_v53, %v1553_v53  ;;  %v1761_v29 = vpack.c.bf16 %v1569_v57, %v1569_v57 }
 0x10c   :  { %v1207_v8 = vrot.slane %v1206_v63, 1  ;;  %v1303_v13 = vrot.slane %v1302_v10, 1  ;;  %v1399_v42 = vrot.slane %v1398_v2, 1  ;;  %v1777_v19 = vpack.c.bf16 %v1585_v48, %v1585_v48 }
 0x10d   :  { %v1112_v14 = vadd.f32 %v1111_v11, %v1110_v36  ;;  %v2311_v3 = vunpack.c.l.b16 %v1665_v44  ;;  %v2327_v43 = vunpack.c.l.b16 %v1681_v30  ;;  %v2343_v17 = vunpack.c.l.b16 %v1697_v59 }
 0x10e   :  { %v1208_v5 = vadd.f32 %v1207_v8, %v1206_v63  ;;  %v1304_v39 = vadd.f32 %v1303_v13, %v1302_v10  ;;  %v1400_v25 = vadd.f32 %v1399_v42, %v1398_v2  ;;  %v2359_v45 = vunpack.c.l.b16 %v1713_v52 }
 0x10f   :  { %v1601_v31 = vmul.f32 %v7595_v33, %v1112_v14  ;;  %v2375_v23 = vunpack.c.l.b16 %v1729_v12  ;;  %v2391_v50 = vunpack.c.l.b16 %v1745_v62  ;;  %v2407_v28 = vunpack.c.l.b16 %v1761_v29 }
 0x110   :  { %v1617_v15 = vmul.f32 %v7595_v33, %v1208_v5  ;;  %v1633_v16 = vmul.f32 %v7595_v33, %v1304_v39  ;;  %v1649_v46 = vmul.f32 %v7595_v33, %v1400_v25  ;;  %v2423_v38 = vunpack.c.l.b16 %v1777_v19 }
 0x111   :  { %v1793_v37 = vpack.c.bf16 %v1601_v31, %v1601_v31  ;;  %v2540_v21 = vsel %vm2498_vm1, %v2327_v43, %v2311_v3  ;;  %v124_v1 = vunpack.c.h.bf16 %v8076_v60  ;;  %v140_v22 = vunpack.c.h.bf16 %v8081_v6 }
 0x112   :  { %v1809_v51 = vpack.c.bf16 %v1617_v15, %v1617_v15  ;;  %v1825_v32 = vpack.c.bf16 %v1633_v16, %v1633_v16  ;;  %v1841_v41 = vpack.c.bf16 %v1649_v46, %v1649_v46  ;;  %v2541_v56 = vsel %vm2500_vm2, %v2343_v17, %v2540_v21 }
 0x113   :  { %v2439_v58 = vunpack.c.l.b16 %v1793_v37  ;;  %v2542_v34 = vsel %vm2502_vm3, %v2359_v45, %v2541_v56  ;;  %v156_v40 = vunpack.c.h.bf16 %v8088_v18  ;;  %v172_v20 = vunpack.c.h.bf16 %v8096_v24 }
 0x114   :  { %v2455_v53 = vunpack.c.l.b16 %v1809_v51  ;;  %v2471_v57 = vunpack.c.l.b16 %v1825_v32  ;;  %v2487_v7 = vunpack.c.l.b16 %v1841_v41  ;;  %v2543_v26 = vsel %vm2504_vm4, %v2375_v23, %v2542_v34 }
 0x115   :  { %v2544_v60 = vsel %vm2506_vm5, %v2391_v50, %v2543_v26  ;;  %v188_v6 = vunpack.c.h.bf16 %v8103_v49  ;;  %v204_v0 = vunpack.c.h.bf16 %v8110_v4  ;;  %v220_v48 = vunpack.c.h.bf16 %v8115_v54 }
 0x116   :  { %v2545_v36 = vsel %vm2508_vm6, %v2407_v28, %v2544_v60  ;;  %v2632_v44 = vsel %vm2498_vm1, %v2455_v53, %v2439_v58  ;;  %v236_v18 = vunpack.c.h.bf16 %v8122_v35  ;;  %v252_v24 = vunpack.c.h.bf16 %v8127_v9 }
 0x117   :  { %v2546_v30 = vsel %vm2510_vm7, %v2423_v38, %v2545_v36  ;;  %v2633_v59 = vsel %vm2500_vm2, %v2471_v57, %v2632_v44  ;;  %v268_v63 = vunpack.c.h.bf16 %v8134_v27  ;;  %v284_v49 = vunpack.c.h.bf16 %v8139_v47 }
 0x118   :  { %v2634_v4 = vsel %vm2502_vm3, %v2487_v7, %v2633_v59  ;;  %v300_v54 = vunpack.c.h.bf16 %v8144_v61  ;;  %v351_v10 = vrot.slane %v124_v1, 4  ;;  %v447_v2 = vrot.slane %v140_v22, 4 }
 0x119   :  { %v8233_v52 = vpack.c.b16 %v2634_v4, %v2546_v30  ;;  %v543_v11 = vrot.slane %v156_v40, 4  ;;  %v639_v35 = vrot.slane %v172_v20, 4  ;;  %v735_v12 = vrot.slane %v188_v6, 4 }
 0x11a   :  { %v352_v9 = vadd.f32 %v351_v10, %v124_v1  ;;  %v448_v62 = vadd.f32 %v447_v2, %v140_v22  ;;  %v831_v29 = vrot.slane %v204_v0, 4  ;;  %v927_v8 = vrot.slane %v220_v48, 4 }
 0x11b   :  { %11147 = vst [vmem:[#allocation11_spill] sm:$0xff] %v8233_v52  ;;  %4055 = vmatmul.bf16.vlgmr.msrb.gmra.mxu1 %v8233_v52  ;;  %v544_v27 = vadd.f32 %v543_v11, %v156_v40  ;;  %v640_v13 = vadd.f32 %v639_v35, %v172_v20  ;;  %v736_v47 = vadd.f32 %v735_v12, %v188_v6  ;;  %v1023_v42 = vrot.slane %v236_v18, 4 }
 0x11c   :  { %v353_v19 = vrot.slane %v352_v9, 2  ;;  %v449_v14 = vrot.slane %v448_v62, 2  ;;  %v832_v61 = vadd.f32 %v831_v29, %v204_v0  ;;  %v928_v3 = vadd.f32 %v927_v8, %v220_v48 }
 0x11d   :  { %v545_v43 = vrot.slane %v544_v27, 2  ;;  %v641_v17 = vrot.slane %v640_v13, 2  ;;  %v737_v5 = vrot.slane %v736_v47, 2  ;;  %v1024_v39 = vadd.f32 %v1023_v42, %v236_v18 }
 0x11e   :  { %v354_v25 = vadd.f32 %v353_v19, %v352_v9  ;;  %v450_v45 = vadd.f32 %v449_v14, %v448_v62  ;;  %v833_v31 = vrot.slane %v832_v61, 2  ;;  %v929_v23 = vrot.slane %v928_v3, 2 }
 0x11f   :  { %v546_v50 = vadd.f32 %v545_v43, %v544_v27  ;;  %v642_v28 = vadd.f32 %v641_v17, %v640_v13  ;;  %v738_v15 = vadd.f32 %v737_v5, %v736_v47  ;;  %v1025_v16 = vrot.slane %v1024_v39, 2 }
 0x120   :  { %v355_v46 = vrot.slane %v354_v25, 1  ;;  %v451_v38 = vrot.slane %v450_v45, 1  ;;  %v834_v37 = vadd.f32 %v833_v31, %v832_v61  ;;  %v930_v21 = vadd.f32 %v929_v23, %v928_v3 }
 0x121   :  { %v547_v1 = vrot.slane %v546_v50, 1  ;;  %v643_v22 = vrot.slane %v642_v28, 1  ;;  %v739_v51 = vrot.slane %v738_v15, 1  ;;  %v1026_v32 = vadd.f32 %v1025_v16, %v1024_v39  ;;  %v5789_v16 = vld [vmem:[%s11104_s1 + $0x460] sm:$0xf] }
 0x122   :  { %v356_v41 = vadd.f32 %v355_v46, %v354_v25  ;;  %v452_v56 = vadd.f32 %v451_v38, %v450_v45  ;;  %v835_v58 = vrot.slane %v834_v37, 1  ;;  %v931_v34 = vrot.slane %v930_v21, 1  ;;  %v6781_v46 = vld [vmem:[%s11104_s1 + $0x464] sm:$0xf0] }
 0x123   :  { %v548_v40 = vadd.f32 %v547_v1, %v546_v50  ;;  %v644_v20 = vadd.f32 %v643_v22, %v642_v28  ;;  %v740_v53 = vadd.f32 %v739_v51, %v738_v15  ;;  %v1027_v57 = vrot.slane %v1026_v32, 1  ;;  %v5853_v22 = vld [vmem:[%s11104_s1 + $0x4e0] sm:$0xf]  ;;  %v6797_v51 = vld [vmem:[%s11104_s1 + $0x4e4] sm:$0xf0] }
 0x124   :  { %v836_v7 = vadd.f32 %v835_v58, %v834_v37  ;;  %v932_v26 = vadd.f32 %v931_v34, %v930_v21  ;;  %v1119_v60 = vrot.slane %v252_v24, 4  ;;  %v1215_v6 = vrot.slane %v268_v63, 4 }
 0x125   :  { %v1028_v0 = vadd.f32 %v1027_v57, %v1026_v32  ;;  %v1311_v48 = vrot.slane %v284_v49, 4  ;;  %v1407_v36 = vrot.slane %v300_v54, 4  ;;  %v1475_v44 = vmul.f32 %v7595_v33, %v356_v41  ;;  %v5917_v32 = vld [vmem:[%s11104_s1 + $0x560] sm:$0xf] }
 0x126   :  { %v1120_v18 = vadd.f32 %v1119_v60, %v252_v24  ;;  %v1216_v30 = vadd.f32 %v1215_v6, %v268_v63  ;;  %v1491_v59 = vmul.f32 %v7595_v33, %v452_v56  ;;  %v1507_v4 = vmul.f32 %v7595_v33, %v548_v40  ;;  %v6813_v40 = vld [vmem:[%s11104_s1 + $0x564] sm:$0xf0]  ;;  %v8280_v6 = vld [vmem:[%s11104_s1 + $0x450] sm:$0xf] }
 0x127   :  { %v1312_v10 = vadd.f32 %v1311_v48, %v284_v49  ;;  %v1408_v2 = vadd.f32 %v1407_v36, %v300_v54  ;;  %v1523_v11 = vmul.f32 %v7595_v33, %v644_v20  ;;  %v1539_v35 = vmul.f32 %v7595_v33, %v740_v53  ;;  %v8267_v20 = vld [vmem:[%s11104_s1 + $0x5e0] sm:$0xf]  ;;  %v8272_v53 = vld [vmem:[%s11104_s1 + $0x5e4] sm:$0xf0]  ;;  %v8290_v48 = vld [vmem:[%s11104_s1 + $0x4d0] sm:$0xf] }
 0x128   :  { %v1121_v12 = vrot.slane %v1120_v18, 2  ;;  %v1217_v9 = vrot.slane %v1216_v30, 2  ;;  %v1555_v62 = vmul.f32 %v7595_v33, %v836_v7  ;;  %v1571_v29 = vmul.f32 %v7595_v33, %v932_v26  ;;  %v8295_v36 = vld [vmem:[%s11104_s1 + $0x4d4] sm:$0xf0] }
 0x129   :  { %v1313_v8 = vrot.slane %v1312_v10, 2  ;;  %v1409_v27 = vrot.slane %v1408_v2, 2  ;;  %v1587_v24 = vmul.f32 %v7595_v33, %v1028_v0  ;;  %v1667_v63 = vpack.c.bf16 %v1475_v44, %v1475_v44  ;;  %v8285_v0 = vld [vmem:[%s11104_s1 + $0x454] sm:$0xf0] }
 0x12a   :  { %v1122_v13 = vadd.f32 %v1121_v12, %v1120_v18  ;;  %v1218_v47 = vadd.f32 %v1217_v9, %v1216_v30  ;;  %v1683_v42 = vpack.c.bf16 %v1491_v59, %v1491_v59  ;;  %v1699_v49 = vpack.c.bf16 %v1507_v4, %v1507_v4  ;;  %v8301_v4 = vld [vmem:[%s11104_s1 + $0x550] sm:$0xf] }
 0x12b   :  { %v1314_v54 = vadd.f32 %v1313_v8, %v1312_v10  ;;  %v1410_v19 = vadd.f32 %v1409_v27, %v1408_v2  ;;  %v1715_v14 = vpack.c.bf16 %v1523_v11, %v1523_v11  ;;  %v1731_v61 = vpack.c.bf16 %v1539_v35, %v1539_v35  ;;  %v8306_v10 = vld [vmem:[%s11104_s1 + $0x554] sm:$0xf0]  ;;  %v8311_v2 = vld [vmem:[%s11104_s1 + $0x5d0] sm:$0xf]  ;;  %v8327_v8 = vld [vmem:[%s11104_s1 + $0x444] sm:$0xf0] }
 0x12c   :  { %v1123_v3 = vrot.slane %v1122_v13, 1  ;;  %v1219_v43 = vrot.slane %v1218_v47, 1  ;;  %v1747_v17 = vpack.c.bf16 %v1555_v62, %v1555_v62  ;;  %v1763_v5 = vpack.c.bf16 %v1571_v29, %v1571_v29  ;;  %v8316_v11 = vld [vmem:[%s11104_s1 + $0x5d4] sm:$0xf0]  ;;  %v8322_v29 = vld [vmem:[%s11104_s1 + $0x440] sm:$0xf] }
 0x12d   :  { %v1315_v39 = vrot.slane %v1314_v54, 1  ;;  %v1411_v25 = vrot.slane %v1410_v19, 1  ;;  %v1779_v45 = vpack.c.bf16 %v1587_v24, %v1587_v24  ;;  %v2313_v31 = vunpack.c.l.b16 %v1667_v63  ;;  %v8332_v27 = vld [vmem:[%s11104_s1 + $0x4c0] sm:$0xf]  ;;  %v8337_v24 = vld [vmem:[%s11104_s1 + $0x4c4] sm:$0xf0] }
 0x12e   :  { %v1124_v23 = vadd.f32 %v1123_v3, %v1122_v13  ;;  %v1220_v50 = vadd.f32 %v1219_v43, %v1218_v47  ;;  %v2329_v28 = vunpack.c.l.b16 %v1683_v42  ;;  %v2345_v15 = vunpack.c.l.b16 %v1699_v49  ;;  %v8342_v63 = vld [vmem:[%s11104_s1 + $0x540] sm:$0xf]  ;;  %v8347_v13 = vld [vmem:[%s11104_s1 + $0x544] sm:$0xf0]  ;;  %v8368_v3 = vld [vmem:[%s11104_s1 + $0x434] sm:$0xf0] }
 0x12f   :  { %v1316_v38 = vadd.f32 %v1315_v39, %v1314_v54  ;;  %v1412_v37 = vadd.f32 %v1411_v25, %v1410_v19  ;;  %v2361_v21 = vunpack.c.l.b16 %v1715_v14  ;;  %v2377_v1 = vunpack.c.l.b16 %v1731_v61  ;;  %v8353_v19 = vld [vmem:[%s11104_s1 + $0x5c0] sm:$0xf]  ;;  %v8358_v14 = vld [vmem:[%s11104_s1 + $0x5c4] sm:$0xf0]  ;;  %v8363_v61 = vld [vmem:[%s11104_s1 + $0x430] sm:$0xf] }
 0x130   :  { %v1603_v41 = vmul.f32 %v7595_v33, %v1124_v23  ;;  %v1619_v56 = vmul.f32 %v7595_v33, %v1220_v50  ;;  %v2393_v58 = vunpack.c.l.b16 %v1747_v17  ;;  %v2409_v34 = vunpack.c.l.b16 %v1763_v5  ;;  %v8373_v43 = vld [vmem:[%s11104_s1 + $0x4b0] sm:$0xf]  ;;  %v8378_v17 = vld [vmem:[%s11104_s1 + $0x4b4] sm:$0xf0] }
 0x131   :  { %v1635_v57 = vmul.f32 %v7595_v33, %v1316_v38  ;;  %v1651_v7 = vmul.f32 %v7595_v33, %v1412_v37  ;;  %v2425_v26 = vunpack.c.l.b16 %v1779_v45  ;;  %v2554_v60 = vsel %vm2498_vm1, %v2329_v28, %v2313_v31  ;;  %v8386_v31 = vld [vmem:[%s11104_s1 + $0x530] sm:$0xf]  ;;  %v8391_v23 = vld [vmem:[%s11104_s1 + $0x534] sm:$0xf0]  ;;  %v8421_v38 = vld [vmem:[%s11104_s1 + $0x4a4] sm:$0xf0] }
 0x132   :  { %v1795_v44 = vpack.c.bf16 %v1603_v41, %v1603_v41  ;;  %v1811_v18 = vpack.c.bf16 %v1619_v56, %v1619_v56  ;;  %v2555_v30 = vsel %vm2500_vm2, %v2345_v15, %v2554_v60  ;;  %v5790_v59 = vor.u32 %v6781_v46, %v5789_v16  ;;  %v8396_v50 = vld [vmem:[%s11104_s1 + $0x5b0] sm:$0xf]  ;;  %v8401_v28 = vld [vmem:[%s11104_s1 + $0x5b4] sm:$0xf0]  ;;  %v8406_v15 = vld [vmem:[%s11104_s1 + $0x420] sm:$0xf] }
 0x133   :  { %v1827_v35 = vpack.c.bf16 %v1635_v57, %v1635_v57  ;;  %v1843_v12 = vpack.c.bf16 %v1651_v7, %v1651_v7  ;;  %v2556_v9 = vsel %vm2502_vm3, %v2361_v21, %v2555_v30  ;;  %v5854_v62 = vor.u32 %v6797_v51, %v5853_v22  ;;  %v8411_v16 = vld [vmem:[%s11104_s1 + $0x424] sm:$0xf0]  ;;  %v8416_v46 = vld [vmem:[%s11104_s1 + $0x4a0] sm:$0xf] }
 0x134   :  { %v2441_v47 = vunpack.c.l.b16 %v1795_v44  ;;  %v2457_v42 = vunpack.c.l.b16 %v1811_v18  ;;  %v2557_v49 = vsel %vm2504_vm4, %v2377_v1, %v2556_v9  ;;  %4090 = vmatpush.bf16.msra.mxu0 %v5790_v59  ;;  %v5918_v54 = vor.u32 %v6813_v40, %v5917_v32  ;;  %v8432_v51 = vld [vmem:[%s11104_s1 + $0x520] sm:$0xf]  ;;  %v8437_v32 = vld [vmem:[%s11104_s1 + $0x524] sm:$0xf0]  ;;  %v8462_v40 = vld [vmem:[%s11104_s1 + $0x490] sm:$0xf] }
 0x135   :  { %v2473_v5 = vunpack.c.l.b16 %v1827_v35  ;;  %v2489_v39 = vunpack.c.l.b16 %v1843_v12  ;;  %v2558_v25 = vsel %vm2506_vm5, %v2393_v58, %v2557_v49  ;;  %4104 = vmatpush.bf16.msra.mxu1 %v5854_v62  ;;  %v5982_v45 = vor.u32 %v8272_v53, %v8267_v20  ;;  %v8442_v41 = vld [vmem:[%s11104_s1 + $0x5a0] sm:$0xf]  ;;  %v8447_v56 = vld [vmem:[%s11104_s1 + $0x5a4] sm:$0xf0]  ;;  %v8452_v58 = vld [vmem:[%s11104_s1 + $0x410] sm:$0xf] }
 0x136   :  { %v2559_v37 = vsel %vm2508_vm6, %v2409_v34, %v2558_v25  ;;  %v2638_v21 = vsel %vm2498_vm1, %v2457_v42, %v2441_v47  ;;  %4118 = vmatpush.bf16.msra.mxu2 %v5918_v54  ;;  %v5782_v1 = vor.u32 %v8285_v0, %v8280_v6  ;;  %v5846_v22 = vor.u32 %v8295_v36, %v8290_v48  ;;  %v8457_v34 = vld [vmem:[%s11104_s1 + $0x414] sm:$0xf0]  ;;  %v8478_v6 = vld [vmem:[%s11104_s1 + $0x510] sm:$0xf]  ;;  %v8498_v36 = vld [vmem:[%s11104_s1 + $0x400] sm:$0xf] }
 0x137   :  { %v8467_v20 = vld [vmem:[%s11104_s1 + $0x494] sm:$0xf0]  ;;  %v2560_v53 = vsel %vm2510_vm7, %v2425_v26, %v2559_v37  ;;  %v2639_v57 = vsel %vm2500_vm2, %v2473_v5, %v2638_v21  ;;  %4132 = vmatpush.bf16.msra.mxu3 %v5982_v45  ;;  %v5910_v7 = vor.u32 %v8306_v10, %v8301_v4  ;;  %v5974_v60 = vor.u32 %v8316_v11, %v8311_v2  ;;  %v8488_v26 = vld [vmem:[%s11104_s1 + $0x590] sm:$0xf]  ;;  %v8503_v44 = vld [vmem:[%s11104_s1 + $0x404] sm:$0xf0] }
 0x138   :  { %v8483_v0 = vld [vmem:[%s11104_s1 + $0x514] sm:$0xf0]  ;;  %v8508_v18 = vld [vmem:[%s11103_s0 + $0x20] sm:$0xff]  ;;  %v2640_v30 = vsel %vm2502_vm3, %v2489_v39, %v2639_v57  ;;  %4091 = vmatpush.bf16.msra.mxu0 %v5782_v1  ;;  %v5774_v59 = vor.u32 %v8327_v8, %v8322_v29  ;;  %v5838_v4 = vor.u32 %v8337_v24, %v8332_v27  ;;  %v5902_v10 = vor.u32 %v8347_v13, %v8342_v63  ;;  %v8525_v11 = vld [vmem:[%s11104_s1 + $0x484] sm:$0xf0] }
 0x139   :  { %v8493_v48 = vld [vmem:[%s11104_s1 + $0x594] sm:$0xf0]  ;;  %11148 = vst [vmem:[#allocation12_spill] sm:$0xff] %v8508_v18  ;;  %v8520_v2 = vld [vmem:[%s11104_s1 + $0x480] sm:$0xf]  ;;  %v8542_v62 = vpack.c.b16 %v2640_v30, %v2560_v53  ;;  %4105 = vmatpush.bf16.msra.mxu1 %v5846_v22  ;;  %v5966_v29 = vor.u32 %v8358_v14, %v8353_v19  ;;  %v5766_v8 = vor.u32 %v8368_v3, %v8363_v61 }
 0x13a   :  { %v8530_v35 = vld [vmem:[%s11104_s1 + $0x500] sm:$0xf]  ;;  %v8535_v12 = vld [vmem:[%s11104_s1 + $0x504] sm:$0xf0]  ;;  %v5830_v27 = vor.u32 %v8378_v17, %v8373_v43  ;;  %v8558_v63 = vld [vmem:[%s11104_s1 + $0x670] sm:$0xf]  ;;  %4119 = vmatpush.bf16.msra.mxu2 %v5910_v7  ;;  %v5894_v42 = vor.u32 %v8391_v23, %v8386_v31  ;;  %v11158_v54 = vor.u32 %v8401_v28, %v8396_v50  ;;  %v11162_v50 = vor.u32 %v8437_v32, %v8432_v51 }
 0x13b   :  { %v8540_v9 = vld [vmem:[%s11104_s1 + $0x580] sm:$0xf]  ;;  %11149 = vst [vmem:[#allocation13_spill] sm:$0xff] %v8542_v62  ;;  %v8553_v24 = vld [vmem:[%s11104_s1 + $0x584] sm:$0xf0]  ;;  %4083 = vmatmul.bf16.vlgmr.msrb.gmra.mxu3 %v8542_v62 }
 0x13c   :  { %v8563_v13 = vld [vmem:[%s11104_s1 + $0x674] sm:$0xf0]  ;;  %v8568_v47 = vld [vmem:[%s11103_s0 + $0x60] sm:$0xff]  ;;  %v8581_v14 = vld [vmem:[%s11104_s1 + $0x6f0] sm:$0xf]  ;;  %4133 = vmatpush.bf16.msra.mxu3 %v5974_v60  ;;  %4092 = vmatpush.bf16.msra.mxu0 %v5774_v59  ;;  %v125_v60 = vunpack.c.l.bf16 %v8508_v18 }
 0x13d   :  { %11150 = vst [vmem:[#allocation14_spill] sm:$0xff] %v8568_v47  ;;  %v8586_v61 = vld [vmem:[%s11104_s1 + $0x6f4] sm:$0xf0]  ;;  %v8591_v3 = vld [vmem:[%s11104_s1 + $0x770] sm:$0xf]  ;;  %v8596_v43 = vld [vmem:[%s11103_s0 + $0xa0] sm:$0xff]  ;;  %4106 = vmatpush.bf16.msra.mxu1 %v5838_v4 }
 0x13e   :  { %11151 = vst [vmem:[#allocation15_spill] sm:$0xff] %v8596_v43  ;;  %v8601_v17 = vld [vmem:[%s11103_s0 + $0xe0] sm:$0xff]  ;;  %v8615_v31 = vld [vmem:[%s11104_s1 + $0x774] sm:$0xf0]  ;;  %v8620_v23 = vld [vmem:[%s11104_s1 + $0x7f0] sm:$0xf]  ;;  %4120 = vmatpush.bf16.msra.mxu2 %v5902_v10  ;;  %v141_v10 = vunpack.c.l.bf16 %v8568_v47  ;;  %v157_v22 = vunpack.c.l.bf16 %v8596_v43 }
 0x13f   :  { %11152 = vst [vmem:[#allocation16_spill] sm:$0xff] %v8601_v17  ;;  %v8625_v37 = vld [vmem:[%s11104_s1 + $0x7f4] sm:$0xf0]  ;;  %v8636_v53 = vld [vmem:[%s11103_s0 + $0x120] sm:$0xff]  ;;  %v173_v39 = vunpack.c.l.bf16 %v8601_v17  ;;  %v357_v52 = vrot.slane %v125_v60, 4 }
 0x140   :  { %11153 = vst [vmem:[#allocation17_spill] sm:$0xff] %v8620_v23  ;;  %v8641_v57 = vld [vmem:[%s11103_s0 + $0x160] sm:$0xff]  ;;  %v189_v1 = vunpack.c.l.bf16 %v8636_v53  ;;  %4134 = vmatpush.bf16.msra.mxu3 %v5966_v29  ;;  %4093 = vmatpush.bf16.msra.mxu0 %v5766_v8  ;;  %v453_v17 = vrot.slane %v141_v10, 4 }
 0x141   :  { %11154 = vst [vmem:[#allocation18_spill] sm:$0xff] %v8636_v53  ;;  %v8646_v7 = vld [vmem:[%s11103_s0 + $0x1a0] sm:$0xff]  ;;  %v205_v30 = vunpack.c.l.bf16 %v8641_v57  ;;  %4107 = vmatpush.bf16.msra.mxu1 %v5830_v27  ;;  %v549_v53 = vrot.slane %v157_v22, 4  ;;  %v358_v43 = vadd.f32 %v357_v52, %v125_v60  ;;  %v11159_v27 = vor.u32 %v8411_v16, %v8406_v15 }
 0x142   :  { %11155 = vst [vmem:[#allocation19_spill] sm:$0xff] %v8641_v57  ;;  %v8660_v21 = vld [vmem:[%s11103_s0 + $0x1e0] sm:$0xff]  ;;  %v221_v5 = vunpack.c.l.bf16 %v8646_v7  ;;  %4121 = vmatpush.bf16.msra.mxu2 %v5894_v42  ;;  %v645_v57 = vrot.slane %v173_v39, 4  ;;  %v741_v29 = vrot.slane %v189_v1, 4  ;;  %v11161_v52 = vor.u32 %v8421_v38, %v8416_v46 }
 0x143   :  { %11156 = vst [vmem:[#allocation20_spill] sm:$0xff] %v8646_v7  ;;  %v8665_v4 = vld [vmem:[%s11103_s0 + $0x220] sm:$0xff]  ;;  %v237_v19 = vunpack.c.l.bf16 %v8660_v21  ;;  %v837_v8 = vrot.slane %v205_v30, 4  ;;  %v454_v7 = vadd.f32 %v453_v17, %v141_v10  ;;  %v550_v55 = vadd.f32 %v549_v53, %v157_v22 }
 0x144   :  { %11157 = vst [vmem:[#allocation21_spill] sm:$0xff] %v8660_v21  ;;  %v8670_v59 = vld [vmem:[%s11103_s0 + $0x260] sm:$0xff]  ;;  %v933_v47 = vrot.slane %v221_v5, 4  ;;  %4135 = vmatpush.bf16.msra.mxu3 %v11158_v54  ;;  %4094 = vmatpush.bf16.msra.mxu0 %v11159_v27  ;;  %v646_v62 = vadd.f32 %v645_v57, %v173_v39  ;;  %v742_v49 = vadd.f32 %v741_v29, %v189_v1  ;;  %v11160_v42 = vunpack.c.l.bf16 %v8665_v4 }
 0x145   :  { %v8681_v45 = vld [vmem:[%s11103_s0 + $0x2a0] sm:$0xff]  ;;  %v1029_v21 = vrot.slane %v237_v19, 4  ;;  %4108 = vmatpush.bf16.msra.mxu1 %v11161_v52  ;;  %v359_v17 = vrot.slane %v358_v43, 2  ;;  %v455_v60 = vrot.slane %v454_v7, 2  ;;  %v838_v10 = vadd.f32 %v837_v8, %v205_v30 }
 0x146   :  { %v8686_v25 = vld [vmem:[%s11103_s0 + $0x2e0] sm:$0xff]  ;;  %v1125_v18 = vrot.slane %v11160_v42, 4  ;;  %v934_v23 = vadd.f32 %v933_v47, %v221_v5  ;;  %4122 = vmatpush.bf16.msra.mxu2 %v11162_v50  ;;  %v551_v28 = vrot.slane %v550_v55, 2  ;;  %v647_v15 = vrot.slane %v646_v62, 2 }
 0x147   :  { %v743_v16 = vrot.slane %v742_v49, 2  ;;  %v1030_v54 = vadd.f32 %v1029_v21, %v237_v19  ;;  %v360_v39 = vadd.f32 %v359_v17, %v358_v43  ;;  %v456_v1 = vadd.f32 %v455_v60, %v454_v7 }
 0x148   :  { %v839_v22 = vrot.slane %v838_v10, 2  ;;  %v935_v53 = vrot.slane %v934_v23, 2  ;;  %v11163_v46 = vor.u32 %v8447_v56, %v8442_v41  ;;  %v11164_v38 = vor.u32 %v8457_v34, %v8452_v58 }
 0x149   :  { %v552_v47 = vadd.f32 %v551_v28, %v550_v55  ;;  %v648_v5 = vadd.f32 %v647_v15, %v646_v62  ;;  %v744_v51 = vadd.f32 %v743_v16, %v742_v49  ;;  %v1031_v32 = vrot.slane %v1030_v54, 2 }
 0x14a   :  { %4136 = vmatpush.bf16.msra.mxu3 %v11163_v46  ;;  %4095 = vmatpush.bf16.msra.mxu0 %v11164_v38  ;;  %v11165_v57 = vor.u32 %v8467_v20, %v8462_v40  ;;  %v361_v19 = vrot.slane %v360_v39, 1  ;;  %v457_v43 = vrot.slane %v456_v1, 1  ;;  %v840_v21 = vadd.f32 %v839_v22, %v838_v10 }
 0x14b   :  { %v936_v7 = vadd.f32 %v935_v53, %v934_v23  ;;  %v11166_v41 = vor.u32 %v8483_v0, %v8478_v6  ;;  %v553_v56 = vrot.slane %v552_v47, 1  ;;  %v649_v30 = vrot.slane %v648_v5, 1  ;;  %v11182_v53 = vld [vmem:[#allocation17_spill] sm:$0xff] }
 0x14c   :  { %4109 = vmatpush.bf16.msra.mxu1 %v11165_v57  ;;  %v745_v58 = vrot.slane %v744_v51, 1  ;;  %v1032_v34 = vadd.f32 %v1031_v32, %v1030_v54  ;;  %v362_v55 = vadd.f32 %v361_v19, %v360_v39  ;;  %v458_v62 = vadd.f32 %v457_v43, %v456_v1 }
 0x14d   :  { %4123 = vmatpush.bf16.msra.mxu2 %v11166_v41  ;;  %v841_v49 = vrot.slane %v840_v21, 1  ;;  %v937_v29 = vrot.slane %v936_v7, 1  ;;  %v11167_v40 = vor.u32 %v8493_v48, %v8488_v26  ;;  %v11168_v20 = vor.u32 %v8503_v44, %v8498_v36 }
 0x14e   :  { %v554_v23 = vadd.f32 %v553_v56, %v552_v47  ;;  %v650_v8 = vadd.f32 %v649_v30, %v648_v5  ;;  %v746_v6 = vadd.f32 %v745_v58, %v744_v51  ;;  %v1033_v0 = vrot.slane %v1032_v34, 1 }
 0x14f   :  { %4137 = vmatpush.bf16.msra.mxu3 %v11167_v40  ;;  %4096 = vmatpush.bf16.msra.mxu0 %v11168_v20  ;;  %v11169_v27 = vor.u32 %v8525_v11, %v8520_v2  ;;  %v11170_v42 = vor.u32 %v8563_v13, %v8558_v63  ;;  %v842_v52 = vadd.f32 %v841_v49, %v840_v21  ;;  %v11171_v26 = vunpack.c.l.bf16 %v8665_v4 }
 0x150   :  { %v938_v17 = vadd.f32 %v937_v29, %v936_v7  ;;  %v11172_v36 = vunpack.c.l.bf16 %v8670_v59  ;;  %v11173_v60 = vor.u32 %v8535_v12, %v8530_v35  ;;  %v11174_v2 = vor.u32 %v8586_v61, %v8581_v14 }
 0x151   :  { %4110 = vmatpush.bf16.msra.mxu1 %v11169_v27  ;;  %v1126_v48 = vadd.f32 %v1125_v18, %v11171_v26  ;;  %v1034_v11 = vadd.f32 %v1033_v0, %v1032_v34  ;;  %v11175_v63 = vunpack.c.l.bf16 %v8681_v45  ;;  %v11176_v10 = vunpack.c.l.bf16 %v8686_v25  ;;  %v8778_v26 = vld [vmem:[%s11103_s0 + $0x28] sm:$0xff] }
 0x152   :  { %v1221_v44 = vrot.slane %v11172_v36, 4  ;;  %4124 = vmatpush.bf16.msra.mxu2 %v11173_v60  ;;  %v1476_v18 = vmul.f32 %v7595_v33, %v362_v55  ;;  %v11177_v28 = vor.u32 %v8615_v31, %v8591_v3  ;;  %v11178_v35 = vmov %v11172_v36 }
 0x153   :  { %4145 = vmatpush.bf16.msrb.mxu0 %v11170_v42  ;;  %v1317_v13 = vrot.slane %v11175_v63, 4  ;;  %v1413_v50 = vrot.slane %v11176_v10, 4  ;;  %v1127_v15 = vrot.slane %v1126_v48, 2  ;;  %v1492_v14 = vmul.f32 %v7595_v33, %v458_v62 }
 0x154   :  { %v1222_v12 = vadd.f32 %v1221_v44, %v11178_v35  ;;  %v1508_v61 = vmul.f32 %v7595_v33, %v554_v23  ;;  %v11179_v16 = vor.u32 %v8553_v24, %v8540_v9  ;;  %v11180_v54 = vmov %v11175_v63 }
 0x155   :  { %4159 = vmatpush.bf16.msrb.mxu1 %v11174_v2  ;;  %v1318_v39 = vadd.f32 %v1317_v13, %v11180_v54  ;;  %v11181_v1 = vmov %v11176_v10  ;;  %v1524_v3 = vmul.f32 %v7595_v33, %v650_v8  ;;  %v1540_v31 = vmul.f32 %v7595_v33, %v746_v6  ;;  %v8784_v2 = vld [vmem:[%s11103_s0 + $0x68] sm:$0xff] }
 0x156   :  { %4173 = vmatpush.bf16.msrb.mxu2 %v11177_v28  ;;  %4138 = vmatpush.bf16.msra.mxu3 %v11179_v16  ;;  %v1414_v22 = vadd.f32 %v1413_v50, %v11181_v1  ;;  %v11183_v46 = vor.u32 %v8625_v37, %v11182_v53  ;;  %v1128_v38 = vadd.f32 %v1127_v15, %v1126_v48  ;;  %v1223_v47 = vrot.slane %v1222_v12, 2  ;;  %v8792_v50 = vld [vmem:[%s11103_s0 + $0xa8] sm:$0xff] }
 0x157   :  { %v1556_v5 = vmul.f32 %v7595_v33, %v842_v52  ;;  %v1572_v9 = vmul.f32 %v7595_v33, %v938_v17  ;;  %v1319_v24 = vrot.slane %v1318_v39, 2  ;;  %v1588_v32 = vmul.f32 %v7595_v33, %v1034_v11  ;;  %v8815_v1 = vld [vmem:[%s11103_s0 + $0x1a8] sm:$0xff] }
 0x158   :  { %v1415_v51 = vrot.slane %v1414_v22, 2  ;;  %v1668_v57 = vpack.c.bf16 %v1476_v18, %v1476_v18  ;;  %v1129_v19 = vrot.slane %v1128_v38, 1  ;;  %v1224_v43 = vadd.f32 %v1223_v47, %v1222_v12  ;;  %v8797_v18 = vld [vmem:[%s11103_s0 + $0xe8] sm:$0xff] }
 0x159   :  { %v1684_v21 = vpack.c.bf16 %v1492_v14, %v1492_v14  ;;  %v1700_v7 = vpack.c.bf16 %v1508_v61, %v1508_v61  ;;  %v1320_v41 = vadd.f32 %v1319_v24, %v1318_v39  ;;  %v1716_v30 = vpack.c.bf16 %v1524_v3, %v1524_v3  ;;  %v8803_v12 = vld [vmem:[%s11103_s0 + $0x128] sm:$0xff] }
 0x15a   :  { %4187 = vmatpush.bf16.msrb.mxu3 %v11183_v46  ;;  %v1416_v56 = vadd.f32 %v1415_v51, %v1414_v22  ;;  %v1732_v37 = vpack.c.bf16 %v1540_v31, %v1540_v31  ;;  %v1130_v58 = vadd.f32 %v1129_v19, %v1128_v38  ;;  %v1225_v34 = vrot.slane %v1224_v43, 1  ;;  %v8810_v39 = vld [vmem:[%s11103_s0 + $0x168] sm:$0xff] }
 0x15b   :  { %v1748_v55 = vpack.c.bf16 %v1556_v5, %v1556_v5  ;;  %v1764_v62 = vpack.c.bf16 %v1572_v9, %v1572_v9  ;;  %v1321_v49 = vrot.slane %v1320_v41, 1  ;;  %v1780_v40 = vpack.c.bf16 %v1588_v32, %v1588_v32  ;;  %v8822_v53 = vld [vmem:[%s11103_s0 + $0x1e8] sm:$0xff] }
 0x15c   :  { %v1417_v29 = vrot.slane %v1416_v56, 1  ;;  %v2314_v20 = vunpack.c.l.b16 %v1668_v57  ;;  %v1226_v23 = vadd.f32 %v1225_v34, %v1224_v43  ;;  %v1604_v8 = vmul.f32 %v7595_v33, %v1130_v58  ;;  %v8827_v46 = vld [vmem:[%s11103_s0 + $0x228] sm:$0xff] }
 0x15d   :  { %v2330_v6 = vunpack.c.l.b16 %v1684_v21  ;;  %v2346_v0 = vunpack.c.l.b16 %v1700_v7  ;;  %v1322_v27 = vadd.f32 %v1321_v49, %v1320_v41  ;;  %v2362_v52 = vunpack.c.l.b16 %v1716_v30  ;;  %v8835_v51 = vld [vmem:[%s11103_s0 + $0x268] sm:$0xff] }
 0x15e   :  { %v1418_v42 = vadd.f32 %v1417_v29, %v1416_v56  ;;  %v2378_v17 = vunpack.c.l.b16 %v1732_v37  ;;  %v1620_v48 = vmul.f32 %v7595_v33, %v1226_v23  ;;  %v1796_v36 = vpack.c.bf16 %v1604_v8, %v1604_v8  ;;  %v8840_v32 = vld [vmem:[%s11103_s0 + $0x2a8] sm:$0xff] }
 0x15f   :  { %v2394_v44 = vunpack.c.l.b16 %v1748_v55  ;;  %v2410_v60 = vunpack.c.l.b16 %v1764_v62  ;;  %v1636_v11 = vmul.f32 %v7595_v33, %v1322_v27  ;;  %v2426_v13 = vunpack.c.l.b16 %v1780_v40  ;;  %v8845_v57 = vld [vmem:[%s11103_s0 + $0x2e8] sm:$0xff] }
 0x160   :  { %v1652_v63 = vmul.f32 %v7595_v33, %v1418_v42  ;;  %v2561_v10 = vsel %vm2498_vm1, %v2330_v6, %v2314_v20  ;;  %v1812_v28 = vpack.c.bf16 %v1620_v48, %v1620_v48  ;;  %v2442_v15 = vunpack.c.l.b16 %v1796_v36 }
 0x161   :  { %v2562_v35 = vsel %vm2500_vm2, %v2346_v0, %v2561_v10  ;;  %v127_v14 = vunpack.c.l.bf16 %v8778_v26  ;;  %v1828_v61 = vpack.c.bf16 %v1636_v11, %v1636_v11  ;;  %v143_v22 = vunpack.c.l.bf16 %v8784_v2 }
 0x162   :  { %v1844_v16 = vpack.c.bf16 %v1652_v63, %v1652_v63  ;;  %v2563_v54 = vsel %vm2502_vm3, %v2362_v52, %v2562_v35  ;;  %v2458_v3 = vunpack.c.l.b16 %v1812_v28  ;;  %v159_v38 = vunpack.c.l.bf16 %v8792_v50 }
 0x163   :  { %v2564_v31 = vsel %vm2504_vm4, %v2378_v17, %v2563_v54  ;;  %v175_v47 = vunpack.c.l.bf16 %v8797_v18  ;;  %v2474_v5 = vunpack.c.l.b16 %v1828_v61  ;;  %v191_v19 = vunpack.c.l.bf16 %v8803_v12 }
 0x164   :  { %v2490_v9 = vunpack.c.l.b16 %v1844_v16  ;;  %v2565_v24 = vsel %vm2506_vm5, %v2394_v44, %v2564_v31  ;;  %v2641_v21 = vsel %vm2498_vm1, %v2458_v3, %v2442_v15  ;;  %v207_v7 = vunpack.c.l.bf16 %v8810_v39 }
 0x165   :  { %v2566_v43 = vsel %vm2508_vm6, %v2410_v60, %v2565_v24  ;;  %v223_v41 = vunpack.c.l.bf16 %v8815_v1  ;;  %v2642_v30 = vsel %vm2500_vm2, %v2474_v5, %v2641_v21  ;;  %v239_v37 = vunpack.c.l.bf16 %v8822_v53 }
 0x166   :  { %v2567_v56 = vsel %vm2510_vm7, %v2426_v13, %v2566_v43  ;;  %v255_v58 = vunpack.c.l.bf16 %v8827_v46  ;;  %v2643_v34 = vsel %vm2502_vm3, %v2490_v9, %v2642_v30  ;;  %v271_v55 = vunpack.c.l.bf16 %v8835_v51 }
 0x167   :  { %v287_v62 = vunpack.c.l.bf16 %v8840_v32  ;;  %v303_v49 = vunpack.c.l.bf16 %v8845_v57  ;;  %v8860_v29 = vpack.c.b16 %v2643_v34, %v2567_v56  ;;  %v369_v40 = vrot.slane %v127_v14, 4 }
 0x168   :  { %v465_v20 = vrot.slane %v143_v22, 4  ;;  %v561_v23 = vrot.slane %v159_v38, 4  ;;  %v657_v8 = vrot.slane %v175_v47, 4  ;;  %v753_v6 = vrot.slane %v191_v19, 4 }
 0x169   :  { %11184 = vst [vmem:[#allocation17_spill] sm:$0xff] %v8860_v29  ;;  %v849_v0 = vrot.slane %v207_v7, 4  ;;  %v945_v27 = vrot.slane %v223_v41, 4  ;;  %4097 = vmatmul.bf16.vlgmr.msra.gmra.mxu0 %v8860_v29  ;;  %v370_v42 = vadd.f32 %v369_v40, %v127_v14  ;;  %v1041_v48 = vrot.slane %v239_v37, 4 }
 0x16a   :  { %v466_v52 = vadd.f32 %v465_v20, %v143_v22  ;;  %v562_v17 = vadd.f32 %v561_v23, %v159_v38  ;;  %v658_v36 = vadd.f32 %v657_v8, %v175_v47  ;;  %v754_v44 = vadd.f32 %v753_v6, %v191_v19 }
 0x16b   :  { %v850_v60 = vadd.f32 %v849_v0, %v207_v7  ;;  %v946_v11 = vadd.f32 %v945_v27, %v223_v41  ;;  %v371_v63 = vrot.slane %v370_v42, 2  ;;  %v1042_v28 = vadd.f32 %v1041_v48, %v239_v37 }
 0x16c   :  { %v467_v13 = vrot.slane %v466_v52, 2  ;;  %v563_v10 = vrot.slane %v562_v17, 2  ;;  %v659_v15 = vrot.slane %v658_v36, 2  ;;  %v755_v35 = vrot.slane %v754_v44, 2 }
 0x16d   :  { %v851_v61 = vrot.slane %v850_v60, 2  ;;  %v947_v16 = vrot.slane %v946_v11, 2  ;;  %v372_v54 = vadd.f32 %v371_v63, %v370_v42  ;;  %v1043_v5 = vrot.slane %v1042_v28, 2 }
 0x16e   :  { %v468_v3 = vadd.f32 %v467_v13, %v466_v52  ;;  %v564_v31 = vadd.f32 %v563_v10, %v562_v17  ;;  %v660_v14 = vadd.f32 %v659_v15, %v658_v36  ;;  %v756_v22 = vadd.f32 %v755_v35, %v754_v44 }
 0x16f   :  { %v852_v38 = vadd.f32 %v851_v61, %v850_v60  ;;  %v948_v9 = vadd.f32 %v947_v16, %v946_v11  ;;  %v373_v47 = vrot.slane %v372_v54, 1  ;;  %v1044_v43 = vadd.f32 %v1043_v5, %v1042_v28 }
 0x170   :  { %v469_v24 = vrot.slane %v468_v3, 1  ;;  %v565_v19 = vrot.slane %v564_v31, 1  ;;  %v661_v21 = vrot.slane %v660_v14, 1  ;;  %v757_v7 = vrot.slane %v756_v22, 1 }
 0x171   :  { %v853_v41 = vrot.slane %v852_v38, 1  ;;  %v949_v56 = vrot.slane %v948_v9, 1  ;;  %v374_v30 = vadd.f32 %v373_v47, %v372_v54  ;;  %v1045_v40 = vrot.slane %v1044_v43, 1 }
 0x172   :  { %v470_v37 = vadd.f32 %v469_v24, %v468_v3  ;;  %v566_v34 = vadd.f32 %v565_v19, %v564_v31  ;;  %v662_v20 = vadd.f32 %v661_v21, %v660_v14  ;;  %v758_v23 = vadd.f32 %v757_v7, %v756_v22 }
 0x173   :  { %v854_v8 = vadd.f32 %v853_v41, %v852_v38  ;;  %v950_v6 = vadd.f32 %v949_v56, %v948_v9  ;;  %v1046_v0 = vadd.f32 %v1045_v40, %v1044_v43  ;;  %v1137_v27 = vrot.slane %v255_v58, 4 }
 0x174   :  { %v1233_v42 = vrot.slane %v271_v55, 4  ;;  %v1329_v52 = vrot.slane %v287_v62, 4  ;;  %v1425_v17 = vrot.slane %v303_v49, 4  ;;  %v1478_v48 = vmul.f32 %v7595_v33, %v374_v30 }
 0x175   :  { %v1494_v36 = vmul.f32 %v7595_v33, %v470_v37  ;;  %v1510_v44 = vmul.f32 %v7595_v33, %v566_v34  ;;  %v1138_v60 = vadd.f32 %v1137_v27, %v255_v58  ;;  %v1526_v13 = vmul.f32 %v7595_v33, %v662_v20 }
 0x176   :  { %v1234_v11 = vadd.f32 %v1233_v42, %v271_v55  ;;  %v1330_v63 = vadd.f32 %v1329_v52, %v287_v62  ;;  %v1426_v10 = vadd.f32 %v1425_v17, %v303_v49  ;;  %v1542_v28 = vmul.f32 %v7595_v33, %v758_v23 }
 0x177   :  { %v1558_v15 = vmul.f32 %v7595_v33, %v854_v8  ;;  %v1574_v35 = vmul.f32 %v7595_v33, %v950_v6  ;;  %v1139_v61 = vrot.slane %v1138_v60, 2  ;;  %v1590_v3 = vmul.f32 %v7595_v33, %v1046_v0 }
 0x178   :  { %v1235_v16 = vrot.slane %v1234_v11, 2  ;;  %v1331_v54 = vrot.slane %v1330_v63, 2  ;;  %v1427_v31 = vrot.slane %v1426_v10, 2  ;;  %v1670_v5 = vpack.c.bf16 %v1478_v48, %v1478_v48 }
 0x179   :  { %v1686_v14 = vpack.c.bf16 %v1494_v36, %v1494_v36  ;;  %v1702_v58 = vpack.c.bf16 %v1510_v44, %v1510_v44  ;;  %v1140_v55 = vadd.f32 %v1139_v61, %v1138_v60  ;;  %v1718_v38 = vpack.c.bf16 %v1526_v13, %v1526_v13  ;;  %v11185_v60 = vld [vmem:[#allocation12_spill] sm:$0xff] }
 0x17a   :  { %v1236_v62 = vadd.f32 %v1235_v16, %v1234_v11  ;;  %v1332_v22 = vadd.f32 %v1331_v54, %v1330_v63  ;;  %v1428_v49 = vadd.f32 %v1427_v31, %v1426_v10  ;;  %v1734_v9 = vpack.c.bf16 %v1542_v28, %v1542_v28  ;;  %v11186_v63 = vld [vmem:[#allocation14_spill] sm:$0xff]  ;;  %v11187_v54 = vld [vmem:[#allocation15_spill] sm:$0xff]  ;;  %v11188_v31 = vld [vmem:[#allocation16_spill] sm:$0xff] }
 0x17b   :  { %v1750_v47 = vpack.c.bf16 %v1558_v15, %v1558_v15  ;;  %v1766_v24 = vpack.c.bf16 %v1574_v35, %v1574_v35  ;;  %v1141_v19 = vrot.slane %v1140_v55, 1  ;;  %v1782_v7 = vpack.c.bf16 %v1590_v3, %v1590_v3 }
 0x17c   :  { %v1237_v43 = vrot.slane %v1236_v62, 1  ;;  %v1333_v21 = vrot.slane %v1332_v22, 1  ;;  %v1429_v41 = vrot.slane %v1428_v49, 1  ;;  %v2316_v56 = vunpack.c.l.b16 %v1670_v5 }
 0x17d   :  { %v2332_v30 = vunpack.c.l.b16 %v1686_v14  ;;  %v2348_v37 = vunpack.c.l.b16 %v1702_v58  ;;  %v1142_v34 = vadd.f32 %v1141_v19, %v1140_v55  ;;  %v2364_v23 = vunpack.c.l.b16 %v1718_v38 }
 0x17e   :  { %v1238_v40 = vadd.f32 %v1237_v43, %v1236_v62  ;;  %v1334_v20 = vadd.f32 %v1333_v21, %v1332_v22  ;;  %v1430_v8 = vadd.f32 %v1429_v41, %v1428_v49  ;;  %v2380_v6 = vunpack.c.l.b16 %v1734_v9  ;;  %v11189_v49 = vld [vmem:[#allocation18_spill] sm:$0xff]  ;;  %v11191_v21 = vld [vmem:[#allocation20_spill] sm:$0xff]  ;;  %v11192_v41 = vld [vmem:[#allocation21_spill] sm:$0xff] }
 0x17f   :  { %v2396_v0 = vunpack.c.l.b16 %v1750_v47  ;;  %v2412_v27 = vunpack.c.l.b16 %v1766_v24  ;;  %v1606_v42 = vmul.f32 %v7595_v33, %v1142_v34  ;;  %v2428_v48 = vunpack.c.l.b16 %v1782_v7  ;;  %v11190_v47 = vld [vmem:[#allocation19_spill] sm:$0xff] }
 0x180   :  { %v1622_v52 = vmul.f32 %v7595_v33, %v1238_v40  ;;  %v1638_v17 = vmul.f32 %v7595_v33, %v1334_v20  ;;  %v1654_v36 = vmul.f32 %v7595_v33, %v1430_v8  ;;  %v2575_v44 = vsel %vm2498_vm1, %v2332_v30, %v2316_v56 }
 0x181   :  { %v126_v11 = vunpack.c.h.bf16 %v11185_v60  ;;  %v142_v13 = vunpack.c.h.bf16 %v11186_v63  ;;  %v1798_v10 = vpack.c.bf16 %v1606_v42, %v1606_v42  ;;  %v2576_v35 = vsel %vm2500_vm2, %v2348_v37, %v2575_v44 }
 0x182   :  { %v1814_v28 = vpack.c.bf16 %v1622_v52, %v1622_v52  ;;  %v1830_v15 = vpack.c.bf16 %v1638_v17, %v1638_v17  ;;  %v1846_v61 = vpack.c.bf16 %v1654_v36, %v1654_v36  ;;  %v2577_v16 = vsel %vm2502_vm3, %v2364_v23, %v2576_v35 }
 0x183   :  { %v158_v3 = vunpack.c.h.bf16 %v11187_v54  ;;  %v174_v5 = vunpack.c.h.bf16 %v11188_v31  ;;  %v2444_v14 = vunpack.c.l.b16 %v1798_v10  ;;  %v2578_v62 = vsel %vm2504_vm4, %v2380_v6, %v2577_v16 }
 0x184   :  { %v2460_v58 = vunpack.c.l.b16 %v1814_v28  ;;  %v2476_v55 = vunpack.c.l.b16 %v1830_v15  ;;  %v2492_v22 = vunpack.c.l.b16 %v1846_v61  ;;  %v2579_v38 = vsel %vm2506_vm5, %v2396_v0, %v2578_v62 }
 0x185   :  { %v190_v9 = vunpack.c.h.bf16 %v11189_v49  ;;  %v206_v24 = vunpack.c.h.bf16 %v11190_v47  ;;  %v2580_v19 = vsel %vm2508_vm6, %v2412_v27, %v2579_v38  ;;  %v222_v7 = vunpack.c.h.bf16 %v11191_v21 }
 0x186   :  { %v2647_v43 = vsel %vm2498_vm1, %v2460_v58, %v2444_v14  ;;  %v238_v56 = vunpack.c.h.bf16 %v11192_v41  ;;  %v2581_v30 = vsel %vm2510_vm7, %v2428_v48, %v2580_v19  ;;  %v254_v34 = vunpack.c.h.bf16 %v8665_v4 }
 0x187   :  { %v2648_v37 = vsel %vm2500_vm2, %v2476_v55, %v2647_v43  ;;  %v270_v40 = vunpack.c.h.bf16 %v8670_v59  ;;  %v286_v23 = vunpack.c.h.bf16 %v8681_v45  ;;  %v302_v8 = vunpack.c.h.bf16 %v8686_v25 }
 0x188   :  { %v2649_v20 = vsel %vm2502_vm3, %v2492_v22, %v2648_v37  ;;  %v363_v6 = vrot.slane %v126_v11, 4  ;;  %v459_v27 = vrot.slane %v142_v13, 4  ;;  %v555_v42 = vrot.slane %v158_v3, 4 }
 0x189   :  { %v8897_v0 = vpack.c.b16 %v2649_v20, %v2581_v30  ;;  %v651_v52 = vrot.slane %v174_v5, 4  ;;  %v747_v48 = vrot.slane %v190_v9, 4  ;;  %v843_v36 = vrot.slane %v206_v24, 4 }
 0x18a   :  { %v364_v17 = vadd.f32 %v363_v6, %v126_v11  ;;  %v939_v44 = vrot.slane %v222_v7, 4  ;;  %v460_v4 = vadd.f32 %v459_v27, %v142_v13  ;;  %v556_v59 = vadd.f32 %v555_v42, %v158_v3 }
 0x18b   :  { %11193 = vst [vmem:[#allocation12_spill] sm:$0xff] %v8897_v0  ;;  %4125 = vmatmul.bf16.vlgmr.msra.gmra.mxu2 %v8897_v0  ;;  %v652_v60 = vadd.f32 %v651_v52, %v174_v5  ;;  %v1035_v63 = vrot.slane %v238_v56, 4  ;;  %v748_v45 = vadd.f32 %v747_v48, %v190_v9  ;;  %v844_v28 = vadd.f32 %v843_v36, %v206_v24 }
 0x18c   :  { %v365_v10 = vrot.slane %v364_v17, 2  ;;  %v940_v25 = vadd.f32 %v939_v44, %v222_v7  ;;  %v461_v15 = vrot.slane %v460_v4, 2  ;;  %v557_v35 = vrot.slane %v556_v59, 2 }
 0x18d   :  { %v653_v61 = vrot.slane %v652_v60, 2  ;;  %v1036_v16 = vadd.f32 %v1035_v63, %v238_v56  ;;  %v749_v31 = vrot.slane %v748_v45, 2  ;;  %v845_v11 = vrot.slane %v844_v28, 2 }
 0x18e   :  { %v366_v54 = vadd.f32 %v365_v10, %v364_v17  ;;  %v941_v14 = vrot.slane %v940_v25, 2  ;;  %v462_v58 = vadd.f32 %v461_v15, %v460_v4  ;;  %v558_v55 = vadd.f32 %v557_v35, %v556_v59 }
 0x18f   :  { %v654_v62 = vadd.f32 %v653_v61, %v652_v60  ;;  %v1037_v22 = vrot.slane %v1036_v16, 2  ;;  %v750_v3 = vadd.f32 %v749_v31, %v748_v45  ;;  %v846_v5 = vadd.f32 %v845_v11, %v844_v28 }
 0x190   :  { %v367_v13 = vrot.slane %v366_v54, 1  ;;  %v942_v38 = vadd.f32 %v941_v14, %v940_v25  ;;  %v463_v49 = vrot.slane %v462_v58, 1  ;;  %v559_v9 = vrot.slane %v558_v55, 1 }
 0x191   :  { %v655_v47 = vrot.slane %v654_v62, 1  ;;  %v1038_v24 = vadd.f32 %v1037_v22, %v1036_v16  ;;  %v751_v43 = vrot.slane %v750_v3, 1  ;;  %v847_v21 = vrot.slane %v846_v5, 1 }
 0x192   :  { %v368_v19 = vadd.f32 %v367_v13, %v366_v54  ;;  %v943_v7 = vrot.slane %v942_v38, 1  ;;  %v464_v41 = vadd.f32 %v463_v49, %v462_v58  ;;  %v560_v56 = vadd.f32 %v559_v9, %v558_v55 }
 0x193   :  { %v656_v30 = vadd.f32 %v655_v47, %v654_v62  ;;  %v1039_v37 = vrot.slane %v1038_v24, 1  ;;  %v752_v20 = vadd.f32 %v751_v43, %v750_v3  ;;  %v848_v6 = vadd.f32 %v847_v21, %v846_v5 }
 0x194   :  { %v944_v27 = vadd.f32 %v943_v7, %v942_v38  ;;  %v1131_v42 = vrot.slane %v254_v34, 4  ;;  %v1227_v17 = vrot.slane %v270_v40, 4  ;;  %v1323_v48 = vrot.slane %v286_v23, 4 }
 0x195   :  { %v1040_v52 = vadd.f32 %v1039_v37, %v1038_v24  ;;  %v1419_v36 = vrot.slane %v302_v8, 4  ;;  %v1477_v4 = vmul.f32 %v7595_v33, %v368_v19  ;;  %v1493_v59 = vmul.f32 %v7595_v33, %v464_v41 }
 0x196   :  { %v1132_v44 = vadd.f32 %v1131_v42, %v254_v34  ;;  %v1509_v60 = vmul.f32 %v7595_v33, %v560_v56  ;;  %v1228_v63 = vadd.f32 %v1227_v17, %v270_v40  ;;  %v1324_v10 = vadd.f32 %v1323_v48, %v286_v23 }
 0x197   :  { %v1420_v45 = vadd.f32 %v1419_v36, %v302_v8  ;;  %v1525_v28 = vmul.f32 %v7595_v33, %v656_v30  ;;  %v1541_v15 = vmul.f32 %v7595_v33, %v752_v20  ;;  %v1557_v35 = vmul.f32 %v7595_v33, %v848_v6 }
 0x198   :  { %v1133_v25 = vrot.slane %v1132_v44, 2  ;;  %v1573_v61 = vmul.f32 %v7595_v33, %v944_v27  ;;  %v1229_v16 = vrot.slane %v1228_v63, 2  ;;  %v1325_v34 = vrot.slane %v1324_v10, 2 }
 0x199   :  { %v1421_v54 = vrot.slane %v1420_v45, 2  ;;  %v1589_v31 = vmul.f32 %v7595_v33, %v1040_v52  ;;  %v1669_v14 = vpack.c.bf16 %v1477_v4, %v1477_v4  ;;  %v1685_v58 = vpack.c.bf16 %v1493_v59, %v1493_v59 }
 0x19a   :  { %v1134_v11 = vadd.f32 %v1133_v25, %v1132_v44  ;;  %v1701_v40 = vpack.c.bf16 %v1509_v60, %v1509_v60  ;;  %v1230_v23 = vadd.f32 %v1229_v16, %v1228_v63  ;;  %v1326_v8 = vadd.f32 %v1325_v34, %v1324_v10 }
 0x19b   :  { %v1422_v55 = vadd.f32 %v1421_v54, %v1420_v45  ;;  %v1717_v62 = vpack.c.bf16 %v1525_v28, %v1525_v28  ;;  %v1733_v13 = vpack.c.bf16 %v1541_v15, %v1541_v15  ;;  %v1749_v3 = vpack.c.bf16 %v1557_v35, %v1557_v35 }
 0x19c   :  { %v1135_v22 = vrot.slane %v1134_v11, 1  ;;  %v1765_v5 = vpack.c.bf16 %v1573_v61, %v1573_v61  ;;  %v1231_v38 = vrot.slane %v1230_v23, 1  ;;  %v1327_v49 = vrot.slane %v1326_v8, 1 }
 0x19d   :  { %v1423_v9 = vrot.slane %v1422_v55, 1  ;;  %v1781_v47 = vpack.c.bf16 %v1589_v31, %v1589_v31  ;;  %v2315_v19 = vunpack.c.l.b16 %v1669_v14  ;;  %v2331_v43 = vunpack.c.l.b16 %v1685_v58 }
 0x19e   :  { %v1136_v24 = vadd.f32 %v1135_v22, %v1134_v11  ;;  %v2347_v21 = vunpack.c.l.b16 %v1701_v40  ;;  %v1232_v7 = vadd.f32 %v1231_v38, %v1230_v23  ;;  %v1328_v41 = vadd.f32 %v1327_v49, %v1326_v8 }
 0x19f   :  { %v1424_v56 = vadd.f32 %v1423_v9, %v1422_v55  ;;  %v2363_v30 = vunpack.c.l.b16 %v1717_v62  ;;  %v2379_v20 = vunpack.c.l.b16 %v1733_v13  ;;  %v2395_v6 = vunpack.c.l.b16 %v1749_v3 }
 0x1a0   :  { %v1605_v37 = vmul.f32 %v7595_v33, %v1136_v24  ;;  %v2411_v27 = vunpack.c.l.b16 %v1765_v5  ;;  %v1621_v42 = vmul.f32 %v7595_v33, %v1232_v7  ;;  %v1637_v52 = vmul.f32 %v7595_v33, %v1328_v41 }
 0x1a1   :  { %v1653_v17 = vmul.f32 %v7595_v33, %v1424_v56  ;;  %v2427_v48 = vunpack.c.l.b16 %v1781_v47  ;;  %v2568_v44 = vsel %vm2498_vm1, %v2331_v43, %v2315_v19  ;;  %v128_v4 = vunpack.c.h.bf16 %v8778_v26 }
 0x1a2   :  { %v1797_v36 = vpack.c.bf16 %v1605_v37, %v1605_v37  ;;  %v144_v59 = vunpack.c.h.bf16 %v8784_v2  ;;  %v1813_v60 = vpack.c.bf16 %v1621_v42, %v1621_v42  ;;  %v1829_v63 = vpack.c.bf16 %v1637_v52, %v1637_v52 }
 0x1a3   :  { %v1845_v10 = vpack.c.bf16 %v1653_v17, %v1653_v17  ;;  %v2569_v45 = vsel %vm2500_vm2, %v2347_v21, %v2568_v44  ;;  %v160_v15 = vunpack.c.h.bf16 %v8792_v50  ;;  %v176_v35 = vunpack.c.h.bf16 %v8797_v18 }
 0x1a4   :  { %v2443_v28 = vunpack.c.l.b16 %v1797_v36  ;;  %v2570_v25 = vsel %vm2502_vm3, %v2363_v30, %v2569_v45  ;;  %v2459_v61 = vunpack.c.l.b16 %v1813_v60  ;;  %v2475_v16 = vunpack.c.l.b16 %v1829_v63 }
 0x1a5   :  { %v2491_v34 = vunpack.c.l.b16 %v1845_v10  ;;  %v2571_v54 = vsel %vm2504_vm4, %v2379_v20, %v2570_v25  ;;  %v192_v2 = vunpack.c.h.bf16 %v8803_v12  ;;  %v208_v31 = vunpack.c.h.bf16 %v8810_v39 }
 0x1a6   :  { %v2572_v26 = vsel %vm2506_vm5, %v2395_v6, %v2571_v54  ;;  %v224_v11 = vunpack.c.h.bf16 %v8815_v1  ;;  %v2644_v58 = vsel %vm2498_vm1, %v2459_v61, %v2443_v28  ;;  %v240_v50 = vunpack.c.h.bf16 %v8822_v53 }
 0x1a7   :  { %v2573_v14 = vsel %vm2508_vm6, %v2411_v27, %v2572_v26  ;;  %v256_v18 = vunpack.c.h.bf16 %v8827_v46  ;;  %v2645_v23 = vsel %vm2500_vm2, %v2475_v16, %v2644_v58  ;;  %v272_v8 = vunpack.c.h.bf16 %v8835_v51 }
 0x1a8   :  { %v2574_v40 = vsel %vm2510_vm7, %v2427_v48, %v2573_v14  ;;  %v288_v12 = vunpack.c.h.bf16 %v8840_v32  ;;  %v2646_v39 = vsel %vm2502_vm3, %v2491_v34, %v2645_v23  ;;  %v304_v1 = vunpack.c.h.bf16 %v8845_v57 }
 0x1a9   :  { %v375_v55 = vrot.slane %v128_v4, 4  ;;  %v471_v62 = vrot.slane %v144_v59, 4  ;;  %v8934_v22 = vpack.c.b16 %v2646_v39, %v2574_v40  ;;  %v567_v13 = vrot.slane %v160_v15, 4 }
 0x1aa   :  { %v663_v53 = vrot.slane %v176_v35, 4  ;;  %v759_v3 = vrot.slane %v192_v2, 4  ;;  %v855_v38 = vrot.slane %v208_v31, 4  ;;  %v951_v49 = vrot.slane %v224_v11, 4 }
 0x1ab   :  { %11194 = vst [vmem:[#allocation14_spill] sm:$0xff] %v8934_v22  ;;  %v376_v46 = vadd.f32 %v375_v55, %v128_v4  ;;  %v472_v5 = vadd.f32 %v471_v62, %v144_v59  ;;  %4111 = vmatmul.bf16.vlgmr.msra.gmra.mxu1 %v8934_v22  ;;  %v568_v51 = vadd.f32 %v567_v13, %v160_v15  ;;  %v1047_v47 = vrot.slane %v240_v50, 4 }
 0x1ac   :  { %v664_v9 = vadd.f32 %v663_v53, %v176_v35  ;;  %v760_v32 = vadd.f32 %v759_v3, %v192_v2  ;;  %v856_v57 = vadd.f32 %v855_v38, %v208_v31  ;;  %v952_v43 = vadd.f32 %v951_v49, %v224_v11 }
 0x1ad   :  { %v377_v24 = vrot.slane %v376_v46, 2  ;;  %v473_v19 = vrot.slane %v472_v5, 2  ;;  %v569_v21 = vrot.slane %v568_v51, 2  ;;  %v1048_v56 = vadd.f32 %v1047_v47, %v240_v50 }
 0x1ae   :  { %v665_v7 = vrot.slane %v664_v9, 2  ;;  %v761_v41 = vrot.slane %v760_v32, 2  ;;  %v857_v20 = vrot.slane %v856_v57, 2  ;;  %v953_v6 = vrot.slane %v952_v43, 2 }
 0x1af   :  { %v378_v30 = vadd.f32 %v377_v24, %v376_v46  ;;  %v474_v37 = vadd.f32 %v473_v19, %v472_v5  ;;  %v570_v27 = vadd.f32 %v569_v21, %v568_v51  ;;  %v1049_v17 = vrot.slane %v1048_v56, 2 }
 0x1b0   :  { %v666_v42 = vadd.f32 %v665_v7, %v664_v9  ;;  %v762_v52 = vadd.f32 %v761_v41, %v760_v32  ;;  %v858_v44 = vadd.f32 %v857_v20, %v856_v57  ;;  %v954_v4 = vadd.f32 %v953_v6, %v952_v43 }
 0x1b1   :  { %v379_v48 = vrot.slane %v378_v30, 1  ;;  %v475_v36 = vrot.slane %v474_v37, 1  ;;  %v571_v59 = vrot.slane %v570_v27, 1  ;;  %v1050_v10 = vadd.f32 %v1049_v17, %v1048_v56 }
 0x1b2   :  { %v667_v60 = vrot.slane %v666_v42, 1  ;;  %v763_v63 = vrot.slane %v762_v52, 1  ;;  %v859_v25 = vrot.slane %v858_v44, 1  ;;  %v955_v15 = vrot.slane %v954_v4, 1 }
 0x1b3   :  { %v380_v45 = vadd.f32 %v379_v48, %v378_v30  ;;  %v476_v28 = vadd.f32 %v475_v36, %v474_v37  ;;  %v572_v35 = vadd.f32 %v571_v59, %v570_v27  ;;  %v1051_v34 = vrot.slane %v1050_v10, 1  ;;  %v6045_v48 = vld [vmem:[%s11104_s1 + $0x660] sm:$0xf]  ;;  %v6845_v36 = vld [vmem:[%s11104_s1 + $0x664] sm:$0xf0] }
 0x1b4   :  { %v668_v61 = vadd.f32 %v667_v60, %v666_v42  ;;  %v764_v16 = vadd.f32 %v763_v63, %v762_v52  ;;  %v860_v54 = vadd.f32 %v859_v25, %v858_v44  ;;  %v956_v26 = vadd.f32 %v955_v15, %v954_v4  ;;  %v6109_v63 = vld [vmem:[%s11104_s1 + $0x6e0] sm:$0xf] }
 0x1b5   :  { %v1143_v2 = vrot.slane %v256_v18, 4  ;;  %v1239_v31 = vrot.slane %v272_v8, 4  ;;  %v1052_v11 = vadd.f32 %v1051_v34, %v1050_v10  ;;  %v1335_v14 = vrot.slane %v288_v12, 4  ;;  %v6861_v10 = vld [vmem:[%s11104_s1 + $0x6e4] sm:$0xf0] }
 0x1b6   :  { %v1431_v58 = vrot.slane %v304_v1, 4  ;;  %v1479_v50 = vmul.f32 %v7595_v33, %v380_v45  ;;  %v1495_v39 = vmul.f32 %v7595_v33, %v476_v28  ;;  %v1511_v55 = vmul.f32 %v7595_v33, %v572_v35  ;;  %v6173_v45 = vld [vmem:[%s11104_s1 + $0x760] sm:$0xf]  ;;  %v8973_v34 = vld [vmem:[%s11104_s1 + $0x7e4] sm:$0xf0] }
 0x1b7   :  { %v1144_v40 = vadd.f32 %v1143_v2, %v256_v18  ;;  %v1240_v23 = vadd.f32 %v1239_v31, %v272_v8  ;;  %v1336_v62 = vadd.f32 %v1335_v14, %v288_v12  ;;  %v1527_v53 = vmul.f32 %v7595_v33, %v668_v61  ;;  %v6877_v61 = vld [vmem:[%s11104_s1 + $0x764] sm:$0xf0]  ;;  %v8986_v14 = vld [vmem:[%s11104_s1 + $0x654] sm:$0xf0] }
 0x1b8   :  { %v1432_v13 = vadd.f32 %v1431_v58, %v304_v1  ;;  %v1543_v3 = vmul.f32 %v7595_v33, %v764_v16  ;;  %v1559_v38 = vmul.f32 %v7595_v33, %v860_v54  ;;  %v1575_v49 = vmul.f32 %v7595_v33, %v956_v26  ;;  %v8968_v16 = vld [vmem:[%s11104_s1 + $0x7e0] sm:$0xf]  ;;  %v8991_v58 = vld [vmem:[%s11104_s1 + $0x6d0] sm:$0xf] }
 0x1b9   :  { %v1145_v46 = vrot.slane %v1144_v40, 2  ;;  %v1241_v5 = vrot.slane %v1240_v23, 2  ;;  %v1337_v51 = vrot.slane %v1336_v62, 2  ;;  %v1591_v18 = vmul.f32 %v7595_v33, %v1052_v11  ;;  %v8981_v11 = vld [vmem:[%s11104_s1 + $0x650] sm:$0xf] }
 0x1ba   :  { %v1433_v9 = vrot.slane %v1432_v13, 2  ;;  %v1671_v8 = vpack.c.bf16 %v1479_v50, %v1479_v50  ;;  %v1687_v24 = vpack.c.bf16 %v1495_v39, %v1495_v39  ;;  %v1703_v12 = vpack.c.bf16 %v1511_v55, %v1511_v55  ;;  %v8996_v50 = vld [vmem:[%s11104_s1 + $0x6d4] sm:$0xf0] }
 0x1bb   :  { %v1146_v32 = vadd.f32 %v1145_v46, %v1144_v40  ;;  %v1242_v47 = vadd.f32 %v1241_v5, %v1240_v23  ;;  %v1338_v1 = vadd.f32 %v1337_v51, %v1336_v62  ;;  %v1719_v57 = vpack.c.bf16 %v1527_v53, %v1527_v53  ;;  %v9002_v62 = vld [vmem:[%s11104_s1 + $0x750] sm:$0xf]  ;;  %v9023_v51 = vld [vmem:[%s11104_s1 + $0x640] sm:$0xf] }
 0x1bc   :  { %v1434_v19 = vadd.f32 %v1433_v9, %v1432_v13  ;;  %v1735_v43 = vpack.c.bf16 %v1543_v3, %v1543_v3  ;;  %v1751_v41 = vpack.c.bf16 %v1559_v38, %v1559_v38  ;;  %v1767_v56 = vpack.c.bf16 %v1575_v49, %v1575_v49  ;;  %v9007_v13 = vld [vmem:[%s11104_s1 + $0x754] sm:$0xf0]  ;;  %v9012_v53 = vld [vmem:[%s11104_s1 + $0x7d0] sm:$0xf]  ;;  %v9028_v9 = vld [vmem:[%s11104_s1 + $0x644] sm:$0xf0] }
 0x1bd   :  { %v1147_v21 = vrot.slane %v1146_v32, 1  ;;  %v1243_v7 = vrot.slane %v1242_v47, 1  ;;  %v1339_v30 = vrot.slane %v1338_v1, 1  ;;  %v1783_v20 = vpack.c.bf16 %v1591_v18, %v1591_v18  ;;  %v9017_v3 = vld [vmem:[%s11104_s1 + $0x7d4] sm:$0xf0] }
 0x1be   :  { %v1435_v37 = vrot.slane %v1434_v19, 1  ;;  %v2317_v6 = vunpack.c.l.b16 %v1671_v8  ;;  %v2333_v52 = vunpack.c.l.b16 %v1687_v24  ;;  %v2349_v17 = vunpack.c.l.b16 %v1703_v12  ;;  %v9033_v18 = vld [vmem:[%s11104_s1 + $0x6c0] sm:$0xf]  ;;  %v9038_v8 = vld [vmem:[%s11104_s1 + $0x6c4] sm:$0xf0] }
 0x1bf   :  { %v1148_v27 = vadd.f32 %v1147_v21, %v1146_v32  ;;  %v1244_v42 = vadd.f32 %v1243_v7, %v1242_v47  ;;  %v1340_v44 = vadd.f32 %v1339_v30, %v1338_v1  ;;  %v2365_v59 = vunpack.c.l.b16 %v1719_v57  ;;  %v9043_v32 = vld [vmem:[%s11104_s1 + $0x740] sm:$0xf]  ;;  %v9048_v47 = vld [vmem:[%s11104_s1 + $0x744] sm:$0xf0]  ;;  %v9064_v21 = vld [vmem:[%s11104_s1 + $0x630] sm:$0xf] }
 0x1c0   :  { %v1436_v4 = vadd.f32 %v1435_v37, %v1434_v19  ;;  %v2381_v60 = vunpack.c.l.b16 %v1735_v43  ;;  %v2397_v15 = vunpack.c.l.b16 %v1751_v41  ;;  %v2413_v35 = vunpack.c.l.b16 %v1767_v56  ;;  %v9054_v57 = vld [vmem:[%s11104_s1 + $0x7c0] sm:$0xf]  ;;  %v9059_v43 = vld [vmem:[%s11104_s1 + $0x7c4] sm:$0xf0]  ;;  %v9069_v7 = vld [vmem:[%s11104_s1 + $0x634] sm:$0xf0] }
 0x1c1   :  { %v1607_v28 = vmul.f32 %v7595_v33, %v1148_v27  ;;  %v1623_v25 = vmul.f32 %v7595_v33, %v1244_v42  ;;  %v1639_v54 = vmul.f32 %v7595_v33, %v1340_v44  ;;  %v2429_v2 = vunpack.c.l.b16 %v1783_v20  ;;  %v9074_v41 = vld [vmem:[%s11104_s1 + $0x6b0] sm:$0xf]  ;;  %v9079_v56 = vld [vmem:[%s11104_s1 + $0x6b4] sm:$0xf0]  ;;  %v9117_v44 = vld [vmem:[%s11104_s1 + $0x6a0] sm:$0xf] }
 0x1c2   :  { %v1655_v26 = vmul.f32 %v7595_v33, %v1436_v4  ;;  %v2582_v31 = vsel %vm2498_vm1, %v2333_v52, %v2317_v6  ;;  %v6046_v55 = vor.u32 %v6845_v36, %v6045_v48  ;;  %v6110_v49 = vor.u32 %v6861_v10, %v6109_v63  ;;  %v9087_v27 = vld [vmem:[%s11104_s1 + $0x730] sm:$0xf]  ;;  %v9092_v42 = vld [vmem:[%s11104_s1 + $0x734] sm:$0xf0]  ;;  %v9107_v48 = vld [vmem:[%s11104_s1 + $0x620] sm:$0xf] }
 0x1c3   :  { %v1799_v40 = vpack.c.bf16 %v1607_v28, %v1607_v28  ;;  %v1815_v23 = vpack.c.bf16 %v1623_v25, %v1623_v25  ;;  %v2583_v39 = vsel %vm2500_vm2, %v2349_v17, %v2582_v31  ;;  %v1831_v46 = vpack.c.bf16 %v1639_v54, %v1639_v54  ;;  %v9097_v52 = vld [vmem:[%s11104_s1 + $0x7b0] sm:$0xf]  ;;  %v9102_v17 = vld [vmem:[%s11104_s1 + $0x7b4] sm:$0xf0]  ;;  %v9112_v36 = vld [vmem:[%s11104_s1 + $0x624] sm:$0xf0] }
 0x1c4   :  { %v1847_v5 = vpack.c.bf16 %v1655_v26, %v1655_v26  ;;  %v2584_v38 = vsel %vm2502_vm3, %v2365_v59, %v2583_v39  ;;  %4146 = vmatpush.bf16.msrb.mxu0 %v6046_v55  ;;  %v6174_v19 = vor.u32 %v6877_v61, %v6173_v45  ;;  %4160 = vmatpush.bf16.msrb.mxu1 %v6110_v49  ;;  %v9122_v4 = vld [vmem:[%s11104_s1 + $0x6a4] sm:$0xf0]  ;;  %v9133_v45 = vld [vmem:[%s11104_s1 + $0x720] sm:$0xf]  ;;  %v9158_v61 = vld [vmem:[%s11104_s1 + $0x614] sm:$0xf0] }
 0x1c5   :  { %v2445_v24 = vunpack.c.l.b16 %v1799_v40  ;;  %v2461_v12 = vunpack.c.l.b16 %v1815_v23  ;;  %v2585_v1 = vsel %vm2504_vm4, %v2381_v60, %v2584_v38  ;;  %v2477_v30 = vunpack.c.l.b16 %v1831_v46  ;;  %v9138_v28 = vld [vmem:[%s11104_s1 + $0x724] sm:$0xf0]  ;;  %v9143_v25 = vld [vmem:[%s11104_s1 + $0x7a0] sm:$0xf]  ;;  %v9209_v39 = vld [vmem:[%s11103_s0 + $0x30] sm:$0xff] }
 0x1c6   :  { %v2493_v37 = vunpack.c.l.b16 %v1847_v5  ;;  %v2586_v20 = vsel %vm2506_vm5, %v2397_v15, %v2585_v1  ;;  %v6238_v6 = vor.u32 %v8973_v34, %v8968_v16  ;;  %4174 = vmatpush.bf16.msrb.mxu2 %v6174_v19  ;;  %v6038_v63 = vor.u32 %v8986_v14, %v8981_v11  ;;  %v9148_v15 = vld [vmem:[%s11104_s1 + $0x7a4] sm:$0xf0]  ;;  %v9163_v16 = vld [vmem:[%s11104_s1 + $0x690] sm:$0xf]  ;;  %v9168_v34 = vld [vmem:[%s11104_s1 + $0x694] sm:$0xf0] }
 0x1c7   :  { %v2587_v59 = vsel %vm2508_vm6, %v2413_v35, %v2586_v20  ;;  %v2650_v60 = vsel %vm2498_vm1, %v2461_v12, %v2445_v24  ;;  %v6102_v10 = vor.u32 %v8996_v50, %v8991_v58  ;;  %v9153_v35 = vld [vmem:[%s11104_s1 + $0x610] sm:$0xf]  ;;  %v6166_v31 = vor.u32 %v9007_v13, %v9002_v62  ;;  %v9184_v58 = vld [vmem:[%s11104_s1 + $0x714] sm:$0xf0]  ;;  %v9199_v40 = vld [vmem:[%s11104_s1 + $0x600] sm:$0xf] }
 0x1c8   :  { %v2588_v54 = vsel %vm2510_vm7, %v2429_v2, %v2587_v59  ;;  %v2651_v26 = vsel %vm2500_vm2, %v2477_v30, %v2650_v60  ;;  %4188 = vmatpush.bf16.msrb.mxu3 %v6238_v6  ;;  %v6230_v11 = vor.u32 %v9017_v3, %v9012_v53  ;;  %v9179_v14 = vld [vmem:[%s11104_s1 + $0x710] sm:$0xf]  ;;  %v9194_v50 = vld [vmem:[%s11104_s1 + $0x794] sm:$0xf0]  ;;  %v9204_v23 = vld [vmem:[%s11104_s1 + $0x604] sm:$0xf0]  ;;  %4147 = vmatpush.bf16.msrb.mxu0 %v6038_v63 }
 0x1c9   :  { %v9189_v2 = vld [vmem:[%s11104_s1 + $0x790] sm:$0xf]  ;;  %11195 = vst [vmem:[#allocation15_spill] sm:$0xff] %v9209_v39  ;;  %v2652_v55 = vsel %vm2502_vm3, %v2493_v37, %v2651_v26  ;;  %v6030_v62 = vor.u32 %v9028_v9, %v9023_v51  ;;  %v6094_v13 = vor.u32 %v9038_v8, %v9033_v18  ;;  %v6158_v53 = vor.u32 %v9048_v47, %v9043_v32  ;;  %v9221_v3 = vld [vmem:[%s11104_s1 + $0x680] sm:$0xf] }
 0x1ca   :  { %v9226_v46 = vld [vmem:[%s11104_s1 + $0x684] sm:$0xf0]  ;;  %v9231_v5 = vld [vmem:[%s11104_s1 + $0x700] sm:$0xf]  ;;  %v9243_v51 = vpack.c.b16 %v2652_v55, %v2588_v54  ;;  %4161 = vmatpush.bf16.msrb.mxu1 %v6102_v10  ;;  %v6222_v9 = vor.u32 %v9059_v43, %v9054_v57  ;;  %v6022_v18 = vor.u32 %v9069_v7, %v9064_v21  ;;  %v6086_v8 = vor.u32 %v9079_v56, %v9074_v41  ;;  %v9259_v47 = vld [vmem:[%s11104_s1 + $0x74] sm:$0xf] }
 0x1cb   :  { %v9236_v38 = vld [vmem:[%s11104_s1 + $0x704] sm:$0xf0]  ;;  %v9241_v49 = vld [vmem:[%s11104_s1 + $0x780] sm:$0xf]  ;;  %v9264_v24 = vld [vmem:[%s11104_s1 + $0x78] sm:$0xf0]  ;;  %4175 = vmatpush.bf16.msrb.mxu2 %v6166_v31  ;;  %v6150_v1 = vor.u32 %v9092_v42, %v9087_v27  ;;  %v129_v55 = vunpack.c.l.bf16 %v9209_v39  ;;  %v11205_v19 = vor.u32 %v9102_v17, %v9097_v52  ;;  %v11209_v52 = vor.u32 %v9138_v28, %v9133_v45 }
 0x1cc   :  { %11196 = vst [vmem:[#allocation16_spill] sm:$0xff] %v9243_v51  ;;  %v9254_v32 = vld [vmem:[%s11104_s1 + $0x784] sm:$0xf0]  ;;  %v9269_v12 = vld [vmem:[%s11103_s0 + $0x70] sm:$0xff]  ;;  %v9287_v7 = vld [vmem:[%s11104_s1 + $0xf8] sm:$0xf0]  ;;  %4139 = vmatmul.bf16.vlgmr.msra.gmra.mxu3 %v9243_v51  ;;  %4148 = vmatpush.bf16.msrb.mxu0 %v6030_v62 }
 0x1cd   :  { %11197 = vst [vmem:[#allocation18_spill] sm:$0xff] %v9269_v12  ;;  %v9282_v21 = vld [vmem:[%s11104_s1 + $0xf4] sm:$0xf]  ;;  %v9316_v42 = vld [vmem:[%s11104_s1 + $0x178] sm:$0xf0]  ;;  %4189 = vmatpush.bf16.msrb.mxu3 %v6230_v11  ;;  %v381_v29 = vrot.slane %v129_v55, 4 }
 0x1ce   :  { %v9292_v41 = vld [vmem:[%s11104_s1 + $0x174] sm:$0xf]  ;;  %v9326_v60 = vld [vmem:[%s11104_s1 + $0x1f8] sm:$0xf0]  ;;  %4162 = vmatpush.bf16.msrb.mxu1 %v6094_v13 }
 0x1cf   :  { %v9297_v56 = vld [vmem:[%s11103_s0 + $0xb0] sm:$0xff]  ;;  %11200 = vst [vmem:[#allocation21_spill] sm:$0xff] %v9326_v60  ;;  %4176 = vmatpush.bf16.msrb.mxu2 %v6158_v53  ;;  %v145_v53 = vunpack.c.l.bf16 %v9269_v12 }
 0x1d0   :  { %11198 = vst [vmem:[#allocation19_spill] sm:$0xff] %v9297_v56  ;;  %v9302_v30 = vld [vmem:[%s11103_s0 + $0xf0] sm:$0xff]  ;;  %v161_v10 = vunpack.c.l.bf16 %v9297_v56  ;;  %4149 = vmatpush.bf16.msrb.mxu0 %v6022_v18  ;;  %v382_v56 = vadd.f32 %v381_v29, %v129_v55  ;;  %v11208_v29 = vor.u32 %v9122_v4, %v9117_v44  ;;  %v11210_v44 = vor.u32 %v9148_v15, %v9143_v25 }
 0x1d1   :  { %11199 = vst [vmem:[#allocation20_spill] sm:$0xff] %v9302_v30  ;;  %v9321_v59 = vld [vmem:[%s11104_s1 + $0x1f4] sm:$0xf]  ;;  %v177_v37 = vunpack.c.l.bf16 %v9302_v30  ;;  %4190 = vmatpush.bf16.msrb.mxu3 %v6222_v9  ;;  %v477_v30 = vrot.slane %v145_v53, 4  ;;  %v11211_v4 = vor.u32 %v9158_v61, %v9153_v35  ;;  %v11213_v25 = vor.u32 %v9184_v58, %v9179_v14 }
 0x1d2   :  { %v9337_v26 = vld [vmem:[%s11103_s0 + $0x130] sm:$0xff]  ;;  %4163 = vmatpush.bf16.msrb.mxu1 %v6086_v8  ;;  %v11206_v8 = vor.u32 %v9112_v36, %v9107_v48 }
 0x1d3   :  { %11201 = vst [vmem:[#allocation22_spill] sm:$0xff] %v9337_v26  ;;  %v9342_v31 = vld [vmem:[%s11103_s0 + $0x170] sm:$0xff]  ;;  %v193_v63 = vunpack.c.l.bf16 %v9337_v26  ;;  %4177 = vmatpush.bf16.msrb.mxu2 %v6150_v1  ;;  %v573_v26 = vrot.slane %v161_v10, 4 }
 0x1d4   :  { %11202 = vst [vmem:[#allocation23_spill] sm:$0xff] %v9342_v31  ;;  %v9347_v11 = vld [vmem:[%s11103_s0 + $0x1b0] sm:$0xff]  ;;  %v209_v62 = vunpack.c.l.bf16 %v9342_v31  ;;  %v669_v31 = vrot.slane %v177_v37, 4  ;;  %4150 = vmatpush.bf16.msrb.mxu0 %v11206_v8  ;;  %v11216_v8 = vor.u32 %v9226_v46, %v9221_v3  ;;  %v11221_v3 = vor.u32 %v9282_v21, %v9287_v7 }
 0x1d5   :  { %11203 = vst [vmem:[#allocation24_spill] sm:$0xff] %v9347_v11  ;;  %v9361_v27 = vld [vmem:[%s11103_s0 + $0x1f0] sm:$0xff]  ;;  %v225_v43 = vunpack.c.l.bf16 %v9347_v11  ;;  %v765_v9 = vrot.slane %v193_v63, 4  ;;  %v478_v11 = vadd.f32 %v477_v30, %v145_v53  ;;  %4191 = vmatpush.bf16.msrb.mxu3 %v11205_v19  ;;  %v574_v0 = vadd.f32 %v573_v26, %v161_v10 }
 0x1d6   :  { %11204 = vst [vmem:[#allocation25_spill] sm:$0xff] %v9361_v27  ;;  %v9366_v13 = vld [vmem:[%s11103_s0 + $0x230] sm:$0xff]  ;;  %v241_v57 = vunpack.c.l.bf16 %v9361_v27  ;;  %v861_v18 = vrot.slane %v209_v62, 4  ;;  %v670_v22 = vadd.f32 %v669_v31, %v177_v37  ;;  %4164 = vmatpush.bf16.msrb.mxu1 %v11208_v29  ;;  %v383_v30 = vrot.slane %v382_v56, 2 }
 0x1d7   :  { %v9371_v54 = vld [vmem:[%s11103_s0 + $0x270] sm:$0xff]  ;;  %v957_v12 = vrot.slane %v225_v43, 4  ;;  %v766_v51 = vadd.f32 %v765_v9, %v193_v63  ;;  %v11207_v1 = vunpack.c.l.bf16 %v9366_v13  ;;  %v479_v55 = vrot.slane %v478_v11, 2  ;;  %4178 = vmatpush.bf16.msrb.mxu2 %v11209_v52 }
 0x1d8   :  { %v9382_v6 = vld [vmem:[%s11103_s0 + $0x2b0] sm:$0xff]  ;;  %v1053_v27 = vrot.slane %v241_v57, 4  ;;  %v862_v53 = vadd.f32 %v861_v18, %v209_v62  ;;  %v575_v17 = vrot.slane %v574_v0, 2  ;;  %v671_v48 = vrot.slane %v670_v22, 2  ;;  %4151 = vmatpush.bf16.msrb.mxu0 %v11211_v4 }
 0x1d9   :  { %v9387_v20 = vld [vmem:[%s11103_s0 + $0x2f0] sm:$0xff]  ;;  %v1149_v39 = vrot.slane %v11207_v1, 4  ;;  %v958_v60 = vadd.f32 %v957_v12, %v225_v43  ;;  %v767_v36 = vrot.slane %v766_v51, 2  ;;  %v384_v37 = vadd.f32 %v383_v30, %v382_v56  ;;  %4192 = vmatpush.bf16.msrb.mxu3 %v11210_v44 }
 0x1da   :  { %v1054_v19 = vadd.f32 %v1053_v27, %v241_v57  ;;  %v480_v63 = vadd.f32 %v479_v55, %v478_v11  ;;  %v863_v10 = vrot.slane %v862_v53, 2  ;;  %v576_v12 = vadd.f32 %v575_v17, %v574_v0 }
 0x1db   :  { %v959_v26 = vrot.slane %v958_v60, 2  ;;  %v672_v43 = vadd.f32 %v671_v48, %v670_v22  ;;  %v768_v45 = vadd.f32 %v767_v36, %v766_v51  ;;  %v11212_v31 = vor.u32 %v9168_v34, %v9163_v16  ;;  %4179 = vmatpush.bf16.msrb.mxu2 %v11213_v25 }
 0x1dc   :  { %v1055_v28 = vrot.slane %v1054_v19, 2  ;;  %v385_v57 = vrot.slane %v384_v37, 1  ;;  %v481_v56 = vrot.slane %v480_v63, 1  ;;  %v864_v27 = vadd.f32 %v863_v10, %v862_v53 }
 0x1dd   :  { %4165 = vmatpush.bf16.msrb.mxu1 %v11212_v31  ;;  %v960_v11 = vadd.f32 %v959_v26, %v958_v60  ;;  %v577_v15 = vrot.slane %v576_v12, 1  ;;  %v673_v62 = vrot.slane %v672_v43, 1  ;;  %v769_v35 = vrot.slane %v768_v45, 1  ;;  %v11229_v26 = vld [vmem:[#allocation21_spill] sm:$0xff] }
 0x1de   :  { %v1056_v61 = vadd.f32 %v1055_v28, %v1054_v19  ;;  %v386_v0 = vadd.f32 %v385_v57, %v384_v37  ;;  %v482_v22 = vadd.f32 %v481_v56, %v480_v63  ;;  %v865_v51 = vrot.slane %v864_v27, 1 }
 0x1df   :  { %v961_v9 = vrot.slane %v960_v11, 1  ;;  %v11214_v16 = vor.u32 %v9194_v50, %v9189_v2  ;;  %v11215_v34 = vor.u32 %v9204_v23, %v9199_v40  ;;  %v578_v60 = vadd.f32 %v577_v15, %v576_v12 }
 0x1e0   :  { %v674_v18 = vadd.f32 %v673_v62, %v672_v43  ;;  %v770_v14 = vadd.f32 %v769_v35, %v768_v45  ;;  %v1057_v58 = vrot.slane %v1056_v61, 1  ;;  %v11217_v1 = vor.u32 %v9259_v47, %v9264_v24 }
 0x1e1   :  { %4193 = vmatpush.bf16.msrb.mxu3 %v11214_v16  ;;  %4152 = vmatpush.bf16.msrb.mxu0 %v11215_v34  ;;  %v866_v29 = vadd.f32 %v865_v51, %v864_v27  ;;  %v962_v30 = vadd.f32 %v961_v9, %v960_v11  ;;  %v11218_v2 = vunpack.c.l.bf16 %v9366_v13  ;;  %v11219_v40 = vunpack.c.l.bf16 %v9371_v54 }
 0x1e2   :  { %4166 = vmatpush.bf16.msrb.mxu1 %v11216_v8  ;;  %v11220_v55 = vor.u32 %v9236_v38, %v9231_v5  ;;  %v1058_v46 = vadd.f32 %v1057_v58, %v1056_v61  ;;  %v11222_v47 = vunpack.c.l.bf16 %v9382_v6  ;;  %v11223_v53 = vunpack.c.l.bf16 %v9387_v20 }
 0x1e3   :  { %v1150_v50 = vadd.f32 %v1149_v39, %v11218_v2  ;;  %v1245_v23 = vrot.slane %v11219_v40, 4  ;;  %v1480_v39 = vmul.f32 %v7595_v33, %v386_v0  ;;  %v11224_v17 = vor.u32 %v9292_v41, %v9316_v42  ;;  %v9479_v2 = vld [vmem:[%s11103_s0 + $0x38] sm:$0xff] }
 0x1e4   :  { %4180 = vmatpush.bf16.msrb.mxu2 %v11220_v55  ;;  %v1341_v24 = vrot.slane %v11222_v47, 4  ;;  %v1437_v52 = vrot.slane %v11223_v53, 4  ;;  %v11225_v5 = vmov %v11219_v40  ;;  %v1496_v21 = vmul.f32 %v7595_v33, %v482_v22 }
 0x1e5   :  { %4201 = vmatpush.bf16.msra.mxu0 %v11217_v1  ;;  %v1151_v48 = vrot.slane %v1150_v50, 2  ;;  %v1246_v38 = vadd.f32 %v1245_v23, %v11225_v5  ;;  %v1512_v7 = vmul.f32 %v7595_v33, %v578_v60  ;;  %v11226_v36 = vor.u32 %v9254_v32, %v9241_v49 }
 0x1e6   :  { %4215 = vmatpush.bf16.msra.mxu1 %v11221_v3  ;;  %v11227_v19 = vmov %v11222_v47  ;;  %v11228_v63 = vmov %v11223_v53  ;;  %v1528_v41 = vmul.f32 %v7595_v33, %v674_v18  ;;  %v1544_v42 = vmul.f32 %v7595_v33, %v770_v14  ;;  %v9485_v3 = vld [vmem:[%s11103_s0 + $0x78] sm:$0xff] }
 0x1e7   :  { %4194 = vmatpush.bf16.msrb.mxu3 %v11226_v36  ;;  %v1342_v37 = vadd.f32 %v1341_v24, %v11227_v19  ;;  %v1438_v10 = vadd.f32 %v1437_v52, %v11228_v63  ;;  %v11230_v44 = vor.u32 %v9321_v59, %v11229_v26  ;;  %v1152_v4 = vadd.f32 %v1151_v48, %v1150_v50  ;;  %v9493_v52 = vld [vmem:[%s11103_s0 + $0xb8] sm:$0xff] }
 0x1e8   :  { %4229 = vmatpush.bf16.msra.mxu2 %v11224_v17  ;;  %v1247_v12 = vrot.slane %v1246_v38, 2  ;;  %v1560_v43 = vmul.f32 %v7595_v33, %v866_v29  ;;  %v1576_v49 = vmul.f32 %v7595_v33, %v962_v30  ;;  %v1592_v28 = vmul.f32 %v7595_v33, %v1058_v46  ;;  %v9516_v63 = vld [vmem:[%s11103_s0 + $0x1b8] sm:$0xff] }
 0x1e9   :  { %v1343_v32 = vrot.slane %v1342_v37, 2  ;;  %v1439_v45 = vrot.slane %v1438_v10, 2  ;;  %v1672_v31 = vpack.c.bf16 %v1480_v39, %v1480_v39  ;;  %v1153_v57 = vrot.slane %v1152_v4, 1  ;;  %v9498_v39 = vld [vmem:[%s11103_s0 + $0xf8] sm:$0xff] }
 0x1ea   :  { %v1248_v56 = vadd.f32 %v1247_v12, %v1246_v38  ;;  %v1688_v27 = vpack.c.bf16 %v1496_v21, %v1496_v21  ;;  %v1704_v11 = vpack.c.bf16 %v1512_v7, %v1512_v7  ;;  %v1720_v62 = vpack.c.bf16 %v1528_v41, %v1528_v41  ;;  %v9504_v38 = vld [vmem:[%s11103_s0 + $0x138] sm:$0xff] }
 0x1eb   :  { %4243 = vmatpush.bf16.msra.mxu3 %v11230_v44  ;;  %v1344_v25 = vadd.f32 %v1343_v32, %v1342_v37  ;;  %v1440_v15 = vadd.f32 %v1439_v45, %v1438_v10  ;;  %v1736_v59 = vpack.c.bf16 %v1544_v42, %v1544_v42  ;;  %v1154_v35 = vadd.f32 %v1153_v57, %v1152_v4  ;;  %v9511_v37 = vld [vmem:[%s11103_s0 + $0x178] sm:$0xff] }
 0x1ec   :  { %v1249_v61 = vrot.slane %v1248_v56, 1  ;;  %v1752_v0 = vpack.c.bf16 %v1560_v43, %v1560_v43  ;;  %v1768_v22 = vpack.c.bf16 %v1576_v49, %v1576_v49  ;;  %v1784_v16 = vpack.c.bf16 %v1592_v28, %v1592_v28  ;;  %v9523_v26 = vld [vmem:[%s11103_s0 + $0x1f8] sm:$0xff] }
 0x1ed   :  { %v1345_v51 = vrot.slane %v1344_v25, 1  ;;  %v1441_v9 = vrot.slane %v1440_v15, 1  ;;  %v2318_v34 = vunpack.c.l.b16 %v1672_v31  ;;  %v1608_v18 = vmul.f32 %v7595_v33, %v1154_v35  ;;  %v9528_v44 = vld [vmem:[%s11103_s0 + $0x238] sm:$0xff] }
 0x1ee   :  { %v1250_v60 = vadd.f32 %v1249_v61, %v1248_v56  ;;  %v2334_v14 = vunpack.c.l.b16 %v1688_v27  ;;  %v2350_v58 = vunpack.c.l.b16 %v1704_v11  ;;  %v2366_v29 = vunpack.c.l.b16 %v1720_v62  ;;  %v9536_v45 = vld [vmem:[%s11103_s0 + $0x278] sm:$0xff] }
 0x1ef   :  { %v1346_v8 = vadd.f32 %v1345_v51, %v1344_v25  ;;  %v1442_v1 = vadd.f32 %v1441_v9, %v1440_v15  ;;  %v2382_v30 = vunpack.c.l.b16 %v1736_v59  ;;  %v1800_v40 = vpack.c.bf16 %v1608_v18, %v1608_v18  ;;  %v9541_v28 = vld [vmem:[%s11103_s0 + $0x2b8] sm:$0xff] }
 0x1f0   :  { %v1624_v50 = vmul.f32 %v7595_v33, %v1250_v60  ;;  %v2398_v23 = vunpack.c.l.b16 %v1752_v0  ;;  %v2414_v55 = vunpack.c.l.b16 %v1768_v22  ;;  %v2430_v24 = vunpack.c.l.b16 %v1784_v16  ;;  %v9546_v31 = vld [vmem:[%s11103_s0 + $0x2f8] sm:$0xff] }
 0x1f1   :  { %v1640_v46 = vmul.f32 %v7595_v33, %v1346_v8  ;;  %v1656_v47 = vmul.f32 %v7595_v33, %v1442_v1  ;;  %v2589_v53 = vsel %vm2498_vm1, %v2334_v14, %v2318_v34  ;;  %v2446_v48 = vunpack.c.l.b16 %v1800_v40 }
 0x1f2   :  { %v1816_v17 = vpack.c.bf16 %v1624_v50, %v1624_v50  ;;  %v2590_v5 = vsel %vm2500_vm2, %v2350_v58, %v2589_v53  ;;  %v131_v21 = vunpack.c.l.bf16 %v9479_v2  ;;  %v147_v10 = vunpack.c.l.bf16 %v9485_v3 }
 0x1f3   :  { %v1832_v7 = vpack.c.bf16 %v1640_v46, %v1640_v46  ;;  %v1848_v36 = vpack.c.bf16 %v1656_v47, %v1656_v47  ;;  %v2591_v19 = vsel %vm2502_vm3, %v2366_v29, %v2590_v5  ;;  %v163_v4 = vunpack.c.l.bf16 %v9493_v52 }
 0x1f4   :  { %v2462_v41 = vunpack.c.l.b16 %v1816_v17  ;;  %v2592_v42 = vsel %vm2504_vm4, %v2382_v30, %v2591_v19  ;;  %v179_v12 = vunpack.c.l.bf16 %v9498_v39  ;;  %v195_v57 = vunpack.c.l.bf16 %v9504_v38 }
 0x1f5   :  { %v2478_v43 = vunpack.c.l.b16 %v1832_v7  ;;  %v2494_v49 = vunpack.c.l.b16 %v1848_v36  ;;  %v2593_v32 = vsel %vm2506_vm5, %v2398_v23, %v2592_v42  ;;  %v211_v11 = vunpack.c.l.bf16 %v9511_v37 }
 0x1f6   :  { %v2594_v56 = vsel %vm2508_vm6, %v2414_v55, %v2593_v32  ;;  %v2653_v27 = vsel %vm2498_vm1, %v2462_v41, %v2446_v48  ;;  %v227_v25 = vunpack.c.l.bf16 %v9516_v63  ;;  %v243_v59 = vunpack.c.l.bf16 %v9523_v26 }
 0x1f7   :  { %v2595_v15 = vsel %vm2510_vm7, %v2430_v24, %v2594_v56  ;;  %v2654_v62 = vsel %vm2500_vm2, %v2478_v43, %v2653_v27  ;;  %v259_v35 = vunpack.c.l.bf16 %v9528_v44  ;;  %v275_v0 = vunpack.c.l.bf16 %v9536_v45 }
 0x1f8   :  { %v2655_v61 = vsel %vm2502_vm3, %v2494_v49, %v2654_v62  ;;  %v291_v22 = vunpack.c.l.bf16 %v9541_v28  ;;  %v307_v51 = vunpack.c.l.bf16 %v9546_v31  ;;  %v393_v16 = vrot.slane %v131_v21, 4 }
 0x1f9   :  { %v9561_v9 = vpack.c.b16 %v2655_v61, %v2595_v15  ;;  %v489_v34 = vrot.slane %v147_v10, 4  ;;  %v585_v60 = vrot.slane %v163_v4, 4  ;;  %v681_v18 = vrot.slane %v179_v12, 4 }
 0x1fa   :  { %v777_v14 = vrot.slane %v195_v57, 4  ;;  %v873_v58 = vrot.slane %v211_v11, 4  ;;  %v969_v8 = vrot.slane %v227_v25, 4  ;;  %v394_v1 = vadd.f32 %v393_v16, %v131_v21 }
 0x1fb   :  { %4153 = vmatmul.bf16.vlgmr.msrb.gmra.mxu0 %v9561_v9  ;;  %v490_v29 = vadd.f32 %v489_v34, %v147_v10  ;;  %v586_v30 = vadd.f32 %v585_v60, %v163_v4  ;;  %v1065_v50 = vrot.slane %v243_v59, 4  ;;  %v682_v40 = vadd.f32 %v681_v18, %v179_v12 }
 0x1fc   :  { %v778_v23 = vadd.f32 %v777_v14, %v195_v57  ;;  %v874_v55 = vadd.f32 %v873_v58, %v211_v11  ;;  %v970_v46 = vadd.f32 %v969_v8, %v227_v25  ;;  %v395_v47 = vrot.slane %v394_v1, 2 }
 0x1fd   :  { %v491_v24 = vrot.slane %v490_v29, 2  ;;  %v587_v53 = vrot.slane %v586_v30, 2  ;;  %v1066_v17 = vadd.f32 %v1065_v50, %v243_v59  ;;  %v683_v48 = vrot.slane %v682_v40, 2 }
 0x1fe   :  { %v779_v5 = vrot.slane %v778_v23, 2  ;;  %v875_v7 = vrot.slane %v874_v55, 2  ;;  %v971_v36 = vrot.slane %v970_v46, 2  ;;  %v396_v19 = vadd.f32 %v395_v47, %v394_v1 }
 0x1ff   :  { %v492_v41 = vadd.f32 %v491_v24, %v490_v29  ;;  %v588_v42 = vadd.f32 %v587_v53, %v586_v30  ;;  %v1067_v43 = vrot.slane %v1066_v17, 2  ;;  %v684_v21 = vadd.f32 %v683_v48, %v682_v40 }
 0x200   :  { %v780_v10 = vadd.f32 %v779_v5, %v778_v23  ;;  %v876_v4 = vadd.f32 %v875_v7, %v874_v55  ;;  %v972_v49 = vadd.f32 %v971_v36, %v970_v46  ;;  %v397_v12 = vrot.slane %v396_v19, 1 }
 0x201   :  { %v493_v32 = vrot.slane %v492_v41, 1  ;;  %v589_v57 = vrot.slane %v588_v42, 1  ;;  %v1068_v56 = vadd.f32 %v1067_v43, %v1066_v17  ;;  %v685_v27 = vrot.slane %v684_v21, 1 }
 0x202   :  { %v781_v11 = vrot.slane %v780_v10, 1  ;;  %v877_v25 = vrot.slane %v876_v4, 1  ;;  %v973_v15 = vrot.slane %v972_v49, 1  ;;  %v398_v62 = vadd.f32 %v397_v12, %v396_v19 }
 0x203   :  { %v494_v59 = vadd.f32 %v493_v32, %v492_v41  ;;  %v590_v61 = vadd.f32 %v589_v57, %v588_v42  ;;  %v1069_v16 = vrot.slane %v1068_v56, 1  ;;  %v686_v34 = vadd.f32 %v685_v27, %v684_v21 }
 0x204   :  { %v782_v60 = vadd.f32 %v781_v11, %v780_v10  ;;  %v878_v18 = vadd.f32 %v877_v25, %v876_v4  ;;  %v974_v14 = vadd.f32 %v973_v15, %v972_v49  ;;  %v1161_v8 = vrot.slane %v259_v35, 4 }
 0x205   :  { %v1070_v58 = vadd.f32 %v1069_v16, %v1068_v56  ;;  %v1257_v1 = vrot.slane %v275_v0, 4  ;;  %v1353_v29 = vrot.slane %v291_v22, 4  ;;  %v1449_v30 = vrot.slane %v307_v51, 4 }
 0x206   :  { %v1482_v50 = vmul.f32 %v7595_v33, %v398_v62  ;;  %v1498_v40 = vmul.f32 %v7595_v33, %v494_v59  ;;  %v1514_v23 = vmul.f32 %v7595_v33, %v590_v61  ;;  %v1162_v55 = vadd.f32 %v1161_v8, %v259_v35 }
 0x207   :  { %v1258_v46 = vadd.f32 %v1257_v1, %v275_v0  ;;  %v1354_v47 = vadd.f32 %v1353_v29, %v291_v22  ;;  %v1530_v24 = vmul.f32 %v7595_v33, %v686_v34  ;;  %v1450_v53 = vadd.f32 %v1449_v30, %v307_v51 }
 0x208   :  { %v1546_v17 = vmul.f32 %v7595_v33, %v782_v60  ;;  %v1562_v48 = vmul.f32 %v7595_v33, %v878_v18  ;;  %v1578_v5 = vmul.f32 %v7595_v33, %v974_v14  ;;  %v1163_v7 = vrot.slane %v1162_v55, 2 }
 0x209   :  { %v1259_v36 = vrot.slane %v1258_v46, 2  ;;  %v1355_v19 = vrot.slane %v1354_v47, 2  ;;  %v1594_v41 = vmul.f32 %v7595_v33, %v1070_v58  ;;  %v1451_v42 = vrot.slane %v1450_v53, 2 }
 0x20a   :  { %v1674_v43 = vpack.c.bf16 %v1482_v50, %v1482_v50  ;;  %v1690_v21 = vpack.c.bf16 %v1498_v40, %v1498_v40  ;;  %v1706_v35 = vpack.c.bf16 %v1514_v23, %v1514_v23  ;;  %v1164_v0 = vadd.f32 %v1163_v7, %v1162_v55  ;;  %v11231_v55 = vld [vmem:[#allocation15_spill] sm:$0xff] }
 0x20b   :  { %v1260_v22 = vadd.f32 %v1259_v36, %v1258_v46  ;;  %v1356_v10 = vadd.f32 %v1355_v19, %v1354_v47  ;;  %v1722_v4 = vpack.c.bf16 %v1530_v24, %v1530_v24  ;;  %v1452_v51 = vadd.f32 %v1451_v42, %v1450_v53  ;;  %v11232_v47 = vld [vmem:[#allocation18_spill] sm:$0xff]  ;;  %v11233_v19 = vld [vmem:[#allocation19_spill] sm:$0xff]  ;;  %v11234_v42 = vld [vmem:[#allocation20_spill] sm:$0xff] }
 0x20c   :  { %v1738_v49 = vpack.c.bf16 %v1546_v17, %v1546_v17  ;;  %v1754_v12 = vpack.c.bf16 %v1562_v48, %v1562_v48  ;;  %v1770_v32 = vpack.c.bf16 %v1578_v5, %v1578_v5  ;;  %v1165_v57 = vrot.slane %v1164_v0, 1 }
 0x20d   :  { %v1261_v56 = vrot.slane %v1260_v22, 1  ;;  %v1357_v27 = vrot.slane %v1356_v10, 1  ;;  %v1786_v11 = vpack.c.bf16 %v1594_v41, %v1594_v41  ;;  %v1453_v25 = vrot.slane %v1452_v51, 1 }
 0x20e   :  { %v2320_v15 = vunpack.c.l.b16 %v1674_v43  ;;  %v2336_v62 = vunpack.c.l.b16 %v1690_v21  ;;  %v2352_v59 = vunpack.c.l.b16 %v1706_v35  ;;  %v1166_v61 = vadd.f32 %v1165_v57, %v1164_v0 }
 0x20f   :  { %v1262_v16 = vadd.f32 %v1261_v56, %v1260_v22  ;;  %v1358_v34 = vadd.f32 %v1357_v27, %v1356_v10  ;;  %v2368_v60 = vunpack.c.l.b16 %v1722_v4  ;;  %v1454_v18 = vadd.f32 %v1453_v25, %v1452_v51  ;;  %v11235_v51 = vld [vmem:[#allocation22_spill] sm:$0xff]  ;;  %v11237_v27 = vld [vmem:[#allocation24_spill] sm:$0xff]  ;;  %v11238_v25 = vld [vmem:[#allocation25_spill] sm:$0xff] }
 0x210   :  { %v2384_v14 = vunpack.c.l.b16 %v1738_v49  ;;  %v2400_v58 = vunpack.c.l.b16 %v1754_v12  ;;  %v2416_v8 = vunpack.c.l.b16 %v1770_v32  ;;  %v1610_v1 = vmul.f32 %v7595_v33, %v1166_v61  ;;  %v11236_v12 = vld [vmem:[#allocation23_spill] sm:$0xff] }
 0x211   :  { %v1626_v29 = vmul.f32 %v7595_v33, %v1262_v16  ;;  %v1642_v30 = vmul.f32 %v7595_v33, %v1358_v34  ;;  %v2432_v50 = vunpack.c.l.b16 %v1786_v11  ;;  %v1658_v40 = vmul.f32 %v7595_v33, %v1454_v18 }
 0x212   :  { %v2603_v23 = vsel %vm2498_vm1, %v2336_v62, %v2320_v15  ;;  %v130_v46 = vunpack.c.h.bf16 %v11231_v55  ;;  %v146_v24 = vunpack.c.h.bf16 %v11232_v47  ;;  %v1802_v53 = vpack.c.bf16 %v1610_v1, %v1610_v1 }
 0x213   :  { %v1818_v17 = vpack.c.bf16 %v1626_v29, %v1626_v29  ;;  %v1834_v48 = vpack.c.bf16 %v1642_v30, %v1642_v30  ;;  %v2604_v5 = vsel %vm2500_vm2, %v2352_v59, %v2603_v23  ;;  %v1850_v7 = vpack.c.bf16 %v1658_v40, %v1658_v40 }
 0x214   :  { %v2605_v36 = vsel %vm2502_vm3, %v2368_v60, %v2604_v5  ;;  %v162_v41 = vunpack.c.h.bf16 %v11233_v19  ;;  %v178_v43 = vunpack.c.h.bf16 %v11234_v42  ;;  %v2448_v21 = vunpack.c.l.b16 %v1802_v53 }
 0x215   :  { %v2464_v35 = vunpack.c.l.b16 %v1818_v17  ;;  %v2480_v0 = vunpack.c.l.b16 %v1834_v48  ;;  %v2606_v22 = vsel %vm2504_vm4, %v2384_v14, %v2605_v36  ;;  %v2496_v10 = vunpack.c.l.b16 %v1850_v7 }
 0x216   :  { %v2607_v4 = vsel %vm2506_vm5, %v2400_v58, %v2606_v22  ;;  %v194_v49 = vunpack.c.h.bf16 %v11235_v51  ;;  %v210_v32 = vunpack.c.h.bf16 %v11236_v12  ;;  %v226_v11 = vunpack.c.h.bf16 %v11237_v27 }
 0x217   :  { %v2608_v57 = vsel %vm2508_vm6, %v2416_v8, %v2607_v4  ;;  %v2659_v56 = vsel %vm2498_vm1, %v2464_v35, %v2448_v21  ;;  %v242_v15 = vunpack.c.h.bf16 %v11238_v25  ;;  %v258_v61 = vunpack.c.h.bf16 %v9366_v13 }
 0x218   :  { %v2609_v62 = vsel %vm2510_vm7, %v2432_v50, %v2608_v57  ;;  %v2660_v59 = vsel %vm2500_vm2, %v2480_v0, %v2659_v56  ;;  %v274_v16 = vunpack.c.h.bf16 %v9371_v54  ;;  %v290_v60 = vunpack.c.h.bf16 %v9382_v6 }
 0x219   :  { %v2661_v34 = vsel %vm2502_vm3, %v2496_v10, %v2660_v59  ;;  %v306_v18 = vunpack.c.h.bf16 %v9387_v20  ;;  %v387_v14 = vrot.slane %v130_v46, 4  ;;  %v483_v8 = vrot.slane %v146_v24, 4 }
 0x21a   :  { %v9598_v58 = vpack.c.b16 %v2661_v34, %v2609_v62  ;;  %v579_v1 = vrot.slane %v162_v41, 4  ;;  %v675_v29 = vrot.slane %v178_v43, 4  ;;  %v771_v50 = vrot.slane %v194_v49, 4 }
 0x21b   :  { %v388_v30 = vadd.f32 %v387_v14, %v130_v46  ;;  %v867_v40 = vrot.slane %v210_v32, 4  ;;  %v963_v23 = vrot.slane %v226_v11, 4  ;;  %v484_v13 = vadd.f32 %v483_v8, %v146_v24 }
 0x21c   :  { %4181 = vmatmul.bf16.vlgmr.msrb.gmra.mxu2 %v9598_v58  ;;  %v580_v54 = vadd.f32 %v579_v1, %v162_v41  ;;  %v676_v55 = vadd.f32 %v675_v29, %v178_v43  ;;  %v1059_v47 = vrot.slane %v242_v15, 4  ;;  %v772_v6 = vadd.f32 %v771_v50, %v194_v49 }
 0x21d   :  { %v389_v53 = vrot.slane %v388_v30, 2  ;;  %v868_v17 = vadd.f32 %v867_v40, %v210_v32  ;;  %v964_v20 = vadd.f32 %v963_v23, %v226_v11  ;;  %v485_v48 = vrot.slane %v484_v13, 2 }
 0x21e   :  { %v581_v5 = vrot.slane %v580_v54, 2  ;;  %v677_v7 = vrot.slane %v676_v55, 2  ;;  %v1060_v36 = vadd.f32 %v1059_v47, %v242_v15  ;;  %v773_v42 = vrot.slane %v772_v6, 2 }
 0x21f   :  { %v390_v19 = vadd.f32 %v389_v53, %v388_v30  ;;  %v869_v46 = vrot.slane %v868_v17, 2  ;;  %v965_v21 = vrot.slane %v964_v20, 2  ;;  %v486_v35 = vadd.f32 %v485_v48, %v484_v13 }
 0x220   :  { %v582_v0 = vadd.f32 %v581_v5, %v580_v54  ;;  %v678_v22 = vadd.f32 %v677_v7, %v676_v55  ;;  %v1061_v10 = vrot.slane %v1060_v36, 2  ;;  %v774_v41 = vadd.f32 %v773_v42, %v772_v6 }
 0x221   :  { %v391_v24 = vrot.slane %v390_v19, 1  ;;  %v870_v43 = vadd.f32 %v869_v46, %v868_v17  ;;  %v966_v4 = vadd.f32 %v965_v21, %v964_v20  ;;  %v487_v51 = vrot.slane %v486_v35, 1 }
 0x222   :  { %v583_v49 = vrot.slane %v582_v0, 1  ;;  %v679_v12 = vrot.slane %v678_v22, 1  ;;  %v1062_v32 = vadd.f32 %v1061_v10, %v1060_v36  ;;  %v775_v56 = vrot.slane %v774_v41, 1 }
 0x223   :  { %v392_v57 = vadd.f32 %v391_v24, %v390_v19  ;;  %v871_v27 = vrot.slane %v870_v43, 1  ;;  %v967_v11 = vrot.slane %v966_v4, 1  ;;  %v488_v25 = vadd.f32 %v487_v51, %v486_v35 }
 0x224   :  { %v584_v15 = vadd.f32 %v583_v49, %v582_v0  ;;  %v680_v62 = vadd.f32 %v679_v12, %v678_v22  ;;  %v1063_v59 = vrot.slane %v1062_v32, 1  ;;  %v776_v34 = vadd.f32 %v775_v56, %v774_v41 }
 0x225   :  { %v872_v14 = vadd.f32 %v871_v27, %v870_v43  ;;  %v968_v8 = vadd.f32 %v967_v11, %v966_v4  ;;  %v1155_v1 = vrot.slane %v258_v61, 4  ;;  %v1251_v30 = vrot.slane %v274_v16, 4 }
 0x226   :  { %v1064_v29 = vadd.f32 %v1063_v59, %v1062_v32  ;;  %v1347_v50 = vrot.slane %v290_v60, 4  ;;  %v1443_v40 = vrot.slane %v306_v18, 4  ;;  %v1481_v13 = vmul.f32 %v7595_v33, %v392_v57 }
 0x227   :  { %v1156_v23 = vadd.f32 %v1155_v1, %v258_v61  ;;  %v1497_v54 = vmul.f32 %v7595_v33, %v488_v25  ;;  %v1513_v55 = vmul.f32 %v7595_v33, %v584_v15  ;;  %v1252_v47 = vadd.f32 %v1251_v30, %v274_v16 }
 0x228   :  { %v1348_v53 = vadd.f32 %v1347_v50, %v290_v60  ;;  %v1444_v6 = vadd.f32 %v1443_v40, %v306_v18  ;;  %v1529_v17 = vmul.f32 %v7595_v33, %v680_v62  ;;  %v1545_v48 = vmul.f32 %v7595_v33, %v776_v34 }
 0x229   :  { %v1157_v20 = vrot.slane %v1156_v23, 2  ;;  %v1561_v5 = vmul.f32 %v7595_v33, %v872_v14  ;;  %v1577_v7 = vmul.f32 %v7595_v33, %v968_v8  ;;  %v1253_v36 = vrot.slane %v1252_v47, 2 }
 0x22a   :  { %v1349_v61 = vrot.slane %v1348_v53, 2  ;;  %v1445_v19 = vrot.slane %v1444_v6, 2  ;;  %v1593_v42 = vmul.f32 %v7595_v33, %v1064_v29  ;;  %v1673_v21 = vpack.c.bf16 %v1481_v13, %v1481_v13 }
 0x22b   :  { %v1158_v46 = vadd.f32 %v1157_v20, %v1156_v23  ;;  %v1689_v35 = vpack.c.bf16 %v1497_v54, %v1497_v54  ;;  %v1705_v16 = vpack.c.bf16 %v1513_v55, %v1513_v55  ;;  %v1254_v60 = vadd.f32 %v1253_v36, %v1252_v47 }
 0x22c   :  { %v1350_v18 = vadd.f32 %v1349_v61, %v1348_v53  ;;  %v1446_v0 = vadd.f32 %v1445_v19, %v1444_v6  ;;  %v1721_v22 = vpack.c.bf16 %v1529_v17, %v1529_v17  ;;  %v1737_v24 = vpack.c.bf16 %v1545_v48, %v1545_v48 }
 0x22d   :  { %v1159_v10 = vrot.slane %v1158_v46, 1  ;;  %v1753_v41 = vpack.c.bf16 %v1561_v5, %v1561_v5  ;;  %v1769_v43 = vpack.c.bf16 %v1577_v7, %v1577_v7  ;;  %v1255_v4 = vrot.slane %v1254_v60, 1 }
 0x22e   :  { %v1351_v51 = vrot.slane %v1350_v18, 1  ;;  %v1447_v49 = vrot.slane %v1446_v0, 1  ;;  %v1785_v12 = vpack.c.bf16 %v1593_v42, %v1593_v42  ;;  %v2319_v57 = vunpack.c.l.b16 %v1673_v21 }
 0x22f   :  { %v1160_v32 = vadd.f32 %v1159_v10, %v1158_v46  ;;  %v2335_v56 = vunpack.c.l.b16 %v1689_v35  ;;  %v2351_v27 = vunpack.c.l.b16 %v1705_v16  ;;  %v1256_v11 = vadd.f32 %v1255_v4, %v1254_v60 }
 0x230   :  { %v1352_v25 = vadd.f32 %v1351_v51, %v1350_v18  ;;  %v1448_v15 = vadd.f32 %v1447_v49, %v1446_v0  ;;  %v2367_v62 = vunpack.c.l.b16 %v1721_v22  ;;  %v2383_v34 = vunpack.c.l.b16 %v1737_v24 }
 0x231   :  { %v1609_v59 = vmul.f32 %v7595_v33, %v1160_v32  ;;  %v2399_v14 = vunpack.c.l.b16 %v1753_v41  ;;  %v2415_v8 = vunpack.c.l.b16 %v1769_v43  ;;  %v1625_v1 = vmul.f32 %v7595_v33, %v1256_v11 }
 0x232   :  { %v1641_v29 = vmul.f32 %v7595_v33, %v1352_v25  ;;  %v1657_v30 = vmul.f32 %v7595_v33, %v1448_v15  ;;  %v2431_v50 = vunpack.c.l.b16 %v1785_v12  ;;  %v2596_v23 = vsel %vm2498_vm1, %v2335_v56, %v2319_v57 }
 0x233   :  { %v1801_v40 = vpack.c.bf16 %v1609_v59, %v1609_v59  ;;  %v132_v13 = vunpack.c.h.bf16 %v9479_v2  ;;  %v148_v54 = vunpack.c.h.bf16 %v9485_v3  ;;  %v1817_v55 = vpack.c.bf16 %v1625_v1, %v1625_v1 }
 0x234   :  { %v1833_v47 = vpack.c.bf16 %v1641_v29, %v1641_v29  ;;  %v1849_v53 = vpack.c.bf16 %v1657_v30, %v1657_v30  ;;  %v2597_v6 = vsel %vm2500_vm2, %v2351_v27, %v2596_v23  ;;  %v164_v48 = vunpack.c.h.bf16 %v9493_v52 }
 0x235   :  { %v2447_v17 = vunpack.c.l.b16 %v1801_v40  ;;  %v2598_v20 = vsel %vm2502_vm3, %v2367_v62, %v2597_v6  ;;  %v180_v5 = vunpack.c.h.bf16 %v9498_v39  ;;  %v2463_v7 = vunpack.c.l.b16 %v1817_v55 }
 0x236   :  { %v2479_v36 = vunpack.c.l.b16 %v1833_v47  ;;  %v2495_v61 = vunpack.c.l.b16 %v1849_v53  ;;  %v2599_v19 = vsel %vm2504_vm4, %v2383_v34, %v2598_v20  ;;  %v196_v3 = vunpack.c.h.bf16 %v9504_v38 }
 0x237   :  { %v2600_v2 = vsel %vm2506_vm5, %v2399_v14, %v2599_v19  ;;  %v212_v42 = vunpack.c.h.bf16 %v9511_v37  ;;  %v228_v46 = vunpack.c.h.bf16 %v9516_v63  ;;  %v2656_v35 = vsel %vm2498_vm1, %v2463_v7, %v2447_v17 }
 0x238   :  { %v2601_v21 = vsel %vm2508_vm6, %v2415_v8, %v2600_v2  ;;  %v244_v52 = vunpack.c.h.bf16 %v9523_v26  ;;  %v260_v39 = vunpack.c.h.bf16 %v9528_v44  ;;  %v2657_v60 = vsel %vm2500_vm2, %v2479_v36, %v2656_v35 }
 0x239   :  { %v2602_v16 = vsel %vm2510_vm7, %v2431_v50, %v2601_v21  ;;  %v276_v18 = vunpack.c.h.bf16 %v9536_v45  ;;  %v292_v38 = vunpack.c.h.bf16 %v9541_v28  ;;  %v2658_v37 = vsel %vm2502_vm3, %v2495_v61, %v2657_v60 }
 0x23a   :  { %v308_v63 = vunpack.c.h.bf16 %v9546_v31  ;;  %v399_v0 = vrot.slane %v132_v13, 4  ;;  %v495_v22 = vrot.slane %v148_v54, 4  ;;  %v9635_v10 = vpack.c.b16 %v2658_v37, %v2602_v16 }
 0x23b   :  { %v591_v24 = vrot.slane %v164_v48, 4  ;;  %v687_v26 = vrot.slane %v180_v5, 4  ;;  %v783_v41 = vrot.slane %v196_v3, 4  ;;  %v879_v4 = vrot.slane %v212_v42, 4 }
 0x23c   :  { %v400_v44 = vadd.f32 %v399_v0, %v132_v13  ;;  %v496_v43 = vadd.f32 %v495_v22, %v148_v54  ;;  %v975_v51 = vrot.slane %v228_v46, 4  ;;  %4167 = vmatmul.bf16.vlgmr.msrb.gmra.mxu1 %v9635_v10  ;;  %v1071_v12 = vrot.slane %v244_v52, 4 }
 0x23d   :  { %v592_v45 = vadd.f32 %v591_v24, %v164_v48  ;;  %v688_v49 = vadd.f32 %v687_v26, %v180_v5  ;;  %v784_v28 = vadd.f32 %v783_v41, %v196_v3  ;;  %v880_v31 = vadd.f32 %v879_v4, %v212_v42 }
 0x23e   :  { %v401_v32 = vrot.slane %v400_v44, 2  ;;  %v497_v57 = vrot.slane %v496_v43, 2  ;;  %v976_v56 = vadd.f32 %v975_v51, %v228_v46  ;;  %v1072_v15 = vadd.f32 %v1071_v12, %v244_v52 }
 0x23f   :  { %v593_v27 = vrot.slane %v592_v45, 2  ;;  %v689_v11 = vrot.slane %v688_v49, 2  ;;  %v785_v25 = vrot.slane %v784_v28, 2  ;;  %v881_v34 = vrot.slane %v880_v31, 2 }
 0x240   :  { %v402_v62 = vadd.f32 %v401_v32, %v400_v44  ;;  %v498_v59 = vadd.f32 %v497_v57, %v496_v43  ;;  %v977_v14 = vrot.slane %v976_v56, 2  ;;  %v1073_v30 = vrot.slane %v1072_v15, 2 }
 0x241   :  { %v594_v8 = vadd.f32 %v593_v27, %v592_v45  ;;  %v690_v1 = vadd.f32 %v689_v11, %v688_v49  ;;  %v786_v29 = vadd.f32 %v785_v25, %v784_v28  ;;  %v882_v23 = vadd.f32 %v881_v34, %v880_v31 }
 0x242   :  { %v403_v50 = vrot.slane %v402_v62, 1  ;;  %v499_v40 = vrot.slane %v498_v59, 1  ;;  %v978_v13 = vadd.f32 %v977_v14, %v976_v56  ;;  %v1074_v53 = vadd.f32 %v1073_v30, %v1072_v15 }
 0x243   :  { %v595_v54 = vrot.slane %v594_v8, 1  ;;  %v691_v55 = vrot.slane %v690_v1, 1  ;;  %v787_v47 = vrot.slane %v786_v29, 1  ;;  %v883_v20 = vrot.slane %v882_v23, 1 }
 0x244   :  { %v404_v6 = vadd.f32 %v403_v50, %v402_v62  ;;  %v500_v17 = vadd.f32 %v499_v40, %v498_v59  ;;  %v979_v48 = vrot.slane %v978_v13, 1  ;;  %v1075_v61 = vrot.slane %v1074_v53, 1 }
 0x245   :  { %v596_v5 = vadd.f32 %v595_v54, %v594_v8  ;;  %v692_v7 = vadd.f32 %v691_v55, %v690_v1  ;;  %v788_v36 = vadd.f32 %v787_v47, %v786_v29  ;;  %v884_v19 = vadd.f32 %v883_v20, %v882_v23  ;;  %v6652_v54 = vld [vmem:[%s11104_s1 + $0x64] sm:$0xf]  ;;  %v5279_v55 = vld [vmem:[%s11104_s1 + $0x68] sm:$0xf0] }
 0x246   :  { %v980_v2 = vadd.f32 %v979_v48, %v978_v13  ;;  %v1167_v3 = vrot.slane %v260_v39, 4  ;;  %v1263_v42 = vrot.slane %v276_v18, 4  ;;  %v1076_v46 = vadd.f32 %v1075_v61, %v1074_v53  ;;  %v6668_v20 = vld [vmem:[%s11104_s1 + $0xe4] sm:$0xf]  ;;  %v5343_v48 = vld [vmem:[%s11104_s1 + $0xe8] sm:$0xf0] }
 0x247   :  { %v1359_v21 = vrot.slane %v292_v38, 4  ;;  %v1455_v35 = vrot.slane %v308_v63, 4  ;;  %v1483_v52 = vmul.f32 %v7595_v33, %v404_v6  ;;  %v1499_v37 = vmul.f32 %v7595_v33, %v500_v17 }
 0x248   :  { %v1168_v16 = vadd.f32 %v1167_v3, %v260_v39  ;;  %v1264_v60 = vadd.f32 %v1263_v42, %v276_v18  ;;  %v1515_v0 = vmul.f32 %v7595_v33, %v596_v5  ;;  %v1531_v26 = vmul.f32 %v7595_v33, %v692_v7 }
 0x249   :  { %v1360_v22 = vadd.f32 %v1359_v21, %v292_v38  ;;  %v1456_v24 = vadd.f32 %v1455_v35, %v308_v63  ;;  %v1547_v41 = vmul.f32 %v7595_v33, %v788_v36  ;;  %v1563_v4 = vmul.f32 %v7595_v33, %v884_v19  ;;  %v6684_v19 = vld [vmem:[%s11104_s1 + $0x164] sm:$0xf]  ;;  %v5471_v35 = vld [vmem:[%s11104_s1 + $0x1e8] sm:$0xf0] }
 0x24a   :  { %v1169_v44 = vrot.slane %v1168_v16, 2  ;;  %v1265_v43 = vrot.slane %v1264_v60, 2  ;;  %v1579_v51 = vmul.f32 %v7595_v33, %v980_v2  ;;  %v1595_v39 = vmul.f32 %v7595_v33, %v1076_v46  ;;  %v5407_v2 = vld [vmem:[%s11104_s1 + $0x168] sm:$0xf0] }
 0x24b   :  { %v1361_v45 = vrot.slane %v1360_v22, 2  ;;  %v1457_v49 = vrot.slane %v1456_v24, 2  ;;  %v1675_v18 = vpack.c.bf16 %v1483_v52, %v1483_v52  ;;  %v1691_v32 = vpack.c.bf16 %v1499_v37, %v1499_v37  ;;  %v6650_v52 = vld [vmem:[%s11104_s1 + $0x54] sm:$0xf] }
 0x24c   :  { %v1170_v28 = vadd.f32 %v1169_v44, %v1168_v16  ;;  %v1266_v12 = vadd.f32 %v1265_v43, %v1264_v60  ;;  %v1707_v38 = vpack.c.bf16 %v1515_v0, %v1515_v0  ;;  %v1723_v31 = vpack.c.bf16 %v1531_v26, %v1531_v26  ;;  %v5335_v26 = vld [vmem:[%s11104_s1 + $0xd8] sm:$0xf0] }
 0x24d   :  { %v1362_v63 = vadd.f32 %v1361_v45, %v1360_v22  ;;  %v1458_v57 = vadd.f32 %v1457_v49, %v1456_v24  ;;  %v1739_v56 = vpack.c.bf16 %v1547_v41, %v1547_v41  ;;  %v1755_v25 = vpack.c.bf16 %v1563_v4, %v1563_v4  ;;  %v5271_v22 = vld [vmem:[%s11104_s1 + $0x58] sm:$0xf0]  ;;  %v6666_v24 = vld [vmem:[%s11104_s1 + $0xd4] sm:$0xf] }
 0x24e   :  { %v1171_v27 = vrot.slane %v1170_v28, 1  ;;  %v1267_v11 = vrot.slane %v1266_v12, 1  ;;  %v1771_v15 = vpack.c.bf16 %v1579_v51, %v1579_v51  ;;  %v1787_v34 = vpack.c.bf16 %v1595_v39, %v1595_v39  ;;  %v6682_v51 = vld [vmem:[%s11104_s1 + $0x154] sm:$0xf]  ;;  %v5399_v45 = vld [vmem:[%s11104_s1 + $0x158] sm:$0xf0] }
 0x24f   :  { %v1363_v62 = vrot.slane %v1362_v63, 1  ;;  %v1459_v59 = vrot.slane %v1458_v57, 1  ;;  %v2321_v14 = vunpack.c.l.b16 %v1675_v18  ;;  %v2337_v29 = vunpack.c.l.b16 %v1691_v32  ;;  %v6698_v49 = vld [vmem:[%s11104_s1 + $0x1d4] sm:$0xf]  ;;  %v5463_v32 = vld [vmem:[%s11104_s1 + $0x1d8] sm:$0xf0] }
 0x250   :  { %v1172_v8 = vadd.f32 %v1171_v27, %v1170_v28  ;;  %v1268_v1 = vadd.f32 %v1267_v11, %v1266_v12  ;;  %v2353_v30 = vunpack.c.l.b16 %v1707_v38  ;;  %v2369_v23 = vunpack.c.l.b16 %v1723_v31  ;;  %v6648_v38 = vld [vmem:[%s11104_s1 + $0x44] sm:$0xf] }
 0x251   :  { %v1364_v50 = vadd.f32 %v1363_v62, %v1362_v63  ;;  %v1460_v40 = vadd.f32 %v1459_v59, %v1458_v57  ;;  %v2385_v13 = vunpack.c.l.b16 %v1739_v56  ;;  %v2401_v6 = vunpack.c.l.b16 %v1755_v25  ;;  %v5263_v63 = vld [vmem:[%s11104_s1 + $0x48] sm:$0xf0]  ;;  %v6664_v11 = vld [vmem:[%s11104_s1 + $0xc4] sm:$0xf] }
 0x252   :  { %v1611_v47 = vmul.f32 %v7595_v33, %v1172_v8  ;;  %v1627_v53 = vmul.f32 %v7595_v33, %v1268_v1  ;;  %v2417_v17 = vunpack.c.l.b16 %v1771_v15  ;;  %v2433_v36 = vunpack.c.l.b16 %v1787_v34  ;;  %v5327_v25 = vld [vmem:[%s11104_s1 + $0xc8] sm:$0xf0]  ;;  %v6680_v34 = vld [vmem:[%s11104_s1 + $0x144] sm:$0xf] }
 0x253   :  { %v1643_v5 = vmul.f32 %v7595_v33, %v1364_v50  ;;  %v1659_v7 = vmul.f32 %v7595_v33, %v1460_v40  ;;  %v2610_v61 = vsel %vm2498_vm1, %v2337_v29, %v2321_v14  ;;  %v5282_v21 = vor.u32 %v6652_v54, %v5279_v55  ;;  %v6700_v33 = vld [vmem:[%s11104_s1 + $0x1e4] sm:$0xf]  ;;  %v5391_v14 = vld [vmem:[%s11104_s1 + $0x148] sm:$0xf0]  ;;  %v5255_v54 = vld [vmem:[%s11104_s1 + $0x38] sm:$0xf0] }
 0x254   :  { %v1803_v3 = vpack.c.bf16 %v1611_v47, %v1611_v47  ;;  %v1819_v42 = vpack.c.bf16 %v1627_v53, %v1627_v53  ;;  %v2611_v46 = vsel %vm2500_vm2, %v2353_v30, %v2610_v61  ;;  %v5346_v0 = vor.u32 %v6668_v20, %v5343_v48  ;;  %v6696_v30 = vld [vmem:[%s11104_s1 + $0x1c4] sm:$0xf]  ;;  %v6662_v47 = vld [vmem:[%s11104_s1 + $0xb4] sm:$0xf]  ;;  %v5319_v53 = vld [vmem:[%s11104_s1 + $0xb8] sm:$0xf0] }
 0x255   :  { %v1835_v16 = vpack.c.bf16 %v1643_v5, %v1643_v5  ;;  %v1851_v60 = vpack.c.bf16 %v1659_v7, %v1659_v7  ;;  %v2612_v37 = vsel %vm2502_vm3, %v2369_v23, %v2611_v46  ;;  %4202 = vmatpush.bf16.msra.mxu0 %v5282_v21  ;;  %v5410_v4 = vor.u32 %v6684_v19, %v5407_v2  ;;  %v5455_v23 = vld [vmem:[%s11104_s1 + $0x1c8] sm:$0xf0]  ;;  %v6694_v5 = vld [vmem:[%s11104_s1 + $0x1b4] sm:$0xf]  ;;  %v6644_v61 = vld [vmem:[%s11104_s1 + $0x24] sm:$0xf] }
 0x256   :  { %v2449_v41 = vunpack.c.l.b16 %v1803_v3  ;;  %v2465_v44 = vunpack.c.l.b16 %v1819_v42  ;;  %v2613_v43 = vsel %vm2504_vm4, %v2385_v13, %v2612_v37  ;;  %4216 = vmatpush.bf16.msra.mxu1 %v5346_v0  ;;  %v5474_v12 = vor.u32 %v6700_v33, %v5471_v35  ;;  %v6646_v13 = vld [vmem:[%s11104_s1 + $0x34] sm:$0xf]  ;;  %v5247_v19 = vld [vmem:[%s11104_s1 + $0x28] sm:$0xf0]  ;;  %v6660_v3 = vld [vmem:[%s11104_s1 + $0xa4] sm:$0xf] }
 0x257   :  { %v2481_v39 = vunpack.c.l.b16 %v1835_v16  ;;  %v2497_v18 = vunpack.c.l.b16 %v1851_v60  ;;  %v2614_v28 = vsel %vm2506_vm5, %v2401_v6, %v2613_v43  ;;  %4230 = vmatpush.bf16.msra.mxu2 %v5410_v4  ;;  %v5274_v56 = vor.u32 %v6650_v52, %v5271_v22  ;;  %v6678_v6 = vld [vmem:[%s11104_s1 + $0x134] sm:$0xf]  ;;  %v5311_v42 = vld [vmem:[%s11104_s1 + $0xa8] sm:$0xf0]  ;;  %v6676_v46 = vld [vmem:[%s11104_s1 + $0x124] sm:$0xf] }
 0x258   :  { %v2615_v57 = vsel %vm2508_vm6, %v2417_v17, %v2614_v28  ;;  %v2662_v31 = vsel %vm2498_vm1, %v2465_v44, %v2449_v41  ;;  %v5338_v27 = vor.u32 %v6666_v24, %v5335_v26  ;;  %4244 = vmatpush.bf16.msra.mxu3 %v5474_v12  ;;  %v5402_v59 = vor.u32 %v6682_v51, %v5399_v45  ;;  %v5383_v17 = vld [vmem:[%s11104_s1 + $0x138] sm:$0xf0]  ;;  %v5375_v21 = vld [vmem:[%s11104_s1 + $0x128] sm:$0xf0]  ;;  %v6692_v52 = vld [vmem:[%s11104_s1 + $0x1a4] sm:$0xf] }
 0x259   :  { %v2616_v15 = vsel %vm2510_vm7, %v2433_v36, %v2615_v57  ;;  %v2663_v62 = vsel %vm2500_vm2, %v2481_v39, %v2662_v31  ;;  %4203 = vmatpush.bf16.msra.mxu0 %v5274_v56  ;;  %v5466_v1 = vor.u32 %v6698_v49, %v5463_v32  ;;  %v5266_v29 = vor.u32 %v6648_v38, %v5263_v63  ;;  %v5447_v36 = vld [vmem:[%s11104_s1 + $0x1b8] sm:$0xf0]  ;;  %v5439_v60 = vld [vmem:[%s11104_s1 + $0x1a8] sm:$0xf0]  ;;  %v6642_v37 = vld [vmem:[%s11104_s1 + $0x14] sm:$0xf] }
 0x25a   :  { %v2664_v8 = vsel %vm2502_vm3, %v2497_v18, %v2663_v62  ;;  %4217 = vmatpush.bf16.msra.mxu1 %v5338_v27  ;;  %v5330_v40 = vor.u32 %v6664_v11, %v5327_v25  ;;  %v5394_v55 = vor.u32 %v6680_v34, %v5391_v14  ;;  %v5458_v20 = vor.u32 %v6696_v30, %v5455_v23  ;;  %v5239_v0 = vld [vmem:[%s11104_s1 + $0x18] sm:$0xf0]  ;;  %v6658_v24 = vld [vmem:[%s11104_s1 + $0x94] sm:$0xf]  ;;  %v6640_v49 = vld [vmem:[%s11104_s1 + $0x4] sm:$0xf] }
 0x25b   :  { %v9729_v50 = vpack.c.b16 %v2664_v8, %v2616_v15  ;;  %4231 = vmatpush.bf16.msra.mxu2 %v5402_v59  ;;  %v5258_v48 = vor.u32 %v6646_v13, %v5255_v54  ;;  %v5322_v7 = vor.u32 %v6662_v47, %v5319_v53  ;;  %v5386_v2 = vor.u32 %v6678_v6, %v5383_v17  ;;  %v5303_v26 = vld [vmem:[%s11104_s1 + $0x98] sm:$0xf0]  ;;  %v6674_v41 = vld [vmem:[%s11104_s1 + $0x114] sm:$0xf]  ;;  %v5231_v18 = vld [vmem:[%s11104_s1 + $0x8] sm:$0xf0] }
 0x25c   :  { %4245 = vmatpush.bf16.msra.mxu3 %v5466_v1  ;;  %v5450_v33 = vor.u32 %v6694_v5, %v5447_v36  ;;  %v5250_v35 = vor.u32 %v6644_v61, %v5247_v19  ;;  %v5314_v16 = vor.u32 %v6660_v3, %v5311_v42  ;;  %v5378_v22 = vor.u32 %v6676_v46, %v5375_v21  ;;  %v5367_v44 = vld [vmem:[%s11104_s1 + $0x118] sm:$0xf0]  ;;  %v6690_v51 = vld [vmem:[%s11104_s1 + $0x194] sm:$0xf]  ;;  %v6656_v28 = vld [vmem:[%s11104_s1 + $0x84] sm:$0xf] }
 0x25d   :  { %4195 = vmatmul.bf16.vlgmr.msrb.gmra.mxu3 %v9729_v50  ;;  %4204 = vmatpush.bf16.msra.mxu0 %v5266_v29  ;;  %v5442_v43 = vor.u32 %v6692_v52, %v5439_v60  ;;  %v5242_v4 = vor.u32 %v6642_v37, %v5239_v0  ;;  %v5431_v45 = vld [vmem:[%s11104_s1 + $0x198] sm:$0xf0]  ;;  %v5306_v39 = vor.u32 %v6658_v24, %v5303_v26  ;;  %v5295_v12 = vld [vmem:[%s11104_s1 + $0x88] sm:$0xf0]  ;;  %v6672_v38 = vld [vmem:[%s11104_s1 + $0x104] sm:$0xf] }
 0x25e   :  { %4218 = vmatpush.bf16.msra.mxu1 %v5330_v40  ;;  %v5370_v32 = vor.u32 %v6674_v41, %v5367_v44  ;;  %v6718_v63 = vld [vmem:[%s11104_s1 + $0x274] sm:$0xf]  ;;  %v5543_v57 = vld [vmem:[%s11104_s1 + $0x278] sm:$0xf0]  ;;  %v5359_v31 = vld [vmem:[%s11104_s1 + $0x108] sm:$0xf0]  ;;  %v5434_v11 = vor.u32 %v6690_v51, %v5431_v45  ;;  %v5234_v25 = vor.u32 %v6640_v49, %v5231_v18  ;;  %v5298_v59 = vor.u32 %v6656_v28, %v5295_v12 }
 0x25f   :  { %4232 = vmatpush.bf16.msra.mxu2 %v5394_v55  ;;  %v6734_v56 = vld [vmem:[%s11104_s1 + $0x2f4] sm:$0xf]  ;;  %v5607_v27 = vld [vmem:[%s11104_s1 + $0x2f8] sm:$0xf0]  ;;  %v6688_v34 = vld [vmem:[%s11104_s1 + $0x184] sm:$0xf]  ;;  %v5546_v8 = vor.u32 %v6718_v63, %v5543_v57  ;;  %v5362_v29 = vor.u32 %v6672_v38, %v5359_v31 }
 0x260   :  { %4246 = vmatpush.bf16.msra.mxu3 %v5458_v20  ;;  %v6750_v15 = vld [vmem:[%s11104_s1 + $0x374] sm:$0xf]  ;;  %v5671_v62 = vld [vmem:[%s11104_s1 + $0x378] sm:$0xf0]  ;;  %v5423_v14 = vld [vmem:[%s11104_s1 + $0x188] sm:$0xf0]  ;;  %v5610_v30 = vor.u32 %v6734_v56, %v5607_v27 }
 0x261   :  { %4205 = vmatpush.bf16.msra.mxu0 %v5258_v48  ;;  %v6766_v1 = vld [vmem:[%s11104_s1 + $0x3f4] sm:$0xf]  ;;  %v5735_v40 = vld [vmem:[%s11104_s1 + $0x3f8] sm:$0xf0]  ;;  %v6716_v23 = vld [vmem:[%s11104_s1 + $0x264] sm:$0xf]  ;;  %v5674_v54 = vor.u32 %v6750_v15, %v5671_v62  ;;  %v5426_v53 = vor.u32 %v6688_v34, %v5423_v14 }
 0x262   :  { %4219 = vmatpush.bf16.msra.mxu1 %v5322_v7  ;;  %v5535_v13 = vld [vmem:[%s11104_s1 + $0x268] sm:$0xf0]  ;;  %v6732_v55 = vld [vmem:[%s11104_s1 + $0x2e4] sm:$0xf]  ;;  %v5738_v20 = vor.u32 %v6766_v1, %v5735_v40  ;;  %v6714_v61 = vld [vmem:[%s11104_s1 + $0x254] sm:$0xf] }
 0x263   :  { %4233 = vmatpush.bf16.msra.mxu2 %v5386_v2  ;;  %v5599_v47 = vld [vmem:[%s11104_s1 + $0x2e8] sm:$0xf0]  ;;  %v6748_v6 = vld [vmem:[%s11104_s1 + $0x364] sm:$0xf]  ;;  %v5538_v48 = vor.u32 %v6716_v23, %v5535_v13  ;;  %v5527_v19 = vld [vmem:[%s11104_s1 + $0x258] sm:$0xf0] }
 0x264   :  { %4247 = vmatpush.bf16.msra.mxu3 %v5450_v33  ;;  %v5663_v17 = vld [vmem:[%s11104_s1 + $0x368] sm:$0xf0]  ;;  %v6764_v5 = vld [vmem:[%s11104_s1 + $0x3e4] sm:$0xf]  ;;  %v5602_v7 = vor.u32 %v6732_v55, %v5599_v47  ;;  %v6730_v3 = vld [vmem:[%s11104_s1 + $0x2d4] sm:$0xf] }
 0x265   :  { %4206 = vmatpush.bf16.msra.mxu0 %v5250_v35  ;;  %v5727_v36 = vld [vmem:[%s11104_s1 + $0x3e8] sm:$0xf0]  ;;  %v5666_v2 = vor.u32 %v6748_v6, %v5663_v17  ;;  %v5591_v42 = vld [vmem:[%s11104_s1 + $0x2d8] sm:$0xf0]  ;;  %v6746_v21 = vld [vmem:[%s11104_s1 + $0x354] sm:$0xf] }
 0x266   :  { %4220 = vmatpush.bf16.msra.mxu1 %v5314_v16  ;;  %v11239_v46 = vld [vmem:[#allocation5_spill] sm:$0xff]  ;;  %v5655_v33 = vld [vmem:[%s11104_s1 + $0x358] sm:$0xf0]  ;;  %v5730_v52 = vor.u32 %v6764_v5, %v5727_v36  ;;  %v5530_v16 = vor.u32 %v6714_v61, %v5527_v19  ;;  %v6762_v60 = vld [vmem:[%s11104_s1 + $0x3d4] sm:$0xf]  ;;  %v5594_v37 = vor.u32 %v6730_v3, %v5591_v42 }
 0x267   :  { %4234 = vmatpush.bf16.msra.mxu2 %v5378_v22  ;;  %v11240_v35 = vld [vmem:[#allocation7_spill] sm:$0xff]  ;;  %v6712_v22 = vld [vmem:[%s11104_s1 + $0x244] sm:$0xf]  ;;  %v5519_v24 = vld [vmem:[%s11104_s1 + $0x248] sm:$0xf0]  ;;  %v5658_v41 = vor.u32 %v6746_v21, %v5655_v33 }
 0x268   :  { %4248 = vmatpush.bf16.msra.mxu3 %v5442_v43  ;;  %v5719_v0 = vld [vmem:[%s11104_s1 + $0x3d8] sm:$0xf0]  ;;  %v11241_v26 = vld [vmem:[#allocation6_spill] sm:$0xff]  ;;  %v6728_v44 = vld [vmem:[%s11104_s1 + $0x2c4] sm:$0xf] }
 0x269   :  { %4207 = vmatpush.bf16.msra.mxu0 %v5242_v4  ;;  %v5583_v43 = vld [vmem:[%s11104_s1 + $0x2c8] sm:$0xf0]  ;;  %v11242_v4 = vld [vmem:[#allocation8_spill] sm:$0xff]  ;;  %v5722_v49 = vor.u32 %v6762_v60, %v5719_v0  ;;  %v5511_v38 = vld [vmem:[%s11104_s1 + $0x238] sm:$0xf0] }
 0x26a   :  { %4221 = vmatpush.bf16.msra.mxu1 %v5306_v39  ;;  %v6744_v51 = vld [vmem:[%s11104_s1 + $0x344] sm:$0xf]  ;;  %v5647_v45 = vld [vmem:[%s11104_s1 + $0x348] sm:$0xf0]  ;;  %v5522_v39 = vor.u32 %v6712_v22, %v5519_v24  ;;  %v5586_v28 = vor.u32 %v6728_v44, %v5583_v43  ;;  %v6726_v57 = vld [vmem:[%s11104_s1 + $0x2b4] sm:$0xf] }
 0x26b   :  { %4235 = vmatpush.bf16.msra.mxu2 %v5370_v32  ;;  %v6760_v18 = vld [vmem:[%s11104_s1 + $0x3c4] sm:$0xf]  ;;  %v5711_v12 = vld [vmem:[%s11104_s1 + $0x3c8] sm:$0xf0]  ;;  %v6710_v32 = vld [vmem:[%s11104_s1 + $0x234] sm:$0xf]  ;;  %v5650_v63 = vor.u32 %v6744_v51, %v5647_v45 }
 0x26c   :  { %4249 = vmatpush.bf16.msra.mxu3 %v5434_v11  ;;  %v5575_v31 = vld [vmem:[%s11104_s1 + $0x2b8] sm:$0xf0]  ;;  %v6742_v56 = vld [vmem:[%s11104_s1 + $0x334] sm:$0xf]  ;;  %v5714_v11 = vor.u32 %v6760_v18, %v5711_v12  ;;  %v6708_v34 = vld [vmem:[%s11104_s1 + $0x224] sm:$0xf] }
 0x26d   :  { %4208 = vmatpush.bf16.msra.mxu0 %v5234_v25  ;;  %v5639_v27 = vld [vmem:[%s11104_s1 + $0x338] sm:$0xf0]  ;;  %v5514_v25 = vor.u32 %v6710_v32, %v5511_v38  ;;  %v6758_v15 = vld [vmem:[%s11104_s1 + $0x3b4] sm:$0xf]  ;;  %v5578_v62 = vor.u32 %v6726_v57, %v5575_v31  ;;  %v5503_v14 = vld [vmem:[%s11104_s1 + $0x228] sm:$0xf0] }
 0x26e   :  { %4222 = vmatpush.bf16.msra.mxu1 %v5298_v59  ;;  %v5703_v59 = vld [vmem:[%s11104_s1 + $0x3b8] sm:$0xf0]  ;;  %v6724_v1 = vld [vmem:[%s11104_s1 + $0x2a4] sm:$0xf]  ;;  %v5631_v40 = vld [vmem:[%s11104_s1 + $0x328] sm:$0xf0]  ;;  %v5506_v13 = vor.u32 %v6708_v34, %v5503_v14 }
 0x26f   :  { %4236 = vmatpush.bf16.msra.mxu2 %v5362_v29  ;;  %v5567_v29 = vld [vmem:[%s11104_s1 + $0x2a8] sm:$0xf0]  ;;  %v5706_v23 = vor.u32 %v6758_v15, %v5703_v59  ;;  %v5495_v6 = vld [vmem:[%s11104_s1 + $0x218] sm:$0xf0]  ;;  %v6738_v5 = vld [vmem:[%s11104_s1 + $0x314] sm:$0xf] }
 0x270   :  { %4209 = vmatmul.bf16.vlgmr.msra.gmra.mxu0 %v11239_v46  ;;  %4250 = vmatpush.bf16.msra.mxu3 %v5426_v53  ;;  %v5570_v55 = vor.u32 %v6724_v1, %v5567_v29  ;;  %v5695_v47 = vld [vmem:[%s11104_s1 + $0x3a8] sm:$0xf0]  ;;  %v6706_v53 = vld [vmem:[%s11104_s1 + $0x214] sm:$0xf]  ;;  %v6704_v3 = vld [vmem:[%s11104_s1 + $0x204] sm:$0xf] }
 0x271   :  { %4257 = vmatpush.bf16.msrb.mxu0 %v5546_v8  ;;  %4223 = vmatmul.bf16.vlgmr.msra.gmra.mxu1 %v11240_v35  ;;  %v5642_v8 = vor.u32 %v6742_v56, %v5639_v27  ;;  %v5498_v61 = vor.u32 %v6706_v53, %v5495_v6  ;;  %v6754_v19 = vld [vmem:[%s11104_s1 + $0x394] sm:$0xf]  ;;  %v5487_v46 = vld [vmem:[%s11104_s1 + $0x208] sm:$0xf0]  ;;  %v6720_v21 = vld [vmem:[%s11104_s1 + $0x284] sm:$0xf] }
 0x272   :  { %4271 = vmatpush.bf16.msrb.mxu1 %v5610_v30  ;;  %4237 = vmatmul.bf16.vlgmr.msra.gmra.mxu2 %v11241_v26  ;;  %v6740_v30 = vld [vmem:[%s11104_s1 + $0x324] sm:$0xf]  ;;  %v5551_v33 = vld [vmem:[%s11104_s1 + $0x288] sm:$0xf0]  ;;  %v5799_v60 = vld [vmem:[%s11104_s1 + $0x478] sm:$0xf0]  ;;  %v5490_v26 = vor.u32 %v6704_v3, %v5487_v46 }
 0x273   :  { %4285 = vmatpush.bf16.msrb.mxu2 %v5674_v54  ;;  %4251 = vmatmul.bf16.vlgmr.msra.gmra.mxu3 %v11242_v4  ;;  %v6756_v54 = vld [vmem:[%s11104_s1 + $0x3a4] sm:$0xf]  ;;  %v5634_v17 = vor.u32 %v6740_v30, %v5631_v40  ;;  %v6798_v0 = vld [vmem:[%s11104_s1 + $0x4f4] sm:$0xf]  ;;  %v5863_v22 = vld [vmem:[%s11104_s1 + $0x4f8] sm:$0xf0]  ;;  %v5554_v43 = vor.u32 %v6720_v21, %v5551_v33 }
 0x274   :  { %4299 = vmatpush.bf16.msrb.mxu3 %v5738_v20  ;;  %v6722_v20 = vld [vmem:[%s11104_s1 + $0x294] sm:$0xf]  ;;  %v5698_v36 = vor.u32 %v6756_v54, %v5695_v47  ;;  %v5927_v44 = vld [vmem:[%s11104_s1 + $0x578] sm:$0xf0]  ;;  %v6752_v4 = vld [vmem:[%s11104_s1 + $0x384] sm:$0xf] }
 0x275   :  { %4258 = vmatpush.bf16.msrb.mxu0 %v5538_v48  ;;  %v5559_v48 = vld [vmem:[%s11104_s1 + $0x298] sm:$0xf0]  ;;  %v5679_v51 = vld [vmem:[%s11104_s1 + $0x388] sm:$0xf0]  ;;  %v6830_v18 = vld [vmem:[%s11104_s1 + $0x5f4] sm:$0xf] }
 0x276   :  { %4272 = vmatpush.bf16.msrb.mxu1 %v5602_v7  ;;  %v5623_v7 = vld [vmem:[%s11104_s1 + $0x318] sm:$0xf0]  ;;  %v5562_v42 = vor.u32 %v6722_v20, %v5559_v48  ;;  %v6780_v12 = vld [vmem:[%s11104_s1 + $0x464] sm:$0xf]  ;;  %v5791_v38 = vld [vmem:[%s11104_s1 + $0x468] sm:$0xf0]  ;;  %v5682_v31 = vor.u32 %v6752_v4, %v5679_v51  ;;  %v10154_v51 = vpop.f32.mrf.mxu0 }
 0x277   :  { %4286 = vmatpush.bf16.msrb.mxu2 %v5666_v2  ;;  %v5687_v2 = vld [vmem:[%s11104_s1 + $0x398] sm:$0xf0]  ;;  %v5626_v35 = vor.u32 %v6738_v5, %v5623_v7  ;;  %v5855_v57 = vld [vmem:[%s11104_s1 + $0x4e8] sm:$0xf0]  ;;  %v6812_v56 = vld [vmem:[%s11104_s1 + $0x564] sm:$0xf] }
 0x278   :  { %4300 = vmatpush.bf16.msrb.mxu3 %v5730_v52  ;;  %v6736_v52 = vld [vmem:[%s11104_s1 + $0x304] sm:$0xf]  ;;  %v5690_v24 = vor.u32 %v6754_v19, %v5687_v2  ;;  %v5919_v27 = vld [vmem:[%s11104_s1 + $0x568] sm:$0xf0]  ;;  %v6778_v34 = vld [vmem:[%s11104_s1 + $0x454] sm:$0xf] }
 0x279   :  { %4259 = vmatpush.bf16.msrb.mxu0 %v5530_v16  ;;  %v6782_v16 = vld [vmem:[%s11104_s1 + $0x474] sm:$0xf]  ;;  %v5983_v59 = vld [vmem:[%s11104_s1 + $0x5e8] sm:$0xf0]  ;;  %v5783_v1 = vld [vmem:[%s11104_s1 + $0x458] sm:$0xf0] }
 0x27a   :  { %4273 = vmatpush.bf16.msrb.mxu1 %v5594_v37  ;;  %v5615_v37 = vld [vmem:[%s11104_s1 + $0x308] sm:$0xf0]  ;;  %v5802_v45 = vor.u32 %v6782_v16, %v5799_v60  ;;  %v6794_v29 = vld [vmem:[%s11104_s1 + $0x4d4] sm:$0xf]  ;;  %v5847_v30 = vld [vmem:[%s11104_s1 + $0x4d8] sm:$0xf0]  ;;  %v5786_v47 = vor.u32 %v6778_v34, %v5783_v1 }
 0x27b   :  { %4287 = vmatpush.bf16.msrb.mxu2 %v5658_v41  ;;  %v6814_v41 = vld [vmem:[%s11104_s1 + $0x574] sm:$0xf]  ;;  %v11243_v14 = vld [vmem:[#allocation9_spill] sm:$0xff]  ;;  %v11244_v40 = vld [vmem:[#allocation11_spill] sm:$0xff]  ;;  %v5850_v53 = vor.u32 %v6794_v29, %v5847_v30 }
 0x27c   :  { %4301 = vmatpush.bf16.msrb.mxu3 %v5722_v49  ;;  %v5618_v49 = vor.u32 %v6736_v52, %v5615_v37  ;;  %v5930_v32 = vor.u32 %v6814_v41, %v5927_v44  ;;  %v11245_v54 = vld [vmem:[#allocation10_spill] sm:$0xff]  ;;  %v6776_v20 = vld [vmem:[%s11104_s1 + $0x444] sm:$0xf]  ;;  %v11246_v48 = vld [vmem:[#allocation13_spill] sm:$0xff] }
 0x27d   :  { %4260 = vmatpush.bf16.msrb.mxu0 %v5522_v39  ;;  %v5866_v39 = vor.u32 %v6798_v0, %v5863_v22  ;;  %v6826_v6 = vld [vmem:[%s11104_s1 + $0x5d4] sm:$0xf]  ;;  %v5775_v7 = vld [vmem:[%s11104_s1 + $0x448] sm:$0xf0]  ;;  %v6808_v19 = vld [vmem:[%s11104_s1 + $0x544] sm:$0xf] }
 0x27e   :  { %4274 = vmatpush.bf16.msrb.mxu1 %v5586_v28  ;;  %v5991_v28 = vld [vmem:[%s11104_s1 + $0x5f8] sm:$0xf0]  ;;  %v5903_v2 = vld [vmem:[%s11104_s1 + $0x548] sm:$0xf0]  ;;  %v6824_v21 = vld [vmem:[%s11104_s1 + $0x5c4] sm:$0xf] }
 0x27f   :  { %4288 = vmatpush.bf16.msrb.mxu2 %v5650_v63  ;;  %v6796_v63 = vld [vmem:[%s11104_s1 + $0x4e4] sm:$0xf]  ;;  %v5967_v33 = vld [vmem:[%s11104_s1 + $0x5c8] sm:$0xf0]  ;;  %v5906_v52 = vor.u32 %v6808_v19, %v5903_v2  ;;  %v5767_v16 = vld [vmem:[%s11104_s1 + $0x438] sm:$0xf0] }
 0x280   :  { %4302 = vmatpush.bf16.msrb.mxu3 %v5714_v11  ;;  %v5994_v11 = vor.u32 %v6830_v18, %v5991_v28  ;;  %v5858_v15 = vor.u32 %v6796_v63, %v5855_v57  ;;  %v6790_v60 = vld [vmem:[%s11104_s1 + $0x4b4] sm:$0xf]  ;;  %v5831_v37 = vld [vmem:[%s11104_s1 + $0x4b8] sm:$0xf0]  ;;  %v6772_v4 = vld [vmem:[%s11104_s1 + $0x424] sm:$0xf] }
 0x281   :  { %4261 = vmatpush.bf16.msrb.mxu0 %v5514_v25  ;;  %v5794_v25 = vor.u32 %v6780_v12, %v5791_v38  ;;  %v6806_v0 = vld [vmem:[%s11104_s1 + $0x534] sm:$0xf]  ;;  %v5895_v22 = vld [vmem:[%s11104_s1 + $0x538] sm:$0xf0]  ;;  %v5834_v41 = vor.u32 %v6790_v60, %v5831_v37  ;;  %v5823_v18 = vld [vmem:[%s11104_s1 + $0x4a8] sm:$0xf0] }
 0x282   :  { %4275 = vmatpush.bf16.msrb.mxu1 %v5578_v62  ;;  %v6828_v62 = vld [vmem:[%s11104_s1 + $0x5e4] sm:$0xf]  ;;  %v6822_v44 = vld [vmem:[%s11104_s1 + $0x5b4] sm:$0xf]  ;;  %v5887_v12 = vld [vmem:[%s11104_s1 + $0x528] sm:$0xf0] }
 0x283   :  { %4289 = vmatpush.bf16.msrb.mxu2 %v5642_v8  ;;  %v5922_v8 = vor.u32 %v6812_v56, %v5919_v27  ;;  %v6804_v28 = vld [vmem:[%s11104_s1 + $0x524] sm:$0xf]  ;;  %v6770_v56 = vld [vmem:[%s11104_s1 + $0x414] sm:$0xf]  ;;  %v10180_v27 = vpop.f32.mrf.mxu1  ;;  %v5879_v34 = vld [vmem:[%s11104_s1 + $0x518] sm:$0xf0] }
 0x284   :  { %4303 = vmatpush.bf16.msrb.mxu3 %v5706_v23  ;;  %v6810_v23 = vld [vmem:[%s11104_s1 + $0x554] sm:$0xf]  ;;  %v6820_v57 = vld [vmem:[%s11104_s1 + $0x5a4] sm:$0xf]  ;;  %v5943_v29 = vld [vmem:[%s11104_s1 + $0x598] sm:$0xf0] }
 0x285   :  { %4262 = vmatpush.bf16.msrb.mxu0 %v5506_v13  ;;  %v5911_v13 = vld [vmem:[%s11104_s1 + $0x558] sm:$0xf0]  ;;  %v6818_v1 = vld [vmem:[%s11104_s1 + $0x594] sm:$0xf]  ;;  %v6844_v37 = vld [vmem:[%s11104_s1 + $0x664] sm:$0xf] }
 0x286   :  { %4276 = vmatpush.bf16.msrb.mxu1 %v5570_v55  ;;  %v5986_v55 = vor.u32 %v6828_v62, %v5983_v59  ;;  %v5914_v5 = vor.u32 %v6810_v23, %v5911_v13  ;;  %v5815_v62 = vld [vmem:[%s11104_s1 + $0x498] sm:$0xf0]  ;;  %v6802_v59 = vld [vmem:[%s11104_s1 + $0x514] sm:$0xf]  ;;  %v6768_v23 = vld [vmem:[%s11104_s1 + $0x404] sm:$0xf] }
 0x287   :  { %4290 = vmatpush.bf16.msrb.mxu2 %v5634_v17  ;;  %v5975_v17 = vld [vmem:[%s11104_s1 + $0x5d8] sm:$0xf0]  ;;  %v5743_v13 = vld [vmem:[%s11104_s1 + $0x408] sm:$0xf0] }
 0x288   :  { %4304 = vmatpush.bf16.msrb.mxu3 %v5698_v36  ;;  %v6792_v36 = vld [vmem:[%s11104_s1 + $0x4c4] sm:$0xf]  ;;  %v5978_v3 = vor.u32 %v6826_v6, %v5975_v17  ;;  %v5871_v6 = vld [vmem:[%s11104_s1 + $0x508] sm:$0xf0]  ;;  %v6846_v17 = vld [vmem:[%s11104_s1 + $0x674] sm:$0xf]  ;;  %v5746_v2 = vor.u32 %v6768_v23, %v5743_v13 }
 0x289   :  { %4263 = vmatpush.bf16.msrb.mxu0 %v5498_v61  ;;  %v5839_v61 = vld [vmem:[%s11104_s1 + $0x4c8] sm:$0xf0]  ;;  %v6183_v19 = vld [vmem:[%s11104_s1 + $0x778] sm:$0xf0]  ;;  %v11250_v23 = vld [vmem:[#allocation16_spill] sm:$0xff] }
 0x28a   :  { %4277 = vmatpush.bf16.msrb.mxu1 %v5562_v42  ;;  %v5778_v42 = vor.u32 %v6776_v20, %v5775_v7  ;;  %v5842_v46 = vor.u32 %v6792_v36, %v5839_v61  ;;  %v6055_v20 = vld [vmem:[%s11104_s1 + $0x678] sm:$0xf0]  ;;  %v5946_v7 = vor.u32 %v6818_v1, %v5943_v29  ;;  %v6878_v61 = vld [vmem:[%s11104_s1 + $0x774] sm:$0xf] }
 0x28b   :  { %4291 = vmatpush.bf16.msrb.mxu2 %v5626_v35  ;;  %v6774_v35 = vld [vmem:[%s11104_s1 + $0x434] sm:$0xf]  ;;  %v6119_v36 = vld [vmem:[%s11104_s1 + $0x6f8] sm:$0xf0]  ;;  %v6186_v60 = vor.u32 %v6878_v61, %v6183_v19  ;;  %v6888_v19 = vld [vmem:[%s11104_s1 + $0x7c4] sm:$0xf] }
 0x28c   :  { %4305 = vmatpush.bf16.msrb.mxu3 %v5690_v24  ;;  %v5970_v24 = vor.u32 %v6824_v21, %v5967_v33  ;;  %v6058_v33 = vor.u32 %v6846_v17, %v6055_v20  ;;  %v6890_v29 = vld [vmem:[%s11104_s1 + $0x7d4] sm:$0xf]  ;;  %v6872_v20 = vld [vmem:[%s11104_s1 + $0x744] sm:$0xf] }
 0x28d   :  { %4264 = vmatpush.bf16.msrb.mxu0 %v5490_v26  ;;  %v5770_v26 = vor.u32 %v6774_v35, %v5767_v16  ;;  %v6894_v35 = vld [vmem:[%s11104_s1 + $0x7f4] sm:$0xf] }
 0x28e   :  { %4278 = vmatpush.bf16.msrb.mxu1 %v5554_v43  ;;  %v5959_v43 = vld [vmem:[%s11104_s1 + $0x5b8] sm:$0xf0] }
 0x28f   :  { %4292 = vmatpush.bf16.msrb.mxu2 %v5618_v49  ;;  %v5759_v49 = vld [vmem:[%s11104_s1 + $0x428] sm:$0xf0] }
 0x290   :  { %4265 = vmatmul.bf16.vlgmr.msrb.gmra.mxu0 %v11243_v14  ;;  %4306 = vmatpush.bf16.msrb.mxu3 %v5682_v31  ;;  %v5762_v38 = vor.u32 %v6772_v4, %v5759_v49  ;;  %v5951_v31 = vld [vmem:[%s11104_s1 + $0x5a8] sm:$0xf0]  ;;  %v10197_v14 = vpop.f32.mrf.mxu2  ;;  %v6876_v4 = vld [vmem:[%s11104_s1 + $0x764] sm:$0xf] }
 0x291   :  { %4313 = vmatpush.bf16.msra.mxu0 %v5802_v45  ;;  %4279 = vmatmul.bf16.vlgmr.msrb.gmra.mxu1 %v11244_v40  ;;  %v5898_v45 = vor.u32 %v6806_v0, %v5895_v22  ;;  %v6047_v0 = vld [vmem:[%s11104_s1 + $0x668] sm:$0xf0]  ;;  %v10261_v22 = vpop.f32.mrf.mxu3 }
 0x292   :  { %4327 = vmatpush.bf16.msra.mxu1 %v5866_v39  ;;  %4293 = vmatmul.bf16.vlgmr.msrb.gmra.mxu2 %v11245_v54  ;;  %v6788_v39 = vld [vmem:[%s11104_s1 + $0x4a4] sm:$0xf] }
 0x293   :  { %4341 = vmatpush.bf16.msra.mxu2 %v5930_v32  ;;  %4307 = vmatmul.bf16.vlgmr.msrb.gmra.mxu3 %v11246_v48  ;;  %v5962_v32 = vor.u32 %v6822_v44, %v5959_v43  ;;  %v5826_v63 = vor.u32 %v6788_v39, %v5823_v18  ;;  %v6784_v54 = vld [vmem:[%s11104_s1 + $0x484] sm:$0xf]  ;;  %v6862_v48 = vld [vmem:[%s11104_s1 + $0x6f4] sm:$0xf]  ;;  %v6111_v44 = vld [vmem:[%s11104_s1 + $0x6e8] sm:$0xf0]  ;;  %v6050_v39 = vor.u32 %v6844_v37, %v6047_v0 }
 0x294   :  { %4355 = vmatpush.bf16.msra.mxu3 %v5994_v11  ;;  %v5890_v11 = vor.u32 %v6804_v28, %v5887_v12  ;;  %v6122_v16 = vor.u32 %v6862_v48, %v6119_v36  ;;  %v6892_v18 = vld [vmem:[%s11104_s1 + $0x7e4] sm:$0xf]  ;;  %v6239_v28 = vld [vmem:[%s11104_s1 + $0x7e8] sm:$0xf0]  ;;  %v6151_v37 = vld [vmem:[%s11104_s1 + $0x738] sm:$0xf0] }
 0x295   :  { %4314 = vmatpush.bf16.msra.mxu0 %v5794_v25  ;;  %v5751_v25 = vld [vmem:[%s11104_s1 + $0x418] sm:$0xf0]  ;;  %v6159_v48 = vld [vmem:[%s11104_s1 + $0x748] sm:$0xf0] }
 0x296   :  { %4328 = vmatpush.bf16.msra.mxu1 %v5858_v15  ;;  %v6786_v15 = vld [vmem:[%s11104_s1 + $0x494] sm:$0xf]  ;;  %v5754_v30 = vor.u32 %v6770_v56, %v5751_v25  ;;  %v11248_v25 = vld [vmem:[#allocation12_spill] sm:$0xff] }
 0x297   :  { %4342 = vmatpush.bf16.msra.mxu2 %v5922_v8  ;;  %v5954_v8 = vor.u32 %v6820_v57, %v5951_v31  ;;  %v5818_v40 = vor.u32 %v6786_v15, %v5815_v62  ;;  %v11247_v57 = vld [vmem:[#allocation17_spill] sm:$0xff]  ;;  %v6858_v56 = vld [vmem:[%s11104_s1 + $0x6d4] sm:$0xf]  ;;  %v6242_v15 = vor.u32 %v6892_v18, %v6239_v28 }
 0x298   :  { %4356 = vmatpush.bf16.msra.mxu3 %v5986_v55  ;;  %v5882_v55 = vor.u32 %v6802_v59, %v5879_v34  ;;  %v10277_v49 = vpop.f32.mrf.mxu2  ;;  %v6874_v62 = vld [vmem:[%s11104_s1 + $0x754] sm:$0xf]  ;;  %v6167_v59 = vld [vmem:[%s11104_s1 + $0x758] sm:$0xf0] }
 0x299   :  { %4315 = vmatpush.bf16.msra.mxu0 %v5786_v47  ;;  %v5807_v47 = vld [vmem:[%s11104_s1 + $0x488] sm:$0xf0] }
 0x29a   :  { %4329 = vmatpush.bf16.msra.mxu1 %v5850_v53  ;;  %v6800_v53 = vld [vmem:[%s11104_s1 + $0x504] sm:$0xf] }
 0x29b   :  { %4343 = vmatpush.bf16.msra.mxu2 %v5914_v5  ;;  %v10232_v5 = vpop.f32.mrf.mxu0  ;;  %v5874_v21 = vor.u32 %v6800_v53, %v5871_v6  ;;  %v6856_v53 = vld [vmem:[%s11104_s1 + $0x6c4] sm:$0xf]  ;;  %v6095_v6 = vld [vmem:[%s11104_s1 + $0x6c8] sm:$0xf0] }
 0x29c   :  { %4357 = vmatpush.bf16.msra.mxu3 %v5978_v3  ;;  %v5810_v3 = vor.u32 %v6784_v54, %v5807_v47  ;;  %v6840_v54 = vld [vmem:[%s11104_s1 + $0x644] sm:$0xf]  ;;  %v6170_v47 = vor.u32 %v6874_v62, %v6167_v59  ;;  %v6834_v62 = vld [vmem:[%s11104_s1 + $0x614] sm:$0xf]  ;;  %v6007_v59 = vld [vmem:[%s11104_s1 + $0x618] sm:$0xf0] }
 0x29d   :  { %4316 = vmatpush.bf16.msra.mxu0 %v5778_v42  ;;  %v6816_v42 = vld [vmem:[%s11104_s1 + $0x584] sm:$0xf] }
 0x29e   :  { %4330 = vmatpush.bf16.msra.mxu1 %v5842_v46  ;;  %v5935_v46 = vld [vmem:[%s11104_s1 + $0x588] sm:$0xf0] }
 0x29f   :  { %4344 = vmatpush.bf16.msra.mxu2 %v5906_v52  ;;  %v6247_v52 = vld [vmem:[%s11104_s1 + $0x7f8] sm:$0xf0] }
 0x2a0   :  { %4358 = vmatpush.bf16.msra.mxu3 %v5970_v24  ;;  %v10263_v24 = vpop.f32.mrf.mxu1  ;;  %v6250_v43 = vor.u32 %v6894_v35, %v6247_v52  ;;  %v6162_v35 = vor.u32 %v6872_v20, %v6159_v48  ;;  %v6854_v52 = vld [vmem:[%s11104_s1 + $0x6b4] sm:$0xf]  ;;  %v6832_v20 = vld [vmem:[%s11104_s1 + $0x604] sm:$0xf]  ;;  %v5999_v48 = vld [vmem:[%s11104_s1 + $0x608] sm:$0xf0] }
 0x2a1   :  { %4317 = vmatpush.bf16.msra.mxu0 %v5770_v26  ;;  %v5938_v26 = vor.u32 %v6816_v42, %v5935_v46  ;;  %v6098_v42 = vor.u32 %v6856_v53, %v6095_v6  ;;  %v6838_v46 = vld [vmem:[%s11104_s1 + $0x634] sm:$0xf] }
 0x2a2   :  { %4331 = vmatpush.bf16.msra.mxu1 %v5834_v41  ;;  %v6860_v41 = vld [vmem:[%s11104_s1 + $0x6e4] sm:$0xf] }
 0x2a3   :  { %4345 = vmatpush.bf16.msra.mxu2 %v5898_v45  ;;  %v6175_v45 = vld [vmem:[%s11104_s1 + $0x768] sm:$0xf0]  ;;  %v6114_v12 = vor.u32 %v6860_v41, %v6111_v44  ;;  %v10310_v34 = vpop.f32.mrf.mxu0  ;;  %v6215_v41 = vld [vmem:[%s11104_s1 + $0x7b8] sm:$0xf0] }
 0x2a4   :  { %4359 = vmatpush.bf16.msra.mxu3 %v5962_v32  ;;  %v6842_v32 = vld [vmem:[%s11104_s1 + $0x654] sm:$0xf]  ;;  %v6178_v31 = vor.u32 %v6876_v4, %v6175_v45  ;;  %v6836_v45 = vld [vmem:[%s11104_s1 + $0x624] sm:$0xf] }
 0x2a5   :  { %4318 = vmatpush.bf16.msra.mxu0 %v5762_v38  ;;  %v6039_v38 = vld [vmem:[%s11104_s1 + $0x658] sm:$0xf0] }
 0x2a6   :  { %4332 = vmatpush.bf16.msra.mxu1 %v5826_v63  ;;  %v10294_v63 = vld [vmem:[%s11105_s2] sm:$0x3]  ;;  %v6042_v1 = vor.u32 %v6842_v32, %v6039_v38  ;;  %v6868_v32 = vld [vmem:[%s11104_s1 + $0x724] sm:$0xf]  ;;  %v6143_v38 = vld [vmem:[%s11104_s1 + $0x728] sm:$0xf0] }
 0x2a7   :  { %4346 = vmatpush.bf16.msra.mxu2 %v5890_v11  ;;  %v6103_v11 = vld [vmem:[%s11104_s1 + $0x6d8] sm:$0xf0] }
 0x2a8   :  { %4360 = vmatpush.bf16.msra.mxu3 %v5954_v8  ;;  %v11249_v8 = vld [vmem:[#allocation14_spill] sm:$0xff]  ;;  %v6106_v13 = vor.u32 %v6858_v56, %v6103_v11  ;;  %v10341_v36 = vpop.f32.mrf.mxu1  ;;  %v6207_v56 = vld [vmem:[%s11104_s1 + $0x7a8] sm:$0xf0] }
 0x2a9   :  { %4319 = vmatpush.bf16.msra.mxu0 %v5754_v30  ;;  %v6231_v30 = vld [vmem:[%s11104_s1 + $0x7d8] sm:$0xf0] }
 0x2aa   :  { %4333 = vmatpush.bf16.msra.mxu1 %v5818_v40  ;;  %v2110_v40 = vperm.slane %v10294_v63, 0  ;;  %v6234_v17 = vor.u32 %v6890_v29, %v6231_v30  ;;  %v6146_v29 = vor.u32 %v6868_v32, %v6143_v38 }
 0x2ab   :  { %4347 = vmatpush.bf16.msra.mxu2 %v5882_v55  ;;  %v6031_v55 = vld [vmem:[%s11104_s1 + $0x648] sm:$0xf0]  ;;  %v10384_v18 = vpop.f32.mrf.mxu0 }
 0x2ac   :  { %4361 = vmatpush.bf16.msra.mxu3 %v5946_v7  ;;  %v10339_v7 = vpop.f32.mrf.mxu3  ;;  %v6034_v61 = vor.u32 %v6840_v54, %v6031_v55  ;;  %v6010_v54 = vor.u32 %v6834_v62, %v6007_v59  ;;  %v6882_v55 = vld [vmem:[%s11104_s1 + $0x794] sm:$0xf] }
 0x2ad   :  { %4320 = vmatpush.bf16.msra.mxu0 %v5746_v2  ;;  %v6223_v2 = vld [vmem:[%s11104_s1 + $0x7c8] sm:$0xf0] }
 0x2ae   :  { %4334 = vmatpush.bf16.msra.mxu1 %v5810_v3  ;;  %v3987_v3 = vadd.f32 %v10154_v51, %v2110_v40  ;;  %v6087_v51 = vld [vmem:[%s11104_s1 + $0x6b8] sm:$0xf0] }
 0x2af   :  { %4348 = vmatpush.bf16.msra.mxu2 %v5874_v21  ;;  %v6023_v21 = vld [vmem:[%s11104_s1 + $0x638] sm:$0xf0]  ;;  %v6090_v4 = vor.u32 %v6854_v52, %v6087_v51  ;;  %v6002_v52 = vor.u32 %v6832_v20, %v5999_v48  ;;  %v6191_v51 = vld [vmem:[%s11104_s1 + $0x788] sm:$0xf0]  ;;  %v6301_v20 = vld [vmem:[%s11106_s3 + $0x60] sm:$0xf] }
 0x2b0   :  { %4362 = vmatpush.bf16.msra.mxu3 %v5938_v26  ;;  %4321 = vmatmul.bf16.vlgmr.msra.gmra.mxu0 %v11247_v57  ;;  %v6026_v0 = vor.u32 %v6838_v46, %v6023_v21  ;;  %v6886_v26 = vld [vmem:[%s11104_s1 + $0x7b4] sm:$0xf]  ;;  %v4001_v44 = vadd.f32 %v10180_v27, %v3987_v3  ;;  %v6852_v27 = vld [vmem:[%s11104_s1 + $0x6a4] sm:$0xf]  ;;  %v6941_v3 = vld [vmem:[%s11106_s3 + $0x164] sm:$0xf0] }
 0x2b1   :  { %4369 = vmatpush.bf16.msrb.mxu0 %v6058_v33  ;;  %4335 = vmatmul.bf16.vlgmr.msra.gmra.mxu1 %v11249_v8  ;;  %v10356_v33 = vpop.f32.mrf.mxu2  ;;  %v6864_v46 = vld [vmem:[%s11104_s1 + $0x704] sm:$0xf]  ;;  %v6127_v21 = vld [vmem:[%s11104_s1 + $0x708] sm:$0xf0]  ;;  %v6911_v48 = vld [vmem:[%s11106_s3 + $0x74] sm:$0xf0] }
 0x2b2   :  { %4383 = vmatpush.bf16.msrb.mxu1 %v6122_v16  ;;  %4349 = vmatmul.bf16.vlgmr.msra.gmra.mxu2 %v11248_v25  ;;  %v6226_v16 = vor.u32 %v6888_v19, %v6223_v2  ;;  %v4015_v11 = vadd.f32 %v10197_v14, %v4001_v44  ;;  %v6850_v14 = vld [vmem:[%s11104_s1 + $0x694] sm:$0xf]  ;;  %v6421_v2 = vld [vmem:[%s11106_s3 + $0x150] sm:$0xf] }
 0x2b3   :  { %4397 = vmatpush.bf16.msrb.mxu2 %v6186_v60  ;;  %4363 = vmatmul.bf16.vlgmr.msra.gmra.mxu3 %v11250_v23  ;;  %v6870_v60 = vld [vmem:[%s11104_s1 + $0x734] sm:$0xf]  ;;  %v6135_v23 = vld [vmem:[%s11104_s1 + $0x718] sm:$0xf0]  ;;  %v10447_v19 = vpop.f32.mrf.mxu0 }
 0x2b4   :  { %4411 = vmatpush.bf16.msrb.mxu3 %v6250_v43  ;;  %v3989_v43 = vadd.f32 %v10232_v5, %v2110_v40  ;;  %v6154_v28 = vor.u32 %v6870_v60, %v6151_v37  ;;  %v6079_v5 = vld [vmem:[%s11104_s1 + $0x6a8] sm:$0xf0]  ;;  %v10412_v8 = vpop.f32.mrf.mxu3  ;;  %v6866_v40 = vld [vmem:[%s11104_s1 + $0x714] sm:$0xf]  ;;  %v4029_v53 = vadd.f32 %v10261_v22, %v4015_v11 }
 0x2b5   :  { %4370 = vmatpush.bf16.msrb.mxu0 %v6050_v39  ;;  %v6015_v39 = vld [vmem:[%s11104_s1 + $0x628] sm:$0xf0]  ;;  %v6138_v22 = vor.u32 %v6866_v40, %v6135_v23  ;;  %v6325_v40 = vld [vmem:[%s11106_s3 + $0x90] sm:$0xf]  ;;  %v6917_v23 = vld [vmem:[%s11106_s3 + $0xa4] sm:$0xf0] }
 0x2b6   :  { %4384 = vmatpush.bf16.msrb.mxu1 %v6114_v12  ;;  %v6218_v12 = vor.u32 %v6886_v26, %v6215_v41  ;;  %v6018_v57 = vor.u32 %v6836_v45, %v6015_v39  ;;  %v4003_v25 = vadd.f32 %v10263_v24, %v3989_v43  ;;  %v6071_v24 = vld [vmem:[%s11104_s1 + $0x698] sm:$0xf0]  ;;  %v6423_v60 = vld [vmem:[%s11106_s3 + $0x168] sm:$0xf0]  ;;  %v6422_v41 = vor.u32 %v6941_v3, %v6421_v2  ;;  %v6935_v45 = vld [vmem:[%s11106_s3 + $0x134] sm:$0xf0] }
 0x2b7   :  { %4398 = vmatpush.bf16.msrb.mxu2 %v6178_v31  ;;  %v6884_v31 = vld [vmem:[%s11104_s1 + $0x7a4] sm:$0xf]  ;;  %v6130_v43 = vor.u32 %v6864_v46, %v6127_v21  ;;  %v6303_v2 = vld [vmem:[%s11106_s3 + $0x78] sm:$0xf0]  ;;  %v6302_v46 = vor.u32 %v6911_v48, %v6301_v20  ;;  %v6921_v20 = vld [vmem:[%s11106_s3 + $0xcc] sm:$0xf] }
 0x2b8   :  { %4412 = vmatpush.bf16.msrb.mxu3 %v6242_v15  ;;  %v6082_v15 = vor.u32 %v6852_v27, %v6079_v5  ;;  %v6210_v30 = vor.u32 %v6884_v31, %v6207_v56  ;;  %v4017_v6 = vadd.f32 %v10277_v49, %v4003_v25  ;;  %v6063_v49 = vld [vmem:[%s11104_s1 + $0x688] sm:$0xf0]  ;;  %v6399_v5 = vld [vmem:[%s11106_s3 + $0x138] sm:$0xf0]  ;;  %v6929_v31 = vld [vmem:[%s11106_s3 + $0x104] sm:$0xf0] }
 0x2b9   :  { %4371 = vmatpush.bf16.msrb.mxu0 %v6042_v1  ;;  %v10414_v1 = vpop.f32.mrf.mxu1  ;;  %v6359_v48 = vld [vmem:[%s11106_s3 + $0xe0] sm:$0xf0] }
 0x2ba   :  { %4385 = vmatpush.bf16.msrb.mxu1 %v6106_v13  ;;  %v10428_v13 = vpop.f32.mrf.mxu2  ;;  %v4031_v37 = vadd.f32 %v10339_v7, %v4017_v6 }
 0x2bb   :  { %4399 = vmatpush.bf16.msrb.mxu2 %v6170_v47  ;;  %v6199_v47 = vld [vmem:[%s11104_s1 + $0x798] sm:$0xf0]  ;;  %v4100_v11 = vpop.f32.mrf.mxu0 }
 0x2bc   :  { %4413 = vmatpush.bf16.msrb.mxu3 %v6234_v17  ;;  %v6074_v17 = vor.u32 %v6850_v14, %v6071_v24  ;;  %v4086_v7 = vpop.f32.mrf.mxu3  ;;  %v4045_v32 = vadd.f32 %v10384_v18, %v4031_v37  ;;  %v6375_v18 = vld [vmem:[%s11106_s3 + $0x108] sm:$0xf0]  ;;  %v6902_v37 = vld [vmem:[%s11106_s3 + $0x34] sm:$0xf] }
 0x2bd   :  { %4372 = vmatpush.bf16.msrb.mxu0 %v6034_v61  ;;  %v6848_v61 = vld [vmem:[%s11104_s1 + $0x684] sm:$0xf] }
 0x2be   :  { %4386 = vmatpush.bf16.msrb.mxu1 %v6098_v42  ;;  %v6202_v42 = vor.u32 %v6882_v55, %v6199_v47  ;;  %v6066_v26 = vor.u32 %v6848_v61, %v6063_v49  ;;  %v6908_v49 = vld [vmem:[%s11106_s3 + $0x64] sm:$0xf] }
 0x2bf   :  { %4400 = vmatpush.bf16.msrb.mxu2 %v6162_v35  ;;  %v6880_v35 = vld [vmem:[%s11104_s1 + $0x784] sm:$0xf]  ;;  %s7033_s1 = smov 2  }
 0x2c0   :  { %4414 = vmatpush.bf16.msrb.mxu3 %v6226_v16  ;;  %v6938_v16 = vld [vmem:[%s11106_s3 + $0x154] sm:$0xf]  ;;  %v6194_v39 = vor.u32 %v6880_v35, %v6191_v51  ;;  %v6905_v51 = vld [vmem:[%s11106_s3 + $0x44] sm:$0xf0] }
 0x2c1   :  { %4373 = vmatpush.bf16.msrb.mxu0 %v6026_v0  ;;  %v4043_v0 = vadd.f32 %v10310_v34, %v4029_v53  ;;  %v4112_v44 = vpop.f32.mrf.mxu1  ;;  %v6932_v34 = vld [vmem:[%s11106_s3 + $0x124] sm:$0xf]  ;;  %v6327_v53 = vld [vmem:[%s11106_s3 + $0xa8] sm:$0xf0] }
 0x2c2   :  { %4387 = vmatpush.bf16.msrb.mxu1 %v6090_v4  ;;  %v6397_v4 = vld [vmem:[%s11106_s3 + $0x120] sm:$0xf]  ;;  %v4126_v27 = vpop.f32.mrf.mxu2  ;;  %v6402_v56 = vor.u32 %v6932_v34, %v6399_v5  ;;  %v6896_v34 = vld [vmem:[%s11106_s3 + $0x4] sm:$0xf]  ;;  %v6255_v5 = vld [vmem:[%s11106_s3 + $0x18] sm:$0xf0] }
 0x2c3   :  { %4401 = vmatpush.bf16.msrb.mxu2 %v6154_v28  ;;  %v6426_v28 = vor.u32 %v6938_v16, %v6423_v60  ;;  %v6398_v38 = vor.u32 %v6935_v45, %v6397_v4  ;;  %v4154_v47 = vpop.f32.mrf.mxu0  ;;  %v6306_v60 = vor.u32 %v6908_v49, %v6303_v2  ;;  %v6899_v4 = vld [vmem:[%s11106_s3 + $0x14] sm:$0xf0]  ;;  %v6918_v49 = vld [vmem:[%s11106_s3 + $0xac] sm:$0xf0]  ;;  %v6362_v2 = vor.u32 %v6921_v20, %v6359_v48  ;;  %v6341_v48 = vld [vmem:[%s11106_s3 + $0xa0] sm:$0xf] }
 0x2c4   :  { %4415 = vmatpush.bf16.msrb.mxu3 %v6218_v12  ;;  %v4057_v12 = vadd.f32 %v10341_v36, %v4043_v0  ;;  %v6926_v36 = vld [vmem:[%s11106_s3 + $0xf4] sm:$0xf]  ;;  %v6279_v0 = vld [vmem:[%s11106_s3 + $0x48] sm:$0xf0] }
 0x2c5   :  { %4374 = vmatpush.bf16.msrb.mxu0 %v6018_v57  ;;  %v6373_v57 = vld [vmem:[%s11106_s3 + $0xf0] sm:$0xf] }
 0x2c6   :  { %4388 = vmatpush.bf16.msrb.mxu1 %v6082_v15  ;;  %v4071_v25 = vadd.f32 %v10356_v33, %v4057_v12  ;;  %v4059_v15 = vadd.f32 %v10414_v1, %v4045_v32  ;;  %v6374_v62 = vor.u32 %v6929_v31, %v6373_v57  ;;  %v6378_v33 = vor.u32 %v6926_v36, %v6375_v18  ;;  %v6431_v57 = vld [vmem:[%s11106_s3 + $0x170] sm:$0xf0] }
 0x2c7   :  { %4402 = vmatpush.bf16.msrb.mxu2 %v6146_v29  ;;  %v4140_v29 = vpop.f32.mrf.mxu3  ;;  %v6258_v18 = vor.u32 %v6896_v34, %v6255_v5  ;;  %v6263_v34 = vld [vmem:[%s11106_s3 + $0x20] sm:$0xf0] }
 0x2c8   :  { %4416 = vmatpush.bf16.msrb.mxu3 %v6210_v30  ;;  %v4073_v59 = vadd.f32 %v10428_v13, %v4059_v15  ;;  %v4085_v14 = vadd.f32 %v10412_v8, %v4071_v25  ;;  %v6914_v8 = vld [vmem:[%s11106_s3 + $0x94] sm:$0xf]  ;;  %v6405_v25 = vld [vmem:[%s11106_s3 + $0x128] sm:$0xf]  ;;  %v6936_v15 = vld [vmem:[%s11106_s3 + $0x13c] sm:$0xf0] }
 0x2c9   :  { %4375 = vmatpush.bf16.msrb.mxu0 %v6010_v54  ;;  %v4114_v1 = vpop.f32.mrf.mxu1 }
 0x2ca   :  { %4389 = vmatpush.bf16.msrb.mxu1 %v6074_v17  ;;  %v4128_v30 = vpop.f32.mrf.mxu2  ;;  %v4087_v13 = vadd.f32 %v4086_v7, %v4073_v59  ;;  %v4099_v54 = vadd.f32 %v10447_v19, %v4085_v14  ;;  %v6326_v17 = vor.u32 %v6917_v23, %v6325_v40  ;;  %v6330_v19 = vor.u32 %v6914_v8, %v6327_v53  ;;  %v6429_v7 = vld [vmem:[%s11106_s3 + $0x158] sm:$0xf]  ;;  %v6930_v14 = vld [vmem:[%s11106_s3 + $0x10c] sm:$0xf0]  ;;  %v6927_v40 = vld [vmem:[%s11106_s3 + $0xfc] sm:$0xf] }
 0x2cb   :  { %4403 = vmatpush.bf16.msrb.mxu2 %v6138_v22  ;;  %v6383_v23 = vld [vmem:[%s11106_s3 + $0x110] sm:$0xf0]  ;;  %v6924_v8 = vld [vmem:[%s11106_s3 + $0xdc] sm:$0xf0] }
 0x2cc   :  { %4417 = vmatpush.bf16.msrb.mxu3 %v6202_v42  ;;  %v4101_v6 = vadd.f32 %v4100_v11, %v4087_v13  ;;  %v4113_v61 = vadd.f32 %v4112_v44, %v4099_v54  ;;  %v4156_v44 = vpop.f32.mrf.mxu0  ;;  %v6386_v53 = vor.u32 %v6927_v40, %v6383_v23  ;;  %v6980_v40 = vld [vmem:[%s11106_s3 + $0x2a4] sm:$0xf]  ;;  %v6591_v23 = vld [vmem:[%s11106_s3 + $0x2b8] sm:$0xf0] }
 0x2cd   :  { %4376 = vmatpush.bf16.msrb.mxu0 %v6002_v52  ;;  %v6277_v52 = vld [vmem:[%s11106_s3 + $0x30] sm:$0xf] }
 0x2ce   :  { %4390 = vmatpush.bf16.msrb.mxu1 %v6066_v26  ;;  %v4127_v3 = vadd.f32 %v4126_v27, %v4113_v61  ;;  %v4115_v42 = vadd.f32 %v4114_v1, %v4101_v6  ;;  %v6942_v27 = vld [vmem:[%s11106_s3 + $0x16c] sm:$0xf0]  ;;  %v6406_v1 = vor.u32 %v6936_v15, %v6405_v25  ;;  %v6389_v15 = vld [vmem:[%s11106_s3 + $0x100] sm:$0xf] }
 0x2cf   :  { %4404 = vmatpush.bf16.msrb.mxu2 %v6130_v43  ;;  %v4142_v21 = vpop.f32.mrf.mxu3  ;;  %v6253_v43 = vld [vmem:[%s11106_s3] sm:$0xf]  ;;  %v6430_v11 = vor.u32 %v6942_v27, %v6429_v7  ;;  %v6943_v7 = vld [vmem:[%s11106_s3 + $0x174] sm:$0xf0]  ;;  %v6897_v27 = vld [vmem:[%s11106_s3 + $0xc] sm:$0xf] }
 0x2d0   :  { %4418 = vmatpush.bf16.msrb.mxu3 %v6194_v39  ;;  %4377 = vmatmul.bf16.vlgmr.msrb.gmra.mxu0 %v9561_v9  ;;  %v6349_v9 = vld [vmem:[%s11106_s3 + $0xc0] sm:$0xf]  ;;  %v4129_v16 = vadd.f32 %v4128_v30, %v4115_v42  ;;  %v4141_v26 = vadd.f32 %v4140_v29, %v4127_v3  ;;  %v6254_v32 = vor.u32 %v6899_v4, %v6253_v43  ;;  %v6407_v29 = vld [vmem:[%s11106_s3 + $0x140] sm:$0xf0]  ;;  %v6915_v3 = vld [vmem:[%s11106_s3 + $0x9c] sm:$0xf] }
 0x2d1   :  { %5007 = vmatpush.bf16.msra.mxu0 %v6422_v41  ;;  %4391 = vmatmul.bf16.vlgmr.msrb.gmra.mxu1 %v9635_v10  ;;  %v6923_v10 = vld [vmem:[%s11106_s3 + $0xd4] sm:$0xf0]  ;;  %v4168_v22 = vpop.f32.mrf.mxu1  ;;  %v6278_v41 = vor.u32 %v6905_v51, %v6277_v52  ;;  %v6335_v42 = vld [vmem:[%s11106_s3 + $0xb0] sm:$0xf0]  ;;  %v6909_v51 = vld [vmem:[%s11106_s3 + $0x6c] sm:$0xf] }
 0x2d2   :  { %4405 = vmatmul.bf16.vlgmr.msrb.gmra.mxu2 %v9598_v58  ;;  %v6920_v58 = vld [vmem:[%s11106_s3 + $0xc4] sm:$0xf]  ;;  %v6350_v24 = vor.u32 %v6923_v10, %v6349_v9  ;;  %v4182_v35 = vpop.f32.mrf.mxu2  ;;  %v4143_v45 = vadd.f32 %v4142_v21, %v4129_v16  ;;  %v4155_v39 = vadd.f32 %v4154_v47, %v4141_v26  ;;  %v6357_v47 = vld [vmem:[%s11106_s3 + $0xc8] sm:$0xf]  ;;  %v6338_v52 = vor.u32 %v6915_v3, %v6335_v42  ;;  %v6565_v3 = vld [vmem:[%s11106_s3 + $0x270] sm:$0xf] }
 0x2d3   :  { %5033 = vmatpush.bf16.msra.mxu2 %v6426_v28  ;;  %4419 = vmatmul.bf16.vlgmr.msrb.gmra.mxu3 %v9729_v50  ;;  %v6351_v50 = vld [vmem:[%s11106_s3 + $0xd8] sm:$0xf0]  ;;  %v6282_v28 = vor.u32 %v6902_v37, %v6279_v0  ;;  %v6358_v61 = vor.u32 %v6924_v8, %v6357_v47  ;;  %v6309_v21 = vld [vmem:[%s11106_s3 + $0x68] sm:$0xf]  ;;  %v6311_v16 = vld [vmem:[%s11106_s3 + $0x80] sm:$0xf0]  ;;  %v6594_v8 = vor.u32 %v6980_v40, %v6591_v23 }
 0x2d4   :  { %v6354_v55 = vor.u32 %v6920_v58, %v6351_v50  ;;  %v4157_v12 = vadd.f32 %v4156_v44, %v4143_v45  ;;  %v4169_v36 = vadd.f32 %v4168_v22, %v4155_v39  ;;  %v6381_v50 = vld [vmem:[%s11106_s3 + $0xf8] sm:$0xf]  ;;  %v6906_v0 = vld [vmem:[%s11106_s3 + $0x4c] sm:$0xf0]  ;;  %v6314_v26 = vor.u32 %v6909_v51, %v6311_v16  ;;  %v6287_v44 = vld [vmem:[%s11106_s3 + $0x50] sm:$0xf0] }
 0x2d5   :  { %5008 = vmatpush.bf16.msra.mxu0 %v6398_v38  ;;  %v6939_v38 = vld [vmem:[%s11106_s3 + $0x15c] sm:$0xf]  ;;  %v6382_v54 = vor.u32 %v6930_v14, %v6381_v50  ;;  %v6333_v22 = vld [vmem:[%s11106_s3 + $0x98] sm:$0xf]  ;;  %v6261_v4 = vld [vmem:[%s11106_s3 + $0x8] sm:$0xf] }
 0x2d6   :  { %v6434_v9 = vor.u32 %v6939_v38, %v6431_v57  ;;  %v4183_v10 = vadd.f32 %v4182_v35, %v4169_v36  ;;  %v6912_v35 = vld [vmem:[%s11106_s3 + $0x7c] sm:$0xf0]  ;;  %v6285_v37 = vld [vmem:[%s11106_s3 + $0x38] sm:$0xf]  ;;  %v6266_v57 = vor.u32 %v6897_v27, %v6263_v34  ;;  %v6934_v36 = vld [vmem:[%s11106_s3 + $0x134] sm:$0xf] }
 0x2d7   :  { %5034 = vmatpush.bf16.msra.mxu2 %v6402_v56  ;;  %v6286_v43 = vor.u32 %v6906_v0, %v6285_v37  ;;  %v6900_v45 = vld [vmem:[%s11106_s3 + $0x1c] sm:$0xf0]  ;;  %v6983_v14 = vld [vmem:[%s11106_s3 + $0x2b4] sm:$0xf0]  ;;  %v6977_v42 = vld [vmem:[%s11106_s3 + $0x284] sm:$0xf0] }
 0x2d8   :  { %v6262_v5 = vor.u32 %v6900_v45, %v6261_v4  ;;  %v6589_v50 = vld [vmem:[%s11106_s3 + $0x2a0] sm:$0xf]  ;;  %v6317_v51 = vld [vmem:[%s11106_s3 + $0x70] sm:$0xf]  ;;  %v6913_v16 = vld [vmem:[%s11106_s3 + $0x84] sm:$0xf0] }
 0x2d9   :  { %5009 = vmatpush.bf16.msra.mxu0 %v6374_v62  ;;  %v4170_v56 = vpop.f32.mrf.mxu1  ;;  %v6590_v47 = vor.u32 %v6983_v14, %v6589_v50  ;;  %v6971_v4 = vld [vmem:[%s11106_s3 + $0x254] sm:$0xf0]  ;;  %v6968_v45 = vld [vmem:[%s11106_s3 + $0x244] sm:$0xf]  ;;  %v6543_v34 = vld [vmem:[%s11106_s3 + $0x258] sm:$0xf0] }
 0x2da   :  { %v4184_v62 = vpop.f32.mrf.mxu2  ;;  %v4171_v59 = vadd.f32 %v4170_v56, %v4157_v12  ;;  %v6940_v12 = vld [vmem:[%s11106_s3 + $0x164] sm:$0xf]  ;;  %v6937_v56 = vld [vmem:[%s11106_s3 + $0x144] sm:$0xf0]  ;;  %v6493_v50 = vld [vmem:[%s11106_s3 + $0x1e0] sm:$0xf] }
 0x2db   :  { %5035 = vmatpush.bf16.msra.mxu2 %v6378_v33  ;;  %v6933_v33 = vld [vmem:[%s11106_s3 + $0x12c] sm:$0xf]  ;;  %v6959_v14 = vld [vmem:[%s11106_s3 + $0x1f4] sm:$0xf0]  ;;  %v6495_v40 = vld [vmem:[%s11106_s3 + $0x1f8] sm:$0xf0] }
 0x2dc   :  { %v4185_v58 = vadd.f32 %v4184_v62, %v4171_v59  ;;  %v6931_v62 = vld [vmem:[%s11106_s3 + $0x114] sm:$0xf0]  ;;  %v6989_v59 = vld [vmem:[%s11106_s3 + $0x2e4] sm:$0xf0] }
 0x2dd   :  { %5010 = vmatpush.bf16.msra.mxu0 %v6350_v24  ;;  %v6410_v24 = vor.u32 %v6933_v33, %v6407_v29  ;;  %v6986_v33 = vld [vmem:[%s11106_s3 + $0x2d4] sm:$0xf] }
 0x2df   :  { %5036 = vmatpush.bf16.msra.mxu2 %v6354_v55 }
 0x2e0   :  { %v4196_v31 = vpop.f32.mrf.mxu3 }
 0x2e1   :  { %5011 = vmatpush.bf16.msra.mxu0 %v6326_v17  ;;  %v4197_v30 = vadd.f32 %v4196_v31, %v4183_v10  ;;  %v6413_v31 = vld [vmem:[%s11106_s3 + $0x130] sm:$0xf] }
 0x2e2   :  { %v6414_v25 = vor.u32 %v6937_v56, %v6413_v31  ;;  %v6613_v10 = vld [vmem:[%s11106_s3 + $0x2d0] sm:$0xf]  ;;  %v6965_v31 = vld [vmem:[%s11106_s3 + $0x224] sm:$0xf0]  ;;  %v6962_v56 = vld [vmem:[%s11106_s3 + $0x214] sm:$0xf] }
 0x2e3   :  { %5037 = vmatpush.bf16.msra.mxu2 %v6330_v19  ;;  %v4425_v6 = vmax.f32 %v4197_v30, 0.0 }
 0x2e5   :  { %5012 = vmatpush.bf16.msra.mxu0 %v6302_v46  ;;  %v6334_v46 = vor.u32 %v6918_v49, %v6333_v22  ;;  %v6916_v49 = vld [vmem:[%s11106_s3 + $0xa4] sm:$0xf] }
 0x2e7   :  { %5038 = vmatpush.bf16.msra.mxu2 %v6306_v60  ;;  %v6310_v60 = vor.u32 %v6912_v35, %v6309_v21  ;;  %v6566_v35 = vor.u32 %v6977_v42, %v6565_v3  ;;  %v2111_v3 = vperm.slane %v10294_v63, 1  ;;  %v6987_v42 = vld [vmem:[%s11106_s3 + $0x2dc] sm:$0xf] }
 0x2e8   :  { %v4198_v13 = vpop.f32.mrf.mxu3 }
 0x2e9   :  { %5013 = vmatpush.bf16.msra.mxu0 %v6278_v41  ;;  %v4199_v55 = vadd.f32 %v4198_v13, %v4185_v58  ;;  %v6903_v41 = vld [vmem:[%s11106_s3 + $0x3c] sm:$0xf]  ;;  %v6615_v58 = vld [vmem:[%s11106_s3 + $0x2e8] sm:$0xf0]  ;;  %v6390_v13 = vor.u32 %v6931_v62, %v6389_v15  ;;  %v6269_v15 = vld [vmem:[%s11106_s3 + $0x10] sm:$0xf] }
 0x2ea   :  { %v6290_v39 = vor.u32 %v6903_v41, %v6287_v44  ;;  %v6618_v30 = vor.u32 %v6986_v33, %v6615_v58  ;;  %v6319_v41 = vld [vmem:[%s11106_s3 + $0x88] sm:$0xf0]  ;;  %v6318_v44 = vor.u32 %v6913_v16, %v6317_v51  ;;  %v6901_v62 = vld [vmem:[%s11106_s3 + $0x24] sm:$0xf0]  ;;  %v6898_v33 = vld [vmem:[%s11106_s3 + $0x14] sm:$0xf] }
 0x2eb   :  { %5039 = vmatpush.bf16.msra.mxu2 %v6282_v28  ;;  %v4427_v17 = vmax.f32 %v4199_v55, 0.0  ;;  %v6437_v28 = vld [vmem:[%s11106_s3 + $0x160] sm:$0xf]  ;;  %v6925_v55 = vld [vmem:[%s11106_s3 + $0xe4] sm:$0xf0]  ;;  %v6270_v58 = vor.u32 %v6901_v62, %v6269_v15 }
 0x2ec   :  { %v6438_v38 = vor.u32 %v6943_v7, %v6437_v28  ;;  %5046 = vmatpush.bf16.msra.mxu3 %v6618_v30  ;;  %v6293_v28 = vld [vmem:[%s11106_s3 + $0x40] sm:$0xf]  ;;  %v6907_v7 = vld [vmem:[%s11106_s3 + $0x54] sm:$0xf0]  ;;  %v6494_v30 = vor.u32 %v6959_v14, %v6493_v50  ;;  %v6969_v15 = vld [vmem:[%s11106_s3 + $0x24c] sm:$0xf] }
 0x2ed   :  { %5014 = vmatpush.bf16.msra.mxu0 %v6254_v32  ;;  %v10621_v19 = vpack.c.bf16 %v4427_v17, %v4425_v6  ;;  %v6439_v32 = vld [vmem:[%s11106_s3 + $0x178] sm:$0xf0]  ;;  %v6922_v6 = vld [vmem:[%s11106_s3 + $0xd4] sm:$0xf]  ;;  %v6367_v17 = vld [vmem:[%s11106_s3 + $0xe8] sm:$0xf0]  ;;  %v10777_v37 = vpop.f32.mrf.mxu0 }
 0x2ee   :  { %v6370_v22 = vor.u32 %v6922_v6, %v6367_v17  ;;  %v6471_v6 = vld [vmem:[%s11106_s3 + $0x1c8] sm:$0xf0] }
 0x2ef   :  { %5040 = vmatpush.bf16.msra.mxu2 %v6258_v18  ;;  %v6415_v18 = vld [vmem:[%s11106_s3 + $0x148] sm:$0xf0] }
 0x2f0   :  { %5015 = vmatmul.bf16.vlgmr.msra.gmra.mxu0 %v10621_v19  ;;  %v6418_v29 = vor.u32 %v6934_v36, %v6415_v18  ;;  %5047 = vmatpush.bf16.msra.mxu3 %v6594_v8  ;;  %v6519_v18 = vld [vmem:[%s11106_s3 + $0x228] sm:$0xf0] }
 0x2f1   :  { %5059 = vmatpush.bf16.msrb.mxu0 %v6430_v11  ;;  %v6442_v11 = vor.u32 %v6940_v12, %v6439_v32  ;;  %v6904_v12 = vld [vmem:[%s11106_s3 + $0x44] sm:$0xf]  ;;  %v6295_v32 = vld [vmem:[%s11106_s3 + $0x58] sm:$0xf0] }
 0x2f2   :  { %5041 = vmatmul.bf16.vlgmr.msra.gmra.mxu2 %v10621_v19 }
 0x2f3   :  { %5085 = vmatpush.bf16.msrb.mxu2 %v6434_v9  ;;  %v6928_v9 = vld [vmem:[%s11106_s3 + $0x104] sm:$0xf] }
 0x2f5   :  { %5060 = vmatpush.bf16.msrb.mxu0 %v6406_v1  ;;  %v6614_v1 = vor.u32 %v6989_v59, %v6613_v10  ;;  %v6298_v59 = vor.u32 %v6904_v12, %v6295_v32 }
 0x2f6   :  { %v10831_v10 = vpop.f32.mrf.mxu3 }
 0x2f7   :  { %5086 = vmatpush.bf16.msrb.mxu2 %v6410_v24  ;;  %v6391_v24 = vld [vmem:[%s11106_s3 + $0x118] sm:$0xf0]  ;;  %5020 = vmatpush.bf16.msra.mxu1 %v6614_v1  ;;  %v4212_v1 = vpop.f32.mrf.mxu0 }
 0x2f9   :  { %5061 = vmatpush.bf16.msrb.mxu0 %v6382_v54  ;;  %v6365_v54 = vld [vmem:[%s11106_s3 + $0xd0] sm:$0xf] }
 0x2fa   :  { %v6366_v20 = vor.u32 %v6925_v55, %v6365_v54  ;;  %v6469_v54 = vld [vmem:[%s11106_s3 + $0x1b0] sm:$0xf]  ;;  %v6953_v55 = vld [vmem:[%s11106_s3 + $0x1c4] sm:$0xf0] }
 0x2fb   :  { %5087 = vmatpush.bf16.msrb.mxu2 %v6386_v53  ;;  %v6394_v53 = vor.u32 %v6928_v9, %v6391_v24  ;;  %5021 = vmatpush.bf16.msra.mxu1 %v6590_v47  ;;  %v6522_v9 = vor.u32 %v6962_v56, %v6519_v18  ;;  %v6956_v24 = vld [vmem:[%s11106_s3 + $0x1e4] sm:$0xf]  ;;  %v6950_v47 = vld [vmem:[%s11106_s3 + $0x1b4] sm:$0xf]  ;;  %v6549_v18 = vld [vmem:[%s11106_s3 + $0x248] sm:$0xf] }
 0x2fc   :  { %v6474_v17 = vor.u32 %v6950_v47, %v6471_v6  ;;  %v6501_v47 = vld [vmem:[%s11106_s3 + $0x1e8] sm:$0xf] }
 0x2fd   :  { %5062 = vmatpush.bf16.msrb.mxu0 %v6358_v61  ;;  %v6919_v61 = vld [vmem:[%s11106_s3 + $0xb4] sm:$0xf0] }
 0x2fe   :  { %v6342_v21 = vor.u32 %v6919_v61, %v6341_v48  ;;  %v6947_v48 = vld [vmem:[%s11106_s3 + $0x194] sm:$0xf0]  ;;  %v6944_v61 = vld [vmem:[%s11106_s3 + $0x184] sm:$0xf] }
 0x2ff   :  { %5088 = vmatpush.bf16.msrb.mxu2 %v6362_v2  ;;  %v6343_v2 = vld [vmem:[%s11106_s3 + $0xb8] sm:$0xf0]  ;;  %5022 = vmatpush.bf16.msra.mxu1 %v6566_v35 }
 0x300   :  { %v6346_v0 = vor.u32 %v6916_v49, %v6343_v2  ;;  %v6621_v49 = vld [vmem:[%s11106_s3 + $0x2d8] sm:$0xf]  ;;  %v6990_v2 = vld [vmem:[%s11106_s3 + $0x2ec] sm:$0xf0] }
 0x301   :  { %5063 = vmatpush.bf16.msrb.mxu0 %v6334_v46  ;;  %v6974_v46 = vld [vmem:[%s11106_s3 + $0x274] sm:$0xf]  ;;  %v6622_v16 = vor.u32 %v6990_v2, %v6621_v49  ;;  %v6477_v49 = vld [vmem:[%s11106_s3 + $0x1b8] sm:$0xf]  ;;  %v6954_v2 = vld [vmem:[%s11106_s3 + $0x1cc] sm:$0xf0] }
 0x303   :  { %5089 = vmatpush.bf16.msrb.mxu2 %v6338_v52  ;;  %v6567_v52 = vld [vmem:[%s11106_s3 + $0x288] sm:$0xf0] }
 0x305   :  { %5064 = vmatpush.bf16.msrb.mxu0 %v6310_v60  ;;  %v6570_v60 = vor.u32 %v6974_v46, %v6567_v52  ;;  %v6623_v46 = vld [vmem:[%s11106_s3 + $0x2f0] sm:$0xf0]  ;;  %v4254_v52 = vpop.f32.mrf.mxu3 }
 0x306   :  { %v6626_v63 = vor.u32 %v6987_v42, %v6623_v46 }
 0x307   :  { %5090 = vmatpush.bf16.msrb.mxu2 %v6314_v26  ;;  %v6910_v26 = vld [vmem:[%s11106_s3 + $0x74] sm:$0xf]  ;;  %5048 = vmatpush.bf16.msra.mxu3 %v6570_v60  ;;  %v6597_v60 = vld [vmem:[%s11106_s3 + $0x2a8] sm:$0xf] }
 0x309   :  { %5065 = vmatpush.bf16.msrb.mxu0 %v6286_v43  ;;  %v6541_v43 = vld [vmem:[%s11106_s3 + $0x240] sm:$0xf] }
 0x30a   :  { %v6542_v27 = vor.u32 %v6971_v4, %v6541_v43 }
 0x30b   :  { %5091 = vmatpush.bf16.msrb.mxu2 %v6290_v39  ;;  %v10794_v39 = vpop.f32.mrf.mxu1 }
 0x30c   :  { %5023 = vmatpush.bf16.msra.mxu1 %v6542_v27  ;;  %v6573_v27 = vld [vmem:[%s11106_s3 + $0x278] sm:$0xf] }
 0x30d   :  { %5066 = vmatpush.bf16.msrb.mxu0 %v6262_v5  ;;  %v6322_v5 = vor.u32 %v6910_v26, %v6319_v41  ;;  %v4211_v26 = vadd.f32 %v10777_v37, %v2111_v3  ;;  %v4266_v41 = vpop.f32.mrf.mxu0 }
 0x30f   :  { %5092 = vmatpush.bf16.msrb.mxu2 %v6266_v57  ;;  %v6517_v57 = vld [vmem:[%s11106_s3 + $0x210] sm:$0xf] }
 0x310   :  { %5067 = vmatmul.bf16.vlgmr.msrb.gmra.mxu0 %v10621_v19  ;;  %v6518_v36 = vor.u32 %v6965_v31, %v6517_v57 }
 0x311   :  { %5111 = vmatpush.bf16.msra.mxu0 %v6438_v38  ;;  %v6546_v38 = vor.u32 %v6968_v45, %v6543_v34  ;;  %v6978_v34 = vld [vmem:[%s11106_s3 + $0x28c] sm:$0xf0] }
 0x312   :  { %5093 = vmatmul.bf16.vlgmr.msrb.gmra.mxu2 %v10621_v19  ;;  %5024 = vmatpush.bf16.msra.mxu1 %v6518_v36 }
 0x313   :  { %5137 = vmatpush.bf16.msra.mxu2 %v6442_v11  ;;  %v6294_v11 = vor.u32 %v6907_v7, %v6293_v28  ;;  %5049 = vmatpush.bf16.msra.mxu3 %v6546_v38  ;;  %v4226_v8 = vpop.f32.mrf.mxu1  ;;  %v4225_v28 = vadd.f32 %v10794_v39, %v4211_v26  ;;  %v4213_v7 = vadd.f32 %v4212_v1, %v2111_v3  ;;  %v6575_v38 = vld [vmem:[%s11106_s3 + $0x290] sm:$0xf0]  ;;  %v6966_v1 = vld [vmem:[%s11106_s3 + $0x22c] sm:$0xf0]  ;;  %v6951_v3 = vld [vmem:[%s11106_s3 + $0x1bc] sm:$0xf] }
 0x314   :  { %v6574_v39 = vor.u32 %v6978_v34, %v6573_v27  ;;  %v6945_v26 = vld [vmem:[%s11106_s3 + $0x18c] sm:$0xf] }
 0x315   :  { %5112 = vmatpush.bf16.msra.mxu0 %v6414_v25  ;;  %v10823_v25 = vpop.f32.mrf.mxu2  ;;  %v4227_v31 = vadd.f32 %v4226_v8, %v4213_v7  ;;  %v4268_v56 = vpop.f32.mrf.mxu0  ;;  %v6960_v8 = vld [vmem:[%s11106_s3 + $0x1fc] sm:$0xf0] }
 0x316   :  { %5025 = vmatpush.bf16.msra.mxu1 %v6494_v30  ;;  %v4239_v12 = vadd.f32 %v10823_v25, %v4225_v28  ;;  %v4308_v32 = vpop.f32.mrf.mxu3  ;;  %v6972_v25 = vld [vmem:[%s11106_s3 + $0x25c] sm:$0xf0] }
 0x317   :  { %5138 = vmatpush.bf16.msra.mxu2 %v6418_v29  ;;  %v6271_v29 = vld [vmem:[%s11106_s3 + $0x28] sm:$0xf0]  ;;  %5050 = vmatpush.bf16.msra.mxu3 %v6522_v9  ;;  %v6550_v9 = vor.u32 %v6972_v25, %v6549_v18 }
 0x318   :  { %v6274_v23 = vor.u32 %v6898_v33, %v6271_v29  ;;  %v6525_v29 = vld [vmem:[%s11106_s3 + $0x218] sm:$0xf] }
 0x319   :  { %5113 = vmatpush.bf16.msra.mxu0 %v6390_v13  ;;  %v6498_v13 = vor.u32 %v6956_v24, %v6495_v40  ;;  %v6526_v14 = vor.u32 %v6966_v1, %v6525_v29  ;;  %v6527_v24 = vld [vmem:[%s11106_s3 + $0x230] sm:$0xf0]  ;;  %v6629_v1 = vld [vmem:[%s11106_s3 + $0x2e0] sm:$0xf] }
 0x31b   :  { %5139 = vmatpush.bf16.msra.mxu2 %v6394_v53  ;;  %v6470_v53 = vor.u32 %v6953_v55, %v6469_v54  ;;  %5051 = vmatpush.bf16.msra.mxu3 %v6498_v13  ;;  %v4280_v4 = vpop.f32.mrf.mxu1 }
 0x31d   :  { %5114 = vmatpush.bf16.msra.mxu0 %v6366_v20  ;;  %v6445_v20 = vld [vmem:[%s11106_s3 + $0x180] sm:$0xf]  ;;  %5026 = vmatpush.bf16.msra.mxu1 %v6470_v53  ;;  %v6957_v53 = vld [vmem:[%s11106_s3 + $0x1ec] sm:$0xf] }
 0x31e   :  { %v6446_v35 = vor.u32 %v6947_v48, %v6445_v20  ;;  %v4310_v40 = vpop.f32.mrf.mxu3  ;;  %v6503_v20 = vld [vmem:[%s11106_s3 + $0x200] sm:$0xf0] }
 0x31f   :  { %5140 = vmatpush.bf16.msra.mxu2 %v6370_v22  ;;  %v6447_v22 = vld [vmem:[%s11106_s3 + $0x198] sm:$0xf0]  ;;  %5052 = vmatpush.bf16.msra.mxu3 %v6474_v17  ;;  %v6502_v17 = vor.u32 %v6960_v8, %v6501_v47  ;;  %v6506_v48 = vor.u32 %v6957_v53, %v6503_v20  ;;  %v6985_v47 = vld [vmem:[%s11106_s3 + $0x2c4] sm:$0xf0]  ;;  %v6982_v8 = vld [vmem:[%s11106_s3 + $0x2b4] sm:$0xf] }
 0x320   :  { %v6450_v51 = vor.u32 %v6944_v61, %v6447_v22  ;;  %v6607_v53 = vld [vmem:[%s11106_s3 + $0x2c8] sm:$0xf0]  ;;  %v6581_v20 = vld [vmem:[%s11106_s3 + $0x280] sm:$0xf] }
 0x321   :  { %5115 = vmatpush.bf16.msra.mxu0 %v6342_v21  ;;  %v4240_v21 = vpop.f32.mrf.mxu2  ;;  %5027 = vmatpush.bf16.msra.mxu1 %v6446_v35  ;;  %v6479_v35 = vld [vmem:[%s11106_s3 + $0x1d0] sm:$0xf0] }
 0x322   :  { %v4241_v62 = vadd.f32 %v4240_v21, %v4227_v31  ;;  %v6478_v21 = vor.u32 %v6954_v2, %v6477_v49 }
 0x323   :  { %5141 = vmatpush.bf16.msra.mxu2 %v6346_v0  ;;  %v6984_v0 = vld [vmem:[%s11106_s3 + $0x2bc] sm:$0xf0]  ;;  %5053 = vmatpush.bf16.msra.mxu3 %v6450_v51  ;;  %v4282_v36 = vpop.f32.mrf.mxu1 }
 0x324   :  { %v6598_v43 = vor.u32 %v6984_v0, %v6597_v60  ;;  %v4255_v30 = vadd.f32 %v4254_v52, %v4241_v62  ;;  %v6482_v52 = vor.u32 %v6951_v3, %v6479_v35  ;;  %v6453_v60 = vld [vmem:[%s11106_s3 + $0x188] sm:$0xf]  ;;  %v6948_v0 = vld [vmem:[%s11106_s3 + $0x19c] sm:$0xf0]  ;;  %v6557_v3 = vld [vmem:[%s11106_s3 + $0x250] sm:$0xf] }
 0x325   :  { %5116 = vmatpush.bf16.msra.mxu0 %v6318_v44  ;;  %v6981_v44 = vld [vmem:[%s11106_s3 + $0x2ac] sm:$0xf]  ;;  %5072 = vmatpush.bf16.msrb.mxu1 %v6622_v16 }
 0x326   :  { %v4269_v6 = vadd.f32 %v4268_v56, %v4255_v30 }
 0x327   :  { %5142 = vmatpush.bf16.msra.mxu2 %v6322_v5  ;;  %5098 = vmatpush.bf16.msrb.mxu3 %v6626_v63  ;;  %v6975_v5 = vld [vmem:[%s11106_s3 + $0x27c] sm:$0xf] }
 0x328   :  { %v6578_v57 = vor.u32 %v6975_v5, %v6575_v38  ;;  %v4283_v42 = vadd.f32 %v4282_v36, %v4269_v6 }
 0x329   :  { %5117 = vmatpush.bf16.msra.mxu0 %v6294_v11  ;;  %5073 = vmatpush.bf16.msrb.mxu1 %v6598_v43  ;;  %v4294_v37 = vpop.f32.mrf.mxu2  ;;  %v4253_v11 = vadd.f32 %v10831_v10, %v4239_v12 }
 0x32b   :  { %5143 = vmatpush.bf16.msra.mxu2 %v6298_v59  ;;  %v6551_v59 = vld [vmem:[%s11106_s3 + $0x260] sm:$0xf0]  ;;  %v4267_v33 = vadd.f32 %v4266_v41, %v4253_v11  ;;  %v6454_v41 = vor.u32 %v6948_v0, %v6453_v60  ;;  %v6535_v60 = vld [vmem:[%s11106_s3 + $0x238] sm:$0xf0] }
 0x32c   :  { %v6554_v10 = vor.u32 %v6969_v15, %v6551_v59 }
 0x32d   :  { %5118 = vmatpush.bf16.msra.mxu0 %v6270_v58  ;;  %5074 = vmatpush.bf16.msrb.mxu1 %v6574_v39  ;;  %v6963_v58 = vld [vmem:[%s11106_s3 + $0x21c] sm:$0xf]  ;;  %v4281_v54 = vadd.f32 %v4280_v4, %v4267_v33 }
 0x32e   :  { %v6530_v13 = vor.u32 %v6963_v58, %v6527_v24  ;;  %v4336_v55 = vpop.f32.mrf.mxu1  ;;  %v6631_v24 = vld [vmem:[%s11106_s3 + $0x2f8] sm:$0xf0] }
 0x32f   :  { %5144 = vmatpush.bf16.msra.mxu2 %v6274_v23  ;;  %v4322_v23 = vpop.f32.mrf.mxu0  ;;  %v4295_v61 = vadd.f32 %v4294_v37, %v4281_v54  ;;  %v6605_v54 = vld [vmem:[%s11106_s3 + $0x2b0] sm:$0xf] }
 0x330   :  { %5119 = vmatmul.bf16.vlgmr.msra.gmra.mxu0 %v10621_v19  ;;  %v6606_v6 = vor.u32 %v6985_v47, %v6605_v54 }
 0x331   :  { %5075 = vmatpush.bf16.msrb.mxu1 %v6550_v9  ;;  %v4296_v50 = vpop.f32.mrf.mxu2  ;;  %v4309_v51 = vadd.f32 %v4308_v32, %v4295_v61  ;;  %v6976_v61 = vld [vmem:[%s11106_s3 + $0x284] sm:$0xf] }
 0x332   :  { %5145 = vmatmul.bf16.vlgmr.msra.gmra.mxu2 %v10621_v19  ;;  %v6599_v19 = vld [vmem:[%s11106_s3 + $0x2c0] sm:$0xf0]  ;;  %v4297_v16 = vadd.f32 %v4296_v50, %v4283_v42  ;;  %v6991_v50 = vld [vmem:[%s11106_s3 + $0x2f4] sm:$0xf0]  ;;  %v6973_v42 = vld [vmem:[%s11106_s3 + $0x264] sm:$0xf0] }
 0x333   :  { %v6602_v45 = vor.u32 %v6981_v44, %v6599_v19  ;;  %v6455_v44 = vld [vmem:[%s11106_s3 + $0x1a0] sm:$0xf0]  ;;  %v4323_v19 = vadd.f32 %v4322_v23, %v4309_v51  ;;  %v6630_v23 = vor.u32 %v6991_v50, %v6629_v1  ;;  %v6558_v35 = vor.u32 %v6973_v42, %v6557_v3  ;;  %v6533_v51 = vld [vmem:[%s11106_s3 + $0x220] sm:$0xf] }
 0x334   :  { %v6458_v43 = vor.u32 %v6945_v26, %v6455_v44  ;;  %v6509_v44 = vld [vmem:[%s11106_s3 + $0x1f0] sm:$0xf]  ;;  %v6997_v50 = vld [vmem:[%s11107_s4 + $0x1] ss:$0 sm:$0xff] }
 0x335   :  { %5099 = vmatpush.bf16.msrb.mxu3 %v6602_v45  ;;  %5076 = vmatpush.bf16.msrb.mxu1 %v6526_v14  ;;  %v4311_v45 = vadd.f32 %v4310_v40, %v4297_v16  ;;  %v4337_v28 = vadd.f32 %v4336_v55, %v4323_v19  ;;  %v6988_v14 = vld [vmem:[%s11106_s3 + $0x2e4] sm:$0xf]  ;;  %v6967_v16 = vld [vmem:[%s11106_s3 + $0x234] sm:$0xf0]  ;;  %v6961_v19 = vld [vmem:[%s11106_s3 + $0x204] sm:$0xf0] }
 0x336   :  { %v4364_v46 = vpop.f32.mrf.mxu3  ;;  %v4338_v4 = vpop.f32.mrf.mxu1  ;;  %v6534_v26 = vor.u32 %v6967_v16, %v6533_v51 }
 0x337   :  { %v4324_v63 = vpop.f32.mrf.mxu0 }
 0x338   :  { %v4325_v7 = vadd.f32 %v4324_v63, %v4311_v45  ;;  %v6964_v63 = vld [vmem:[%s11106_s3 + $0x224] sm:$0xf]  ;;  %v6510_v45 = vor.u32 %v6961_v19, %v6509_v44 }
 0x339   :  { %5100 = vmatpush.bf16.msrb.mxu3 %v6578_v57  ;;  %5077 = vmatpush.bf16.msrb.mxu1 %v6502_v17  ;;  %v4350_v22 = vpop.f32.mrf.mxu2  ;;  %v6610_v17 = vor.u32 %v6982_v8, %v6607_v53  ;;  %v6999_v8 = vld [vmem:[%s11107_s4 + $0x3] ss:$0 sm:$0xff] }
 0x33a   :  { %v4351_v27 = vadd.f32 %v4350_v22, %v4337_v28  ;;  %v4339_v12 = vadd.f32 %v4338_v4, %v4325_v7  ;;  %v6583_v22 = vld [vmem:[%s11106_s3 + $0x298] sm:$0xf0]  ;;  %v6511_v4 = vld [vmem:[%s11106_s3 + $0x208] sm:$0xf0]  ;;  %v6485_v7 = vld [vmem:[%s11106_s3 + $0x1c0] sm:$0xf] }
 0x33b   :  { %v6586_v2 = vor.u32 %v6976_v61, %v6583_v22 }
 0x33c   :  { %v4365_v39 = vadd.f32 %v4364_v46, %v4351_v27  ;;  %v6970_v46 = vld [vmem:[%s11106_s3 + $0x254] sm:$0xf]  ;;  %v6952_v27 = vld [vmem:[%s11106_s3 + $0x1c4] sm:$0xf] }
 0x33d   :  { %5101 = vmatpush.bf16.msrb.mxu3 %v6554_v10  ;;  %5078 = vmatpush.bf16.msrb.mxu1 %v6478_v21  ;;  %v6559_v21 = vld [vmem:[%s11106_s3 + $0x268] sm:$0xf0] }
 0x33e   :  { %v4366_v34 = vpop.f32.mrf.mxu3 }
 0x341   :  { %5102 = vmatpush.bf16.msrb.mxu3 %v6530_v13  ;;  %5079 = vmatpush.bf16.msrb.mxu1 %v6454_v41  ;;  %v4352_v37 = vpop.f32.mrf.mxu2  ;;  %v6634_v13 = vor.u32 %v6988_v14, %v6631_v24  ;;  %v6538_v41 = vor.u32 %v6964_v63, %v6535_v60 }
 0x342   :  { %v4353_v38 = vadd.f32 %v4352_v37, %v4339_v12  ;;  %v6955_v37 = vld [vmem:[%s11106_s3 + $0x1d4] sm:$0xf0] }
 0x344   :  { %v4367_v56 = vadd.f32 %v4366_v34, %v4353_v38  ;;  %v6487_v34 = vld [vmem:[%s11106_s3 + $0x1d8] sm:$0xf0]  ;;  %v6461_v38 = vld [vmem:[%s11106_s3 + $0x190] sm:$0xf] }
 0x345   :  { %5103 = vmatpush.bf16.msrb.mxu3 %v6506_v48  ;;  %v6979_v48 = vld [vmem:[%s11106_s3 + $0x294] sm:$0xf0] }
 0x346   :  { %v6582_v49 = vor.u32 %v6979_v48, %v6581_v20 }
 0x349   :  { %5104 = vmatpush.bf16.msrb.mxu3 %v6482_v52  ;;  %v6562_v52 = vor.u32 %v6970_v46, %v6559_v21  ;;  %v7001_v21 = vld [vmem:[%s11107_s4 + $0x5] ss:$0 sm:$0xff] }
 0x34d   :  { %5105 = vmatpush.bf16.msrb.mxu3 %v6458_v43  ;;  %v4378_v5 = vpop.f32.mrf.mxu0  ;;  %v6958_v43 = vld [vmem:[%s11106_s3 + $0x1f4] sm:$0xf] }
 0x34e   :  { %v4392_v32 = vpop.f32.mrf.mxu1  ;;  %v4379_v57 = vadd.f32 %v4378_v5, %v4365_v39  ;;  %v6514_v28 = vor.u32 %v6958_v43, %v6511_v4  ;;  %v6490_v39 = vor.u32 %v6952_v27, %v6487_v34 }
 0x350   :  { %v4393_v18 = vadd.f32 %v4392_v32, %v4379_v57  ;;  %v6486_v32 = vor.u32 %v6955_v37, %v6485_v7  ;;  %v6949_v57 = vld [vmem:[%s11106_s3 + $0x1a4] sm:$0xf0] }
 0x355   :  { %v4406_v31 = vpop.f32.mrf.mxu2  ;;  %v4380_v36 = vpop.f32.mrf.mxu0 }
 0x356   :  { %v4420_v11 = vpop.f32.mrf.mxu3  ;;  %v4381_v25 = vadd.f32 %v4380_v36, %v4367_v56  ;;  %v4407_v15 = vadd.f32 %v4406_v31, %v4393_v18  ;;  %v4394_v62 = vpop.f32.mrf.mxu1  ;;  %v6946_v31 = vld [vmem:[%s11106_s3 + $0x194] sm:$0xf]  ;;  %v6463_v56 = vld [vmem:[%s11106_s3 + $0x1a8] sm:$0xf0] }
 0x357   :  { %v6466_v36 = vor.u32 %v6946_v31, %v6463_v56 }
 0x358   :  { %v4395_v9 = vadd.f32 %v4394_v62, %v4381_v25  ;;  %v4421_v10 = vadd.f32 %v4420_v11, %v4407_v15  ;;  %v6462_v11 = vor.u32 %v6949_v57, %v6461_v38 }
 0x35a   :  { %v4426_v30 = vmax.f32 %v4421_v10, 0.0 }
 0x35d   :  { %v4408_v59 = vpop.f32.mrf.mxu2 }
 0x35e   :  { %v4409_v33 = vadd.f32 %v4408_v59, %v4395_v9  ;;  %v4422_v29 = vpop.f32.mrf.mxu3 }
 0x360   :  { %v4423_v58 = vadd.f32 %v4422_v29, %v4409_v33  ;;  %v6996_v33 = vld [vmem:[%s11107_s4] ss:$0 sm:$0xff] }
 0x362   :  { %v4428_v40 = vmax.f32 %v4423_v58, 0.0 }
 0x364   :  { %v10993_v55 = vpack.c.bf16 %v4428_v40, %v4426_v30 }
 0x366   :  { %5028 = vmatmul.bf16.vlgmr.msra.gmra.mxu1 %v10993_v55  ;;  %5054 = vmatmul.bf16.vlgmr.msra.gmra.mxu3 %v10993_v55 }
 0x367   :  { %5124 = vmatpush.bf16.msra.mxu1 %v6630_v23  ;;  %5150 = vmatpush.bf16.msra.mxu3 %v6634_v13  ;;  %v6998_v13 = vld [vmem:[%s11107_s4 + $0x2] ss:$0 sm:$0xff] }
 0x36b   :  { %5125 = vmatpush.bf16.msra.mxu1 %v6606_v6  ;;  %5151 = vmatpush.bf16.msra.mxu3 %v6610_v17 }
 0x36d   :  { %v5016_v0 = vpop.f32.mrf.mxu0 }
 0x36f   :  { %5126 = vmatpush.bf16.msra.mxu1 %v6582_v49  ;;  %5152 = vmatpush.bf16.msra.mxu3 %v6586_v2  ;;  %v7000_v49 = vld [vmem:[%s11107_s4 + $0x4] ss:$0 sm:$0xff] }
 0x373   :  { %5127 = vmatpush.bf16.msra.mxu1 %v6558_v35  ;;  %5153 = vmatpush.bf16.msra.mxu3 %v6562_v52 }
 0x375   :  { %v5042_v5 = vpop.f32.mrf.mxu2  ;;  %v5018_v12 = vpop.f32.mrf.mxu0 }
 0x376   :  { %5080 = vmatmul.bf16.vlgmr.msrb.gmra.mxu1 %v10993_v55  ;;  %5106 = vmatmul.bf16.vlgmr.msrb.gmra.mxu3 %v10993_v55 }
 0x377   :  { %5128 = vmatpush.bf16.msra.mxu1 %v6534_v26  ;;  %5154 = vmatpush.bf16.msra.mxu3 %v6538_v41 }
 0x37b   :  { %5129 = vmatpush.bf16.msra.mxu1 %v6510_v45  ;;  %5155 = vmatpush.bf16.msra.mxu3 %v6514_v28 }
 0x37d   :  { %v5044_v18 = vpop.f32.mrf.mxu2 }
 0x37f   :  { %5130 = vmatpush.bf16.msra.mxu1 %v6486_v32  ;;  %5156 = vmatpush.bf16.msra.mxu3 %v6490_v39 }
 0x383   :  { %5131 = vmatpush.bf16.msra.mxu1 %v6462_v11  ;;  %5157 = vmatpush.bf16.msra.mxu3 %v6466_v36 }
 0x386   :  { %5132 = vmatmul.bf16.vlgmr.msra.gmra.mxu1 %v10993_v55  ;;  %5158 = vmatmul.bf16.vlgmr.msra.gmra.mxu3 %v10993_v55 }
 0x38d   :  { %v5068_v25 = vpop.f32.mrf.mxu0 }
 0x395   :  { %v5094_v15 = vpop.f32.mrf.mxu2  ;;  %v5070_v62 = vpop.f32.mrf.mxu0 }
 0x39d   :  { %v5096_v9 = vpop.f32.mrf.mxu2 }
 0x3ad   :  { %v5120_v59 = vpop.f32.mrf.mxu0 }
 0x3b5   :  { %v5146_v10 = vpop.f32.mrf.mxu2  ;;  %v5121_v2 = vpop.f32.mrf.mxu0 }
 0x3bd   :  { %v5147_v35 = vpop.f32.mrf.mxu2 }
 0x3e3   :  { %v5029_v29 = vpop.f32.mrf.mxu1 }
 0x3e4   :  { %v5030_v1 = vadd.f32 %v5029_v29, %v5016_v0 }
 0x3e6   :  { %v5167_v58 = vadd.f32 %v6996_v33, %v5030_v1 }
 0x3e8   :  { %5168 = vst [vmem:[#allocation2] sm:$0x3] %v5167_v58 }
 0x3e9   :  { %v5055_v14 = vpop.f32.mrf.mxu3 }
 0x3ea   :  { %v5056_v24 = vadd.f32 %v5055_v14, %v5042_v5 }
 0x3eb   :  { %v5031_v30 = vpop.f32.mrf.mxu1 }
 0x3ec   :  { %v5174_v40 = vadd.f32 %v6997_v50, %v5056_v24 }
 0x3ee   :  { %5176 = vst [vmem:[#allocation2] sm:$0xc] %v5174_v40 }
 0x3f1   :  { %v5057_v23 = vpop.f32.mrf.mxu3 }
 0x3f3   :  { %v5081_v54 = vpop.f32.mrf.mxu1 }
 0x3f4   :  { %v5082_v55 = vadd.f32 %v5081_v54, %v5068_v25 }
 0x3f6   :  { %v5182_v47 = vadd.f32 %v6998_v13, %v5082_v55 }
 0x3f8   :  { %5184 = vst [vmem:[#allocation2] sm:$0x30] %v5182_v47 }
 0x3f9   :  { %v5107_v53 = vpop.f32.mrf.mxu3 }
 0x3fa   :  { %v5108_v6 = vadd.f32 %v5107_v53, %v5094_v15 }
 0x3fb   :  { %v5083_v17 = vpop.f32.mrf.mxu1 }
 0x3fc   :  { %v5190_v20 = vadd.f32 %v6999_v8, %v5108_v6 }
 0x3fe   :  { %5192 = vst [vmem:[#allocation2] sm:$0xc0] %v5190_v20 }
 0x401   :  { %v5109_v48 = vpop.f32.mrf.mxu3 }
 0x403   :  { %v5133_v61 = vpop.f32.mrf.mxu1 }
 0x409   :  { %v5159_v22 = vpop.f32.mrf.mxu3 }
 0x40b   :  { %v5134_v3 = vpop.f32.mrf.mxu1 }
 0x40c   :  { %v5135_v42 = vadd.f32 %v5134_v3, %v5121_v2 }
 0x40e   :  { %v5198_v46 = vadd.f32 %v7000_v49, %v5135_v42 }
 0x410   :  { %5200 = vst [vmem:[#allocation2 + $0x8] sm:$0x3] %v5198_v46 }
 0x411   :  { %v5160_v52 = vpop.f32.mrf.mxu3 }
 0x412   :  { %v5161_v51 = vadd.f32 %v5160_v52, %v5147_v35 }
 0x414   :  { %v5206_v16 = vadd.f32 %v7001_v21, %v5161_v51 }
 0x416   :  { %5208 = vst [vmem:[#allocation2 + $0x8] sm:$0xc] %v5206_v16 }
 0x417   :  { %5221 = dma.vmem_to_hbm [thread:$0]  %s5214_s16, 192, %s5216_s19, [#allocation3], %s7032_s20, %s7032_s20, %s7033_s1  }
 0x418   :  { %7028 = dma.done.wait [#allocation3], 192  }
 0x419   :  { %7029 = vsyncadd [#allocation3], 4294967104 }
 0x41a   :  { %5226 = vsyncpa [#allocation3], 1 }

</bundles_post_ra>
